<compile_context>
chip_gen: v6e
topology: v6e:2x2x1
jax: 0.10.0
libtpu: 0.0.40
codegen_flags: <defaults>
</compile_context>

<pallas_src>
import functools

import jax
import jax.numpy as jnp
import numpy as np
from jax.experimental import pallas as pl
from jax.experimental.pallas import tpu as pltpu


# ---------------------------------------------------------------------------
# Fused kernel: in-kernel im2col (shifted lane slices of the flattened padded
# image slab) -> K*K accumulated MXU dots for psi and chi, then the full
# rotating-features epilogue (magnitudes, BatchNorm batch stats, ReLU,
# rescale), all VMEM resident.
# ---------------------------------------------------------------------------
def _fused_rotating_conv_kernel(x_ref, w_ref, bias_ref, gamma_ref, beta_ref,
                                mask_ref, out_ref, psi_ref, magx_ref,
                                *, b, n, kk, wp, lq, cnt):
    # x_ref:    (Cin_p, b*n*Lq + tail)  bf16  flattened padded images, lane axis
    # w_ref:    (K*K, Cout, Cin_p)      bf16  conv taps, t = kh*K + kw
    # bias_ref: (n, Cout, 1)            f32   rotation bias
    # gamma_ref/beta_ref: (Cout, 1)     f32   BatchNorm2d affine params
    # mask_ref: (1, Lq)                 f32   1.0 on valid output pixels
    # out_ref:  (b, n, Cout, Lq)        f32   padded-grid output (lane-dense)
    # psi_ref:  VMEM scratch (Cout, b*n*Lq) f32
    # magx_ref: VMEM scratch (Cin_p, b*Lq + tail) f32
    cout = w_ref.shape[1]
    cin = w_ref.shape[2]
    bn = b * n
    l_psi = bn * lq
    l_chi = b * lq

    w = w_ref[...].astype(jnp.float32)                     # (K*K, Cout, Cin_p)

    # ---- Conv2d over all b*n rotation components: K*K shifted MXU dots -----
    # Tap (kh, kw) reads the flattened padded image shifted by s = kh*Wp + kw;
    # lanes that do not correspond to valid output pixels are garbage and are
    # masked / cropped downstream.
    psi = jnp.zeros((cout, l_psi), jnp.float32)
    for kh in range(kk):
        for kw in range(kk):
            s = kh * wp + kw
            xs = x_ref[...].astype(jnp.float32)[:, s:s + l_psi]
            psi = psi + jnp.dot(w[kh * kk + kw], xs,
                                preferred_element_type=jnp.float32)
    psi_ref[...] = psi                                     # park in VMEM scratch

    # ---- |x| over the rotation axis (input magnitude for the chi path) -----
    x = x_ref[...].astype(jnp.float32)
    for bi in range(b):
        m2 = jnp.zeros((cin, lq), jnp.float32)
        for ni in range(n):
            img = bi * n + ni
            xs = x[:, img * lq:(img + 1) * lq]
            m2 = m2 + xs * xs
        magx_ref[:, bi * lq:(bi + 1) * lq] = jnp.sqrt(m2)
    # zero the shift tail so tap slices that run past b*Lq read zeros
    magx_ref[:, b * lq:] = jnp.zeros(
        (cin, magx_ref.shape[1] - b * lq), jnp.float32)

    # ---- chi = Conv2d(|x|): K*K shifted dots over the magnitude slab -------
    magx = magx_ref[...]
    chi = jnp.zeros((cout, l_chi), jnp.float32)
    for kh in range(kk):
        for kw in range(kk):
            s = kh * wp + kw
            chi = chi + jnp.dot(w[kh * kk + kw], magx[:, s:s + l_chi],
                                preferred_element_type=jnp.float32)

    # ---- magnitudes + single-pass masked BatchNorm batch statistics --------
    maskf = mask_ref[...]                                  # (1, Lq)
    mag = []
    bn_sum = jnp.zeros((cout, 1), jnp.float32)
    bn_sumsq = jnp.zeros((cout, 1), jnp.float32)
    for bi in range(b):
        m2 = jnp.zeros((cout, lq), jnp.float32)
        for ni in range(n):
            img = bi * n + ni
            p = psi_ref[:, img * lq:(img + 1) * lq]
            m2 = m2 + p * p
        m = 0.5 * jnp.sqrt(m2) + 0.5 * chi[:, bi * lq:(bi + 1) * lq]
        mm = m * maskf
        bn_sum = bn_sum + jnp.sum(mm, axis=1, keepdims=True)      # XLU reduce
        bn_sumsq = bn_sumsq + jnp.sum(mm * m, axis=1, keepdims=True)
        mag.append(m)

    inv_cnt = 1.0 / cnt
    mean = bn_sum * inv_cnt
    var = bn_sumsq * inv_cnt - mean * mean                 # biased batch var
    a = jax.lax.rsqrt(var + 1e-5) * gamma_ref[...]         # folded BN affine
    c = beta_ref[...] - mean * a

    bias = bias_ref[...].astype(jnp.float32)               # (n, Cout, 1)
    bias_full = [jnp.broadcast_to(bias[ni], (cout, lq)) for ni in range(n)]

    # ---- BN + ReLU + rescale rotating features (z recomputed, no z_all) ----
    for bi in range(b):
        mhat = jnp.maximum(mag[bi] * a + c, 0.0)           # BatchNorm + ReLU
        z2 = jnp.zeros((cout, lq), jnp.float32)
        for ni in range(n):
            img = bi * n + ni
            z = psi_ref[:, img * lq:(img + 1) * lq] + bias_full[ni]
            z2 = z2 + z * z
        scale = mhat * pl.reciprocal(jnp.sqrt(z2) + 1e-8, approx=True)  # EUP
        for ni in range(n):
            img = bi * n + ni
            z = psi_ref[:, img * lq:(img + 1) * lq] + bias_full[ni]
            out_ref[bi, ni] = (z * scale).astype(out_ref.dtype)


# ---------------------------------------------------------------------------
# Wrapper: minimal layout plumbing (pad / transpose / flatten, ~1.2x input
# bytes in bf16), then one fused kernel call, then crop the padded grid.
# ---------------------------------------------------------------------------
def rotating_conv2d_forward(x, weight, rotation_bias, bn_gamma, bn_beta,
                            stride=1, padding=0):
    """RotatingConv2d.forward.  x: (b, n, c_in, H, W) -> (b, n, c_out, Ho, Wo)."""
    b, n, cin, H, W = x.shape
    cout, _, K, _ = weight.shape
    Ho = (H + 2 * padding - K) // stride + 1
    Wo = (W + 2 * padding - K) // stride + 1
    Hp = H + 2 * padding
    Wp = W + 2 * padding
    Pp = Hp * Wp
    BN = b * n
    cin_p = ((cin + 7) // 8) * 8                 # contraction dim -> sublane tile
    Lq = ((Pp + 127) // 128) * 128               # per-image flat length, lane aligned
    smax = (K - 1) * Wp + (K - 1)                # largest tap shift
    tail = ((smax + 127) // 128) * 128           # zero tail so shifted slices stay in bounds

    # (b,n,cin,H,W) -> channel-major, spatially padded, flattened, lane-padded slab
    xp = jnp.pad(x, ((0, 0), (0, 0), (0, cin_p - cin),
                     (padding, padding), (padding, padding)))
    xp = jnp.transpose(xp, (2, 0, 1, 3, 4)).reshape(cin_p, BN, Pp)
    xp = jnp.pad(xp, ((0, 0), (0, 0), (0, Lq - Pp))).reshape(cin_p, BN * Lq)
    x_slab = jnp.pad(xp, ((0, 0), (0, tail))).astype(jnp.bfloat16)

    # weight (Cout,Cin,K,K) -> (K*K, Cout, Cin_p), taps ordered t = kh*K + kw
    wt = jnp.pad(weight, ((0, 0), (0, cin_p - cin), (0, 0), (0, 0)))
    w_taps = jnp.transpose(wt, (2, 3, 0, 1)).reshape(K * K, cout, cin_p)
    w_taps = w_taps.astype(jnp.bfloat16)

    bias = rotation_bias.reshape(n, cout, 1).astype(jnp.float32)
    gamma = bn_gamma.reshape(cout, 1).astype(jnp.float32)
    beta = bn_beta.reshape(cout, 1).astype(jnp.float32)

    # compile-time constant: mask of valid output pixels on the padded grid
    valid2d = np.zeros((Hp, Wp), np.float32)
    valid2d[0:(Ho - 1) * stride + 1:stride, 0:(Wo - 1) * stride + 1:stride] = 1.0
    mask_np = np.zeros((1, Lq), np.float32)
    mask_np[0, :Pp] = valid2d.reshape(-1)
    mask = jnp.asarray(mask_np)

    kernel = functools.partial(_fused_rotating_conv_kernel, b=b, n=n, kk=K,
                               wp=Wp, lq=Lq, cnt=float(b * Ho * Wo))
    out = pl.pallas_call(
        kernel,
        out_shape=jax.ShapeDtypeStruct((b, n, cout, Lq), jnp.float32),
        scratch_shapes=[pltpu.VMEM((cout, BN * Lq), jnp.float32),
                        pltpu.VMEM((cin_p, b * Lq + tail), jnp.float32)],
    )(x_slab, w_taps, bias, gamma, beta, mask)

    # crop the padded-grid layout back to (b, n, c_out, Ho, Wo)
    out = out[..., :Pp].reshape(b, n, cout, Hp, Wp)
    out = out[..., ::stride, ::stride][..., :Ho, :Wo]
    return out


# ---------------------------------------------------------------------------
# Pure-JAX reference (NCHW) for verification.
# ---------------------------------------------------------------------------
def _ref_conv2d(x_nchw, weight, stride, padding):
    return jax.lax.conv_general_dilated(
        x_nchw, weight, window_strides=(stride, stride),
        padding=[(padding, padding), (padding, padding)],
        dimension_numbers=('NCHW', 'OIHW', 'NCHW'))


def _ref_forward(x, weight, rotation_bias, bn_gamma, bn_beta, stride, padding):
    b, n, cin, H, W = x.shape
    psi = _ref_conv2d(x.reshape(b * n, cin, H, W), weight, stride, padding)
    cout, Ho, Wo = psi.shape[1], psi.shape[2], psi.shape[3]
    psi = psi.reshape(b, n, cout, Ho, Wo)
    mag_psi = jnp.sqrt(jnp.sum(psi ** 2, axis=1))
    z = psi + rotation_bias
    mag_x = jnp.sqrt(jnp.sum(x ** 2, axis=1))
    chi = _ref_conv2d(mag_x, weight, stride, padding)
    magnitude = 0.5 * mag_psi + 0.5 * chi
    mean = jnp.mean(magnitude, axis=(0, 2, 3), keepdims=True)
    var = jnp.mean((magnitude - mean) ** 2, axis=(0, 2, 3), keepdims=True)
    magnitude = (magnitude - mean) / jnp.sqrt(var + 1e-5)
    magnitude = magnitude * bn_gamma.reshape(1, cout, 1, 1) \
        + bn_beta.reshape(1, cout, 1, 1)
    magnitude = jnp.maximum(magnitude, 0.0)
    z_mag = jnp.sqrt(jnp.sum(z ** 2, axis=1, keepdims=True))
    return z / (z_mag + 1e-8) * magnitude[:, None]


if __name__ == "__main__":
    # module config: rotation_dimensions=4, in=4, out=8, k=3, stride=1, pad=1
    b, n = 2, 4
    cin, cout = 4, 8
    K, stride, padding = 3, 1, 1
    H = W = 16

    key = jax.random.PRNGKey(0)
    kx, kw, kb = jax.random.split(key, 3)

    x = jax.random.normal(kx, (b, n, cin, H, W), jnp.float32)

    # deterministic synthetic parameters (shapes from the module __init__)
    fan_in = cin * K * K                                     # self.fan_in
    bound = 1.0 / np.sqrt(fan_in)
    weight = jax.random.uniform(kw, (cout, cin, K, K), jnp.float32,
                                -bound, bound)               # Conv2d weight, bias=False
    rotation_bias = jax.random.uniform(kb, (1, n, cout, 1, 1), jnp.float32,
                                       -bound, bound)        # init_rotation_bias
    bn_gamma = jnp.ones((cout,), jnp.float32)                # BatchNorm2d affine init
    bn_beta = jnp.zeros((cout,), jnp.float32)

    fwd = jax.jit(functools.partial(rotating_conv2d_forward,
                                    stride=stride, padding=padding))
    out = fwd(x, weight, rotation_bias, bn_gamma, bn_beta)
    out = jax.block_until_ready(out)

    ref = _ref_forward(x, weight, rotation_bias, bn_gamma, bn_beta,
                       stride, padding)
    np.testing.assert_allclose(np.asarray(out), np.asarray(ref),
                               rtol=2e-2, atol=2e-2)
    print("KERNEL_OK")
</pallas_src>

<mosaic_0001>
module attributes {stable_mosaic.version = 11 : i64} {
  func.func @_fused_rotating_conv_kernel(%arg0: memref<8x3200xbf16, #tpu.memory_space<vmem>>, %arg1: memref<9x8x8xbf16, #tpu.memory_space<vmem>>, %arg2: memref<4x8x1xf32, #tpu.memory_space<vmem>>, %arg3: memref<8x1xf32, #tpu.memory_space<vmem>>, %arg4: memref<8x1xf32, #tpu.memory_space<vmem>>, %arg5: memref<1x384xf32, #tpu.memory_space<vmem>>, %arg6: memref<2x4x8x384xf32, #tpu.memory_space<vmem>>, %arg7: memref<8x3072xf32, #tpu.memory_space<vmem>>, %arg8: memref<8x896xf32, #tpu.memory_space<vmem>>) attributes {dimension_semantics = [], scalar_prefetch = 0 : i64, scratch_operands = 2 : i64, tpu.core_type = #tpu.core_type<tc>} {
    %c0 = arith.constant 0 : index
    %c0_0 = arith.constant 0 : index
    %c0_1 = arith.constant 0 : index
    %0 = vector.load %arg1[%c0, %c0_0, %c0_1] : memref<9x8x8xbf16, #tpu.memory_space<vmem>>, vector<9x8x8xbf16>
    %1 = arith.extf %0 : vector<9x8x8xbf16> to vector<9x8x8xf32>
    %cst = arith.constant 0.000000e+00 : f32
    %2 = vector.broadcast %cst : f32 to vector<8x3072xf32>
    %c0_2 = arith.constant 0 : index
    %c0_3 = arith.constant 0 : index
    %3 = vector.load %arg0[%c0_2, %c0_3] : memref<8x3200xbf16, #tpu.memory_space<vmem>>, vector<8x3200xbf16>
    %4 = arith.extf %3 : vector<8x3200xbf16> to vector<8x3200xf32>
    %5 = vector.extract_strided_slice %4 {offsets = [0, 0], sizes = [8, 3072], strides = [1, 1]} : vector<8x3200xf32> to vector<8x3072xf32>
    %6 = vector.extract_strided_slice %1 {offsets = [0, 0, 0], sizes = [1, 8, 8], strides = [1, 1, 1]} : vector<9x8x8xf32> to vector<1x8x8xf32>
    %7 = vector.shape_cast %6 : vector<1x8x8xf32> to vector<8x8xf32>
    %cst_4 = arith.constant dense<0.000000e+00> : vector<8x3072xf32>
    %8 = tpu.matmul %7, %5, %cst_4 {dimension_numbers = #tpu.dot_dimension_numbers<[1], [0], [0], [1], [0, 0, 1, 1], [], []>} : vector<8x8xf32>, vector<8x3072xf32>, vector<8x3072xf32> -> vector<8x3072xf32>
    %9 = arith.addf %2, %8 : vector<8x3072xf32>
    %c0_5 = arith.constant 0 : index
    %c0_6 = arith.constant 0 : index
    %10 = vector.load %arg0[%c0_5, %c0_6] : memref<8x3200xbf16, #tpu.memory_space<vmem>>, vector<8x3200xbf16>
    %11 = arith.extf %10 : vector<8x3200xbf16> to vector<8x3200xf32>
    %12 = vector.extract_strided_slice %11 {offsets = [0, 1], sizes = [8, 3072], strides = [1, 1]} : vector<8x3200xf32> to vector<8x3072xf32>
    %13 = vector.extract_strided_slice %1 {offsets = [1, 0, 0], sizes = [1, 8, 8], strides = [1, 1, 1]} : vector<9x8x8xf32> to vector<1x8x8xf32>
    %14 = vector.shape_cast %13 : vector<1x8x8xf32> to vector<8x8xf32>
    %cst_7 = arith.constant dense<0.000000e+00> : vector<8x3072xf32>
    %15 = tpu.matmul %14, %12, %cst_7 {dimension_numbers = #tpu.dot_dimension_numbers<[1], [0], [0], [1], [0, 0, 1, 1], [], []>} : vector<8x8xf32>, vector<8x3072xf32>, vector<8x3072xf32> -> vector<8x3072xf32>
    %16 = arith.addf %9, %15 : vector<8x3072xf32>
    %c0_8 = arith.constant 0 : index
    %c0_9 = arith.constant 0 : index
    %17 = vector.load %arg0[%c0_8, %c0_9] : memref<8x3200xbf16, #tpu.memory_space<vmem>>, vector<8x3200xbf16>
    %18 = arith.extf %17 : vector<8x3200xbf16> to vector<8x3200xf32>
    %19 = vector.extract_strided_slice %18 {offsets = [0, 2], sizes = [8, 3072], strides = [1, 1]} : vector<8x3200xf32> to vector<8x3072xf32>
    %20 = vector.extract_strided_slice %1 {offsets = [2, 0, 0], sizes = [1, 8, 8], strides = [1, 1, 1]} : vector<9x8x8xf32> to vector<1x8x8xf32>
    %21 = vector.shape_cast %20 : vector<1x8x8xf32> to vector<8x8xf32>
    %cst_10 = arith.constant dense<0.000000e+00> : vector<8x3072xf32>
    %22 = tpu.matmul %21, %19, %cst_10 {dimension_numbers = #tpu.dot_dimension_numbers<[1], [0], [0], [1], [0, 0, 1, 1], [], []>} : vector<8x8xf32>, vector<8x3072xf32>, vector<8x3072xf32> -> vector<8x3072xf32>
    %23 = arith.addf %16, %22 : vector<8x3072xf32>
    %c0_11 = arith.constant 0 : index
    %c0_12 = arith.constant 0 : index
    %24 = vector.load %arg0[%c0_11, %c0_12] : memref<8x3200xbf16, #tpu.memory_space<vmem>>, vector<8x3200xbf16>
    %25 = arith.extf %24 : vector<8x3200xbf16> to vector<8x3200xf32>
    %26 = vector.extract_strided_slice %25 {offsets = [0, 18], sizes = [8, 3072], strides = [1, 1]} : vector<8x3200xf32> to vector<8x3072xf32>
    %27 = vector.extract_strided_slice %1 {offsets = [3, 0, 0], sizes = [1, 8, 8], strides = [1, 1, 1]} : vector<9x8x8xf32> to vector<1x8x8xf32>
    %28 = vector.shape_cast %27 : vector<1x8x8xf32> to vector<8x8xf32>
    %cst_13 = arith.constant dense<0.000000e+00> : vector<8x3072xf32>
    %29 = tpu.matmul %28, %26, %cst_13 {dimension_numbers = #tpu.dot_dimension_numbers<[1], [0], [0], [1], [0, 0, 1, 1], [], []>} : vector<8x8xf32>, vector<8x3072xf32>, vector<8x3072xf32> -> vector<8x3072xf32>
    %30 = arith.addf %23, %29 : vector<8x3072xf32>
    %c0_14 = arith.constant 0 : index
    %c0_15 = arith.constant 0 : index
    %31 = vector.load %arg0[%c0_14, %c0_15] : memref<8x3200xbf16, #tpu.memory_space<vmem>>, vector<8x3200xbf16>
    %32 = arith.extf %31 : vector<8x3200xbf16> to vector<8x3200xf32>
    %33 = vector.extract_strided_slice %32 {offsets = [0, 19], sizes = [8, 3072], strides = [1, 1]} : vector<8x3200xf32> to vector<8x3072xf32>
    %34 = vector.extract_strided_slice %1 {offsets = [4, 0, 0], sizes = [1, 8, 8], strides = [1, 1, 1]} : vector<9x8x8xf32> to vector<1x8x8xf32>
    %35 = vector.shape_cast %34 : vector<1x8x8xf32> to vector<8x8xf32>
    %cst_16 = arith.constant dense<0.000000e+00> : vector<8x3072xf32>
    %36 = tpu.matmul %35, %33, %cst_16 {dimension_numbers = #tpu.dot_dimension_numbers<[1], [0], [0], [1], [0, 0, 1, 1], [], []>} : vector<8x8xf32>, vector<8x3072xf32>, vector<8x3072xf32> -> vector<8x3072xf32>
    %37 = arith.addf %30, %36 : vector<8x3072xf32>
    %c0_17 = arith.constant 0 : index
    %c0_18 = arith.constant 0 : index
    %38 = vector.load %arg0[%c0_17, %c0_18] : memref<8x3200xbf16, #tpu.memory_space<vmem>>, vector<8x3200xbf16>
    %39 = arith.extf %38 : vector<8x3200xbf16> to vector<8x3200xf32>
    %40 = vector.extract_strided_slice %39 {offsets = [0, 20], sizes = [8, 3072], strides = [1, 1]} : vector<8x3200xf32> to vector<8x3072xf32>
    %41 = vector.extract_strided_slice %1 {offsets = [5, 0, 0], sizes = [1, 8, 8], strides = [1, 1, 1]} : vector<9x8x8xf32> to vector<1x8x8xf32>
    %42 = vector.shape_cast %41 : vector<1x8x8xf32> to vector<8x8xf32>
    %cst_19 = arith.constant dense<0.000000e+00> : vector<8x3072xf32>
    %43 = tpu.matmul %42, %40, %cst_19 {dimension_numbers = #tpu.dot_dimension_numbers<[1], [0], [0], [1], [0, 0, 1, 1], [], []>} : vector<8x8xf32>, vector<8x3072xf32>, vector<8x3072xf32> -> vector<8x3072xf32>
    %44 = arith.addf %37, %43 : vector<8x3072xf32>
    %c0_20 = arith.constant 0 : index
    %c0_21 = arith.constant 0 : index
    %45 = vector.load %arg0[%c0_20, %c0_21] : memref<8x3200xbf16, #tpu.memory_space<vmem>>, vector<8x3200xbf16>
    %46 = arith.extf %45 : vector<8x3200xbf16> to vector<8x3200xf32>
    %47 = vector.extract_strided_slice %46 {offsets = [0, 36], sizes = [8, 3072], strides = [1, 1]} : vector<8x3200xf32> to vector<8x3072xf32>
    %48 = vector.extract_strided_slice %1 {offsets = [6, 0, 0], sizes = [1, 8, 8], strides = [1, 1, 1]} : vector<9x8x8xf32> to vector<1x8x8xf32>
    %49 = vector.shape_cast %48 : vector<1x8x8xf32> to vector<8x8xf32>
    %cst_22 = arith.constant dense<0.000000e+00> : vector<8x3072xf32>
    %50 = tpu.matmul %49, %47, %cst_22 {dimension_numbers = #tpu.dot_dimension_numbers<[1], [0], [0], [1], [0, 0, 1, 1], [], []>} : vector<8x8xf32>, vector<8x3072xf32>, vector<8x3072xf32> -> vector<8x3072xf32>
    %51 = arith.addf %44, %50 : vector<8x3072xf32>
    %c0_23 = arith.constant 0 : index
    %c0_24 = arith.constant 0 : index
    %52 = vector.load %arg0[%c0_23, %c0_24] : memref<8x3200xbf16, #tpu.memory_space<vmem>>, vector<8x3200xbf16>
    %53 = arith.extf %52 : vector<8x3200xbf16> to vector<8x3200xf32>
    %54 = vector.extract_strided_slice %53 {offsets = [0, 37], sizes = [8, 3072], strides = [1, 1]} : vector<8x3200xf32> to vector<8x3072xf32>
    %55 = vector.extract_strided_slice %1 {offsets = [7, 0, 0], sizes = [1, 8, 8], strides = [1, 1, 1]} : vector<9x8x8xf32> to vector<1x8x8xf32>
    %56 = vector.shape_cast %55 : vector<1x8x8xf32> to vector<8x8xf32>
    %cst_25 = arith.constant dense<0.000000e+00> : vector<8x3072xf32>
    %57 = tpu.matmul %56, %54, %cst_25 {dimension_numbers = #tpu.dot_dimension_numbers<[1], [0], [0], [1], [0, 0, 1, 1], [], []>} : vector<8x8xf32>, vector<8x3072xf32>, vector<8x3072xf32> -> vector<8x3072xf32>
    %58 = arith.addf %51, %57 : vector<8x3072xf32>
    %c0_26 = arith.constant 0 : index
    %c0_27 = arith.constant 0 : index
    %59 = vector.load %arg0[%c0_26, %c0_27] : memref<8x3200xbf16, #tpu.memory_space<vmem>>, vector<8x3200xbf16>
    %60 = arith.extf %59 : vector<8x3200xbf16> to vector<8x3200xf32>
    %61 = vector.extract_strided_slice %60 {offsets = [0, 38], sizes = [8, 3072], strides = [1, 1]} : vector<8x3200xf32> to vector<8x3072xf32>
    %62 = vector.extract_strided_slice %1 {offsets = [8, 0, 0], sizes = [1, 8, 8], strides = [1, 1, 1]} : vector<9x8x8xf32> to vector<1x8x8xf32>
    %63 = vector.shape_cast %62 : vector<1x8x8xf32> to vector<8x8xf32>
    %cst_28 = arith.constant dense<0.000000e+00> : vector<8x3072xf32>
    %64 = tpu.matmul %63, %61, %cst_28 {dimension_numbers = #tpu.dot_dimension_numbers<[1], [0], [0], [1], [0, 0, 1, 1], [], []>} : vector<8x8xf32>, vector<8x3072xf32>, vector<8x3072xf32> -> vector<8x3072xf32>
    %65 = arith.addf %58, %64 : vector<8x3072xf32>
    %c0_29 = arith.constant 0 : index
    %c0_30 = arith.constant 0 : index
    %66 = vector.load %arg7[%c0_29, %c0_30] : memref<8x3072xf32, #tpu.memory_space<vmem>>, vector<8x3072xf32>
    tpu.vector_store %arg7[%c0_29, %c0_30], %65 {strides = array<i32>} : memref<8x3072xf32, #tpu.memory_space<vmem>>, vector<8x3072xf32>,
    %c0_31 = arith.constant 0 : index
    %c0_32 = arith.constant 0 : index
    %67 = vector.load %arg0[%c0_31, %c0_32] : memref<8x3200xbf16, #tpu.memory_space<vmem>>, vector<8x3200xbf16>
    %68 = arith.extf %67 : vector<8x3200xbf16> to vector<8x3200xf32>
    %cst_33 = arith.constant 0.000000e+00 : f32
    %69 = vector.broadcast %cst_33 : f32 to vector<8x384xf32>
    %70 = vector.extract_strided_slice %68 {offsets = [0, 0], sizes = [8, 384], strides = [1, 1]} : vector<8x3200xf32> to vector<8x384xf32>
    %71 = arith.mulf %70, %70 : vector<8x384xf32>
    %72 = arith.addf %69, %71 : vector<8x384xf32>
    %73 = vector.extract_strided_slice %68 {offsets = [0, 384], sizes = [8, 384], strides = [1, 1]} : vector<8x3200xf32> to vector<8x384xf32>
    %74 = arith.mulf %73, %73 : vector<8x384xf32>
    %75 = arith.addf %72, %74 : vector<8x384xf32>
    %76 = vector.extract_strided_slice %68 {offsets = [0, 768], sizes = [8, 384], strides = [1, 1]} : vector<8x3200xf32> to vector<8x384xf32>
    %77 = arith.mulf %76, %76 : vector<8x384xf32>
    %78 = arith.addf %75, %77 : vector<8x384xf32>
    %79 = vector.extract_strided_slice %68 {offsets = [0, 1152], sizes = [8, 384], strides = [1, 1]} : vector<8x3200xf32> to vector<8x384xf32>
    %80 = arith.mulf %79, %79 : vector<8x384xf32>
    %81 = arith.addf %78, %80 : vector<8x384xf32>
    %82 = math.sqrt %81 : vector<8x384xf32>
    %c0_34 = arith.constant 0 : index
    %c0_35 = arith.constant 0 : index
    %83 = vector.load %arg8[%c0_34, %c0_35] : memref<8x896xf32, #tpu.memory_space<vmem>>, vector<8x384xf32>
    tpu.vector_store %arg8[%c0_34, %c0_35], %82 {strides = array<i32>} : memref<8x896xf32, #tpu.memory_space<vmem>>, vector<8x384xf32>,
    %cst_36 = arith.constant 0.000000e+00 : f32
    %84 = vector.broadcast %cst_36 : f32 to vector<8x384xf32>
    %85 = vector.extract_strided_slice %68 {offsets = [0, 1536], sizes = [8, 384], strides = [1, 1]} : vector<8x3200xf32> to vector<8x384xf32>
    %86 = arith.mulf %85, %85 : vector<8x384xf32>
    %87 = arith.addf %84, %86 : vector<8x384xf32>
    %88 = vector.extract_strided_slice %68 {offsets = [0, 1920], sizes = [8, 384], strides = [1, 1]} : vector<8x3200xf32> to vector<8x384xf32>
    %89 = arith.mulf %88, %88 : vector<8x384xf32>
    %90 = arith.addf %87, %89 : vector<8x384xf32>
    %91 = vector.extract_strided_slice %68 {offsets = [0, 2304], sizes = [8, 384], strides = [1, 1]} : vector<8x3200xf32> to vector<8x384xf32>
    %92 = arith.mulf %91, %91 : vector<8x384xf32>
    %93 = arith.addf %90, %92 : vector<8x384xf32>
    %94 = vector.extract_strided_slice %68 {offsets = [0, 2688], sizes = [8, 384], strides = [1, 1]} : vector<8x3200xf32> to vector<8x384xf32>
    %95 = arith.mulf %94, %94 : vector<8x384xf32>
    %96 = arith.addf %93, %95 : vector<8x384xf32>
    %97 = math.sqrt %96 : vector<8x384xf32>
    %c0_37 = arith.constant 0 : index
    %c384 = arith.constant 384 : index
    %98 = vector.load %arg8[%c0_37, %c384] : memref<8x896xf32, #tpu.memory_space<vmem>>, vector<8x384xf32>
    tpu.vector_store %arg8[%c0_37, %c384], %97 {strides = array<i32>} : memref<8x896xf32, #tpu.memory_space<vmem>>, vector<8x384xf32>,
    %cst_38 = arith.constant 0.000000e+00 : f32
    %99 = vector.broadcast %cst_38 : f32 to vector<8x128xf32>
    %c0_39 = arith.constant 0 : index
    %c768 = arith.constant 768 : index
    %100 = vector.load %arg8[%c0_39, %c768] : memref<8x896xf32, #tpu.memory_space<vmem>>, vector<8x128xf32>
    tpu.vector_store %arg8[%c0_39, %c768], %99 {strides = array<i32>} : memref<8x896xf32, #tpu.memory_space<vmem>>, vector<8x128xf32>,
    %c0_40 = arith.constant 0 : index
    %c0_41 = arith.constant 0 : index
    %101 = vector.load %arg8[%c0_40, %c0_41] : memref<8x896xf32, #tpu.memory_space<vmem>>, vector<8x896xf32>
    %cst_42 = arith.constant 0.000000e+00 : f32
    %102 = vector.broadcast %cst_42 : f32 to vector<8x768xf32>
    %103 = vector.extract_strided_slice %1 {offsets = [0, 0, 0], sizes = [1, 8, 8], strides = [1, 1, 1]} : vector<9x8x8xf32> to vector<1x8x8xf32>
    %104 = vector.shape_cast %103 : vector<1x8x8xf32> to vector<8x8xf32>
    %105 = vector.extract_strided_slice %101 {offsets = [0, 0], sizes = [8, 768], strides = [1, 1]} : vector<8x896xf32> to vector<8x768xf32>
    %cst_43 = arith.constant dense<0.000000e+00> : vector<8x768xf32>
    %106 = tpu.matmul %104, %105, %cst_43 {dimension_numbers = #tpu.dot_dimension_numbers<[1], [0], [0], [1], [0, 0, 1, 1], [], []>} : vector<8x8xf32>, vector<8x768xf32>, vector<8x768xf32> -> vector<8x768xf32>
    %107 = arith.addf %102, %106 : vector<8x768xf32>
    %108 = vector.extract_strided_slice %1 {offsets = [1, 0, 0], sizes = [1, 8, 8], strides = [1, 1, 1]} : vector<9x8x8xf32> to vector<1x8x8xf32>
    %109 = vector.shape_cast %108 : vector<1x8x8xf32> to vector<8x8xf32>
    %110 = vector.extract_strided_slice %101 {offsets = [0, 1], sizes = [8, 768], strides = [1, 1]} : vector<8x896xf32> to vector<8x768xf32>
    %cst_44 = arith.constant dense<0.000000e+00> : vector<8x768xf32>
    %111 = tpu.matmul %109, %110, %cst_44 {dimension_numbers = #tpu.dot_dimension_numbers<[1], [0], [0], [1], [0, 0, 1, 1], [], []>} : vector<8x8xf32>, vector<8x768xf32>, vector<8x768xf32> -> vector<8x768xf32>
    %112 = arith.addf %107, %111 : vector<8x768xf32>
    %113 = vector.extract_strided_slice %1 {offsets = [2, 0, 0], sizes = [1, 8, 8], strides = [1, 1, 1]} : vector<9x8x8xf32> to vector<1x8x8xf32>
    %114 = vector.shape_cast %113 : vector<1x8x8xf32> to vector<8x8xf32>
    %115 = vector.extract_strided_slice %101 {offsets = [0, 2], sizes = [8, 768], strides = [1, 1]} : vector<8x896xf32> to vector<8x768xf32>
    %cst_45 = arith.constant dense<0.000000e+00> : vector<8x768xf32>
    %116 = tpu.matmul %114, %115, %cst_45 {dimension_numbers = #tpu.dot_dimension_numbers<[1], [0], [0], [1], [0, 0, 1, 1], [], []>} : vector<8x8xf32>, vector<8x768xf32>, vector<8x768xf32> -> vector<8x768xf32>
    %117 = arith.addf %112, %116 : vector<8x768xf32>
    %118 = vector.extract_strided_slice %1 {offsets = [3, 0, 0], sizes = [1, 8, 8], strides = [1, 1, 1]} : vector<9x8x8xf32> to vector<1x8x8xf32>
    %119 = vector.shape_cast %118 : vector<1x8x8xf32> to vector<8x8xf32>
    %120 = vector.extract_strided_slice %101 {offsets = [0, 18], sizes = [8, 768], strides = [1, 1]} : vector<8x896xf32> to vector<8x768xf32>
    %cst_46 = arith.constant dense<0.000000e+00> : vector<8x768xf32>
    %121 = tpu.matmul %119, %120, %cst_46 {dimension_numbers = #tpu.dot_dimension_numbers<[1], [0], [0], [1], [0, 0, 1, 1], [], []>} : vector<8x8xf32>, vector<8x768xf32>, vector<8x768xf32> -> vector<8x768xf32>
    %122 = arith.addf %117, %121 : vector<8x768xf32>
    %123 = vector.extract_strided_slice %1 {offsets = [4, 0, 0], sizes = [1, 8, 8], strides = [1, 1, 1]} : vector<9x8x8xf32> to vector<1x8x8xf32>
    %124 = vector.shape_cast %123 : vector<1x8x8xf32> to vector<8x8xf32>
    %125 = vector.extract_strided_slice %101 {offsets = [0, 19], sizes = [8, 768], strides = [1, 1]} : vector<8x896xf32> to vector<8x768xf32>
    %cst_47 = arith.constant dense<0.000000e+00> : vector<8x768xf32>
    %126 = tpu.matmul %124, %125, %cst_47 {dimension_numbers = #tpu.dot_dimension_numbers<[1], [0], [0], [1], [0, 0, 1, 1], [], []>} : vector<8x8xf32>, vector<8x768xf32>, vector<8x768xf32> -> vector<8x768xf32>
    %127 = arith.addf %122, %126 : vector<8x768xf32>
    %128 = vector.extract_strided_slice %1 {offsets = [5, 0, 0], sizes = [1, 8, 8], strides = [1, 1, 1]} : vector<9x8x8xf32> to vector<1x8x8xf32>
    %129 = vector.shape_cast %128 : vector<1x8x8xf32> to vector<8x8xf32>
    %130 = vector.extract_strided_slice %101 {offsets = [0, 20], sizes = [8, 768], strides = [1, 1]} : vector<8x896xf32> to vector<8x768xf32>
    %cst_48 = arith.constant dense<0.000000e+00> : vector<8x768xf32>
    %131 = tpu.matmul %129, %130, %cst_48 {dimension_numbers = #tpu.dot_dimension_numbers<[1], [0], [0], [1], [0, 0, 1, 1], [], []>} : vector<8x8xf32>, vector<8x768xf32>, vector<8x768xf32> -> vector<8x768xf32>
    %132 = arith.addf %127, %131 : vector<8x768xf32>
    %133 = vector.extract_strided_slice %1 {offsets = [6, 0, 0], sizes = [1, 8, 8], strides = [1, 1, 1]} : vector<9x8x8xf32> to vector<1x8x8xf32>
    %134 = vector.shape_cast %133 : vector<1x8x8xf32> to vector<8x8xf32>
    %135 = vector.extract_strided_slice %101 {offsets = [0, 36], sizes = [8, 768], strides = [1, 1]} : vector<8x896xf32> to vector<8x768xf32>
    %cst_49 = arith.constant dense<0.000000e+00> : vector<8x768xf32>
    %136 = tpu.matmul %134, %135, %cst_49 {dimension_numbers = #tpu.dot_dimension_numbers<[1], [0], [0], [1], [0, 0, 1, 1], [], []>} : vector<8x8xf32>, vector<8x768xf32>, vector<8x768xf32> -> vector<8x768xf32>
    %137 = arith.addf %132, %136 : vector<8x768xf32>
    %138 = vector.extract_strided_slice %1 {offsets = [7, 0, 0], sizes = [1, 8, 8], strides = [1, 1, 1]} : vector<9x8x8xf32> to vector<1x8x8xf32>
    %139 = vector.shape_cast %138 : vector<1x8x8xf32> to vector<8x8xf32>
    %140 = vector.extract_strided_slice %101 {offsets = [0, 37], sizes = [8, 768], strides = [1, 1]} : vector<8x896xf32> to vector<8x768xf32>
    %cst_50 = arith.constant dense<0.000000e+00> : vector<8x768xf32>
    %141 = tpu.matmul %139, %140, %cst_50 {dimension_numbers = #tpu.dot_dimension_numbers<[1], [0], [0], [1], [0, 0, 1, 1], [], []>} : vector<8x8xf32>, vector<8x768xf32>, vector<8x768xf32> -> vector<8x768xf32>
    %142 = arith.addf %137, %141 : vector<8x768xf32>
    %143 = vector.extract_strided_slice %1 {offsets = [8, 0, 0], sizes = [1, 8, 8], strides = [1, 1, 1]} : vector<9x8x8xf32> to vector<1x8x8xf32>
    %144 = vector.shape_cast %143 : vector<1x8x8xf32> to vector<8x8xf32>
    %145 = vector.extract_strided_slice %101 {offsets = [0, 38], sizes = [8, 768], strides = [1, 1]} : vector<8x896xf32> to vector<8x768xf32>
    %cst_51 = arith.constant dense<0.000000e+00> : vector<8x768xf32>
    %146 = tpu.matmul %144, %145, %cst_51 {dimension_numbers = #tpu.dot_dimension_numbers<[1], [0], [0], [1], [0, 0, 1, 1], [], []>} : vector<8x8xf32>, vector<8x768xf32>, vector<8x768xf32> -> vector<8x768xf32>
    %147 = arith.addf %142, %146 : vector<8x768xf32>
    %c0_52 = arith.constant 0 : index
    %c0_53 = arith.constant 0 : index
    %148 = vector.load %arg5[%c0_52, %c0_53] : memref<1x384xf32, #tpu.memory_space<vmem>>, vector<1x384xf32>
    %cst_54 = arith.constant 0.000000e+00 : f32
    %149 = vector.broadcast %cst_54 : f32 to vector<8x1xf32>
    %cst_55 = arith.constant 0.000000e+00 : f32
    %150 = vector.broadcast %cst_55 : f32 to vector<8x1xf32>
    %cst_56 = arith.constant 0.000000e+00 : f32
    %151 = vector.broadcast %cst_56 : f32 to vector<8x384xf32>
    %c0_57 = arith.constant 0 : index
    %c0_58 = arith.constant 0 : index
    %152 = vector.load %arg7[%c0_57, %c0_58] : memref<8x3072xf32, #tpu.memory_space<vmem>>, vector<8x384xf32>
    %153 = arith.mulf %152, %152 : vector<8x384xf32>
    %154 = arith.addf %151, %153 : vector<8x384xf32>
    %c0_59 = arith.constant 0 : index
    %c384_60 = arith.constant 384 : index
    %155 = vector.load %arg7[%c0_59, %c384_60] : memref<8x3072xf32, #tpu.memory_space<vmem>>, vector<8x384xf32>
    %156 = arith.mulf %155, %155 : vector<8x384xf32>
    %157 = arith.addf %154, %156 : vector<8x384xf32>
    %c0_61 = arith.constant 0 : index
    %c768_62 = arith.constant 768 : index
    %158 = vector.load %arg7[%c0_61, %c768_62] : memref<8x3072xf32, #tpu.memory_space<vmem>>, vector<8x384xf32>
    %159 = arith.mulf %158, %158 : vector<8x384xf32>
    %160 = arith.addf %157, %159 : vector<8x384xf32>
    %c0_63 = arith.constant 0 : index
    %c1152 = arith.constant 1152 : index
    %161 = vector.load %arg7[%c0_63, %c1152] : memref<8x3072xf32, #tpu.memory_space<vmem>>, vector<8x384xf32>
    %162 = arith.mulf %161, %161 : vector<8x384xf32>
    %163 = arith.addf %160, %162 : vector<8x384xf32>
    %164 = math.sqrt %163 : vector<8x384xf32>
    %cst_64 = arith.constant 5.000000e-01 : f32
    %165 = vector.broadcast %cst_64 : f32 to vector<8x384xf32>
    %166 = arith.mulf %165, %164 : vector<8x384xf32>
    %167 = vector.extract_strided_slice %147 {offsets = [0, 0], sizes = [8, 384], strides = [1, 1]} : vector<8x768xf32> to vector<8x384xf32>
    %cst_65 = arith.constant 5.000000e-01 : f32
    %168 = vector.broadcast %cst_65 : f32 to vector<8x384xf32>
    %169 = arith.mulf %168, %167 : vector<8x384xf32>
    %170 = arith.addf %166, %169 : vector<8x384xf32>
    %171 = vector.broadcast %148 : vector<1x384xf32> to vector<8x384xf32>
    %172 = arith.mulf %170, %171 : vector<8x384xf32>
    %cst_66 = arith.constant dense<0.000000e+00> : vector<8xf32>
    %173 = vector.multi_reduction <add>, %172, %cst_66 [1] : vector<8x384xf32> to vector<8xf32>
    %174 = vector.shape_cast %173 : vector<8xf32> to vector<8x1xf32>
    %175 = arith.addf %149, %174 : vector<8x1xf32>
    %176 = arith.mulf %172, %170 : vector<8x384xf32>
    %cst_67 = arith.constant dense<0.000000e+00> : vector<8xf32>
    %177 = vector.multi_reduction <add>, %176, %cst_67 [1] : vector<8x384xf32> to vector<8xf32>
    %178 = vector.shape_cast %177 : vector<8xf32> to vector<8x1xf32>
    %179 = arith.addf %150, %178 : vector<8x1xf32>
    %cst_68 = arith.constant 0.000000e+00 : f32
    %180 = vector.broadcast %cst_68 : f32 to vector<8x384xf32>
    %c0_69 = arith.constant 0 : index
    %c1536 = arith.constant 1536 : index
    %181 = vector.load %arg7[%c0_69, %c1536] : memref<8x3072xf32, #tpu.memory_space<vmem>>, vector<8x384xf32>
    %182 = arith.mulf %181, %181 : vector<8x384xf32>
    %183 = arith.addf %180, %182 : vector<8x384xf32>
    %c0_70 = arith.constant 0 : index
    %c1920 = arith.constant 1920 : index
    %184 = vector.load %arg7[%c0_70, %c1920] : memref<8x3072xf32, #tpu.memory_space<vmem>>, vector<8x384xf32>
    %185 = arith.mulf %184, %184 : vector<8x384xf32>
    %186 = arith.addf %183, %185 : vector<8x384xf32>
    %c0_71 = arith.constant 0 : index
    %c2304 = arith.constant 2304 : index
    %187 = vector.load %arg7[%c0_71, %c2304] : memref<8x3072xf32, #tpu.memory_space<vmem>>, vector<8x384xf32>
    %188 = arith.mulf %187, %187 : vector<8x384xf32>
    %189 = arith.addf %186, %188 : vector<8x384xf32>
    %c0_72 = arith.constant 0 : index
    %c2688 = arith.constant 2688 : index
    %190 = vector.load %arg7[%c0_72, %c2688] : memref<8x3072xf32, #tpu.memory_space<vmem>>, vector<8x384xf32>
    %191 = arith.mulf %190, %190 : vector<8x384xf32>
    %192 = arith.addf %189, %191 : vector<8x384xf32>
    %193 = math.sqrt %192 : vector<8x384xf32>
    %cst_73 = arith.constant 5.000000e-01 : f32
    %194 = vector.broadcast %cst_73 : f32 to vector<8x384xf32>
    %195 = arith.mulf %194, %193 : vector<8x384xf32>
    %196 = vector.extract_strided_slice %147 {offsets = [0, 384], sizes = [8, 384], strides = [1, 1]} : vector<8x768xf32> to vector<8x384xf32>
    %cst_74 = arith.constant 5.000000e-01 : f32
    %197 = vector.broadcast %cst_74 : f32 to vector<8x384xf32>
    %198 = arith.mulf %197, %196 : vector<8x384xf32>
    %199 = arith.addf %195, %198 : vector<8x384xf32>
    %200 = vector.broadcast %148 : vector<1x384xf32> to vector<8x384xf32>
    %201 = arith.mulf %199, %200 : vector<8x384xf32>
    %cst_75 = arith.constant dense<0.000000e+00> : vector<8xf32>
    %202 = vector.multi_reduction <add>, %201, %cst_75 [1] : vector<8x384xf32> to vector<8xf32>
    %203 = vector.shape_cast %202 : vector<8xf32> to vector<8x1xf32>
    %204 = arith.addf %175, %203 : vector<8x1xf32>
    %205 = arith.mulf %201, %199 : vector<8x384xf32>
    %cst_76 = arith.constant dense<0.000000e+00> : vector<8xf32>
    %206 = vector.multi_reduction <add>, %205, %cst_76 [1] : vector<8x384xf32> to vector<8xf32>
    %207 = vector.shape_cast %206 : vector<8xf32> to vector<8x1xf32>
    %208 = arith.addf %179, %207 : vector<8x1xf32>
    %cst_77 = arith.constant 0.001953125 : f32
    %209 = vector.broadcast %cst_77 : f32 to vector<8x1xf32>
    %210 = arith.mulf %204, %209 : vector<8x1xf32>
    %cst_78 = arith.constant 0.001953125 : f32
    %211 = vector.broadcast %cst_78 : f32 to vector<8x1xf32>
    %212 = arith.mulf %208, %211 : vector<8x1xf32>
    %213 = arith.mulf %210, %210 : vector<8x1xf32>
    %214 = arith.subf %212, %213 : vector<8x1xf32>
    %cst_79 = arith.constant 9.99999974E-6 : f32
    %215 = vector.broadcast %cst_79 : f32 to vector<8x1xf32>
    %216 = arith.addf %214, %215 : vector<8x1xf32>
    %217 = math.rsqrt %216 : vector<8x1xf32>
    %c0_80 = arith.constant 0 : index
    %c0_81 = arith.constant 0 : index
    %218 = vector.load %arg3[%c0_80, %c0_81] : memref<8x1xf32, #tpu.memory_space<vmem>>, vector<8x1xf32>
    %219 = arith.mulf %217, %218 : vector<8x1xf32>
    %c0_82 = arith.constant 0 : index
    %c0_83 = arith.constant 0 : index
    %220 = vector.load %arg4[%c0_82, %c0_83] : memref<8x1xf32, #tpu.memory_space<vmem>>, vector<8x1xf32>
    %221 = arith.mulf %210, %219 : vector<8x1xf32>
    %222 = arith.subf %220, %221 : vector<8x1xf32>
    %c0_84 = arith.constant 0 : index
    %c0_85 = arith.constant 0 : index
    %c0_86 = arith.constant 0 : index
    %223 = vector.load %arg2[%c0_84, %c0_85, %c0_86] : memref<4x8x1xf32, #tpu.memory_space<vmem>>, vector<4x8x1xf32>
    %224 = vector.extract_strided_slice %223 {offsets = [0, 0, 0], sizes = [1, 8, 1], strides = [1, 1, 1]} : vector<4x8x1xf32> to vector<1x8x1xf32>
    %225 = vector.shape_cast %224 : vector<1x8x1xf32> to vector<8x1xf32>
    %226 = vector.shape_cast %225 : vector<8x1xf32> to vector<8x1xf32>
    %227 = vector.broadcast %226 : vector<8x1xf32> to vector<8x384xf32>
    %228 = vector.extract_strided_slice %223 {offsets = [1, 0, 0], sizes = [1, 8, 1], strides = [1, 1, 1]} : vector<4x8x1xf32> to vector<1x8x1xf32>
    %229 = vector.shape_cast %228 : vector<1x8x1xf32> to vector<8x1xf32>
    %230 = vector.shape_cast %229 : vector<8x1xf32> to vector<8x1xf32>
    %231 = vector.broadcast %230 : vector<8x1xf32> to vector<8x384xf32>
    %232 = vector.extract_strided_slice %223 {offsets = [2, 0, 0], sizes = [1, 8, 1], strides = [1, 1, 1]} : vector<4x8x1xf32> to vector<1x8x1xf32>
    %233 = vector.shape_cast %232 : vector<1x8x1xf32> to vector<8x1xf32>
    %234 = vector.shape_cast %233 : vector<8x1xf32> to vector<8x1xf32>
    %235 = vector.broadcast %234 : vector<8x1xf32> to vector<8x384xf32>
    %236 = vector.extract_strided_slice %223 {offsets = [3, 0, 0], sizes = [1, 8, 1], strides = [1, 1, 1]} : vector<4x8x1xf32> to vector<1x8x1xf32>
    %237 = vector.shape_cast %236 : vector<1x8x1xf32> to vector<8x1xf32>
    %238 = vector.shape_cast %237 : vector<8x1xf32> to vector<8x1xf32>
    %239 = vector.broadcast %238 : vector<8x1xf32> to vector<8x384xf32>
    %240 = vector.broadcast %219 : vector<8x1xf32> to vector<8x384xf32>
    %241 = arith.mulf %170, %240 : vector<8x384xf32>
    %242 = vector.broadcast %222 : vector<8x1xf32> to vector<8x384xf32>
    %243 = arith.addf %241, %242 : vector<8x384xf32>
    %cst_87 = arith.constant 0.000000e+00 : f32
    %244 = vector.broadcast %cst_87 : f32 to vector<8x384xf32>
    %245 = arith.maximumf %243, %244 : vector<8x384xf32>
    %cst_88 = arith.constant 0.000000e+00 : f32
    %246 = vector.broadcast %cst_88 : f32 to vector<8x384xf32>
    %c0_89 = arith.constant 0 : index
    %c0_90 = arith.constant 0 : index
    %247 = vector.load %arg7[%c0_89, %c0_90] : memref<8x3072xf32, #tpu.memory_space<vmem>>, vector<8x384xf32>
    %248 = arith.addf %247, %227 : vector<8x384xf32>
    %249 = arith.mulf %248, %248 : vector<8x384xf32>
    %250 = arith.addf %246, %249 : vector<8x384xf32>
    %c0_91 = arith.constant 0 : index
    %c384_92 = arith.constant 384 : index
    %251 = vector.load %arg7[%c0_91, %c384_92] : memref<8x3072xf32, #tpu.memory_space<vmem>>, vector<8x384xf32>
    %252 = arith.addf %251, %231 : vector<8x384xf32>
    %253 = arith.mulf %252, %252 : vector<8x384xf32>
    %254 = arith.addf %250, %253 : vector<8x384xf32>
    %c0_93 = arith.constant 0 : index
    %c768_94 = arith.constant 768 : index
    %255 = vector.load %arg7[%c0_93, %c768_94] : memref<8x3072xf32, #tpu.memory_space<vmem>>, vector<8x384xf32>
    %256 = arith.addf %255, %235 : vector<8x384xf32>
    %257 = arith.mulf %256, %256 : vector<8x384xf32>
    %258 = arith.addf %254, %257 : vector<8x384xf32>
    %c0_95 = arith.constant 0 : index
    %c1152_96 = arith.constant 1152 : index
    %259 = vector.load %arg7[%c0_95, %c1152_96] : memref<8x3072xf32, #tpu.memory_space<vmem>>, vector<8x384xf32>
    %260 = arith.addf %259, %239 : vector<8x384xf32>
    %261 = arith.mulf %260, %260 : vector<8x384xf32>
    %262 = arith.addf %258, %261 : vector<8x384xf32>
    %263 = math.sqrt %262 : vector<8x384xf32>
    %cst_97 = arith.constant 9.99999993E-9 : f32
    %264 = vector.broadcast %cst_97 : f32 to vector<8x384xf32>
    %265 = arith.addf %263, %264 : vector<8x384xf32>
    %266 = tpu.reciprocal %265 {approx = true} : vector<8x384xf32> -> vector<8x384xf32>
    %267 = arith.mulf %245, %266 : vector<8x384xf32>
    %c0_98 = arith.constant 0 : index
    %c0_99 = arith.constant 0 : index
    %268 = vector.load %arg7[%c0_98, %c0_99] : memref<8x3072xf32, #tpu.memory_space<vmem>>, vector<8x384xf32>
    %269 = arith.addf %268, %227 : vector<8x384xf32>
    %270 = arith.mulf %269, %267 : vector<8x384xf32>
    %c0_100 = arith.constant 0 : index
    %c0_101 = arith.constant 0 : index
    %c0_102 = arith.constant 0 : index
    %c0_103 = arith.constant 0 : index
    %271 = vector.load %arg6[%c0_100, %c0_101, %c0_102, %c0_103] : memref<2x4x8x384xf32, #tpu.memory_space<vmem>>, vector<1x1x8x384xf32>
    %272 = vector.shape_cast %271 : vector<1x1x8x384xf32> to vector<8x384xf32>
    %273 = vector.shape_cast %270 : vector<8x384xf32> to vector<1x1x8x384xf32>
    tpu.vector_store %arg6[%c0_100, %c0_101, %c0_102, %c0_103], %273 {strides = array<i32>} : memref<2x4x8x384xf32, #tpu.memory_space<vmem>>, vector<1x1x8x384xf32>,
    %c0_104 = arith.constant 0 : index
    %c384_105 = arith.constant 384 : index
    %274 = vector.load %arg7[%c0_104, %c384_105] : memref<8x3072xf32, #tpu.memory_space<vmem>>, vector<8x384xf32>
    %275 = arith.addf %274, %231 : vector<8x384xf32>
    %276 = arith.mulf %275, %267 : vector<8x384xf32>
    %c0_106 = arith.constant 0 : index
    %c1 = arith.constant 1 : index
    %c0_107 = arith.constant 0 : index
    %c0_108 = arith.constant 0 : index
    %277 = vector.load %arg6[%c0_106, %c1, %c0_107, %c0_108] : memref<2x4x8x384xf32, #tpu.memory_space<vmem>>, vector<1x1x8x384xf32>
    %278 = vector.shape_cast %277 : vector<1x1x8x384xf32> to vector<8x384xf32>
    %279 = vector.shape_cast %276 : vector<8x384xf32> to vector<1x1x8x384xf32>
    tpu.vector_store %arg6[%c0_106, %c1, %c0_107, %c0_108], %279 {strides = array<i32>} : memref<2x4x8x384xf32, #tpu.memory_space<vmem>>, vector<1x1x8x384xf32>,
    %c0_109 = arith.constant 0 : index
    %c768_110 = arith.constant 768 : index
    %280 = vector.load %arg7[%c0_109, %c768_110] : memref<8x3072xf32, #tpu.memory_space<vmem>>, vector<8x384xf32>
    %281 = arith.addf %280, %235 : vector<8x384xf32>
    %282 = arith.mulf %281, %267 : vector<8x384xf32>
    %c0_111 = arith.constant 0 : index
    %c2 = arith.constant 2 : index
    %c0_112 = arith.constant 0 : index
    %c0_113 = arith.constant 0 : index
    %283 = vector.load %arg6[%c0_111, %c2, %c0_112, %c0_113] : memref<2x4x8x384xf32, #tpu.memory_space<vmem>>, vector<1x1x8x384xf32>
    %284 = vector.shape_cast %283 : vector<1x1x8x384xf32> to vector<8x384xf32>
    %285 = vector.shape_cast %282 : vector<8x384xf32> to vector<1x1x8x384xf32>
    tpu.vector_store %arg6[%c0_111, %c2, %c0_112, %c0_113], %285 {strides = array<i32>} : memref<2x4x8x384xf32, #tpu.memory_space<vmem>>, vector<1x1x8x384xf32>,
    %c0_114 = arith.constant 0 : index
    %c1152_115 = arith.constant 1152 : index
    %286 = vector.load %arg7[%c0_114, %c1152_115] : memref<8x3072xf32, #tpu.memory_space<vmem>>, vector<8x384xf32>
    %287 = arith.addf %286, %239 : vector<8x384xf32>
    %288 = arith.mulf %287, %267 : vector<8x384xf32>
    %c0_116 = arith.constant 0 : index
    %c3 = arith.constant 3 : index
    %c0_117 = arith.constant 0 : index
    %c0_118 = arith.constant 0 : index
    %289 = vector.load %arg6[%c0_116, %c3, %c0_117, %c0_118] : memref<2x4x8x384xf32, #tpu.memory_space<vmem>>, vector<1x1x8x384xf32>
    %290 = vector.shape_cast %289 : vector<1x1x8x384xf32> to vector<8x384xf32>
    %291 = vector.shape_cast %288 : vector<8x384xf32> to vector<1x1x8x384xf32>
    tpu.vector_store %arg6[%c0_116, %c3, %c0_117, %c0_118], %291 {strides = array<i32>} : memref<2x4x8x384xf32, #tpu.memory_space<vmem>>, vector<1x1x8x384xf32>,
    %292 = vector.broadcast %219 : vector<8x1xf32> to vector<8x384xf32>
    %293 = arith.mulf %199, %292 : vector<8x384xf32>
    %294 = vector.broadcast %222 : vector<8x1xf32> to vector<8x384xf32>
    %295 = arith.addf %293, %294 : vector<8x384xf32>
    %cst_119 = arith.constant 0.000000e+00 : f32
    %296 = vector.broadcast %cst_119 : f32 to vector<8x384xf32>
    %297 = arith.maximumf %295, %296 : vector<8x384xf32>
    %cst_120 = arith.constant 0.000000e+00 : f32
    %298 = vector.broadcast %cst_120 : f32 to vector<8x384xf32>
    %c0_121 = arith.constant 0 : index
    %c1536_122 = arith.constant 1536 : index
    %299 = vector.load %arg7[%c0_121, %c1536_122] : memref<8x3072xf32, #tpu.memory_space<vmem>>, vector<8x384xf32>
    %300 = arith.addf %299, %227 : vector<8x384xf32>
    %301 = arith.mulf %300, %300 : vector<8x384xf32>
    %302 = arith.addf %298, %301 : vector<8x384xf32>
    %c0_123 = arith.constant 0 : index
    %c1920_124 = arith.constant 1920 : index
    %303 = vector.load %arg7[%c0_123, %c1920_124] : memref<8x3072xf32, #tpu.memory_space<vmem>>, vector<8x384xf32>
    %304 = arith.addf %303, %231 : vector<8x384xf32>
    %305 = arith.mulf %304, %304 : vector<8x384xf32>
    %306 = arith.addf %302, %305 : vector<8x384xf32>
    %c0_125 = arith.constant 0 : index
    %c2304_126 = arith.constant 2304 : index
    %307 = vector.load %arg7[%c0_125, %c2304_126] : memref<8x3072xf32, #tpu.memory_space<vmem>>, vector<8x384xf32>
    %308 = arith.addf %307, %235 : vector<8x384xf32>
    %309 = arith.mulf %308, %308 : vector<8x384xf32>
    %310 = arith.addf %306, %309 : vector<8x384xf32>
    %c0_127 = arith.constant 0 : index
    %c2688_128 = arith.constant 2688 : index
    %311 = vector.load %arg7[%c0_127, %c2688_128] : memref<8x3072xf32, #tpu.memory_space<vmem>>, vector<8x384xf32>
    %312 = arith.addf %311, %239 : vector<8x384xf32>
    %313 = arith.mulf %312, %312 : vector<8x384xf32>
    %314 = arith.addf %310, %313 : vector<8x384xf32>
    %315 = math.sqrt %314 : vector<8x384xf32>
    %cst_129 = arith.constant 9.99999993E-9 : f32
    %316 = vector.broadcast %cst_129 : f32 to vector<8x384xf32>
    %317 = arith.addf %315, %316 : vector<8x384xf32>
    %318 = tpu.reciprocal %317 {approx = true} : vector<8x384xf32> -> vector<8x384xf32>
    %319 = arith.mulf %297, %318 : vector<8x384xf32>
    %c0_130 = arith.constant 0 : index
    %c1536_131 = arith.constant 1536 : index
    %320 = vector.load %arg7[%c0_130, %c1536_131] : memref<8x3072xf32, #tpu.memory_space<vmem>>, vector<8x384xf32>
    %321 = arith.addf %320, %227 : vector<8x384xf32>
    %322 = arith.mulf %321, %319 : vector<8x384xf32>
    %c1_132 = arith.constant 1 : index
    %c0_133 = arith.constant 0 : index
    %c0_134 = arith.constant 0 : index
    %c0_135 = arith.constant 0 : index
    %323 = vector.load %arg6[%c1_132, %c0_133, %c0_134, %c0_135] : memref<2x4x8x384xf32, #tpu.memory_space<vmem>>, vector<1x1x8x384xf32>
    %324 = vector.shape_cast %323 : vector<1x1x8x384xf32> to vector<8x384xf32>
    %325 = vector.shape_cast %322 : vector<8x384xf32> to vector<1x1x8x384xf32>
    tpu.vector_store %arg6[%c1_132, %c0_133, %c0_134, %c0_135], %325 {strides = array<i32>} : memref<2x4x8x384xf32, #tpu.memory_space<vmem>>, vector<1x1x8x384xf32>,
    %c0_136 = arith.constant 0 : index
    %c1920_137 = arith.constant 1920 : index
    %326 = vector.load %arg7[%c0_136, %c1920_137] : memref<8x3072xf32, #tpu.memory_space<vmem>>, vector<8x384xf32>
    %327 = arith.addf %326, %231 : vector<8x384xf32>
    %328 = arith.mulf %327, %319 : vector<8x384xf32>
    %c1_138 = arith.constant 1 : index
    %c1_139 = arith.constant 1 : index
    %c0_140 = arith.constant 0 : index
    %c0_141 = arith.constant 0 : index
    %329 = vector.load %arg6[%c1_138, %c1_139, %c0_140, %c0_141] : memref<2x4x8x384xf32, #tpu.memory_space<vmem>>, vector<1x1x8x384xf32>
    %330 = vector.shape_cast %329 : vector<1x1x8x384xf32> to vector<8x384xf32>
    %331 = vector.shape_cast %328 : vector<8x384xf32> to vector<1x1x8x384xf32>
    tpu.vector_store %arg6[%c1_138, %c1_139, %c0_140, %c0_141], %331 {strides = array<i32>} : memref<2x4x8x384xf32, #tpu.memory_space<vmem>>, vector<1x1x8x384xf32>,
    %c0_142 = arith.constant 0 : index
    %c2304_143 = arith.constant 2304 : index
    %332 = vector.load %arg7[%c0_142, %c2304_143] : memref<8x3072xf32, #tpu.memory_space<vmem>>, vector<8x384xf32>
    %333 = arith.addf %332, %235 : vector<8x384xf32>
    %334 = arith.mulf %333, %319 : vector<8x384xf32>
    %c1_144 = arith.constant 1 : index
    %c2_145 = arith.constant 2 : index
    %c0_146 = arith.constant 0 : index
    %c0_147 = arith.constant 0 : index
    %335 = vector.load %arg6[%c1_144, %c2_145, %c0_146, %c0_147] : memref<2x4x8x384xf32, #tpu.memory_space<vmem>>, vector<1x1x8x384xf32>
    %336 = vector.shape_cast %335 : vector<1x1x8x384xf32> to vector<8x384xf32>
    %337 = vector.shape_cast %334 : vector<8x384xf32> to vector<1x1x8x384xf32>
    tpu.vector_store %arg6[%c1_144, %c2_145, %c0_146, %c0_147], %337 {strides = array<i32>} : memref<2x4x8x384xf32, #tpu.memory_space<vmem>>, vector<1x1x8x384xf32>,
    %c0_148 = arith.constant 0 : index
    %c2688_149 = arith.constant 2688 : index
    %338 = vector.load %arg7[%c0_148, %c2688_149] : memref<8x3072xf32, #tpu.memory_space<vmem>>, vector<8x384xf32>
    %339 = arith.addf %338, %239 : vector<8x384xf32>
    %340 = arith.mulf %339, %319 : vector<8x384xf32>
    %c1_150 = arith.constant 1 : index
    %c3_151 = arith.constant 3 : index
    %c0_152 = arith.constant 0 : index
    %c0_153 = arith.constant 0 : index
    %341 = vector.load %arg6[%c1_150, %c3_151, %c0_152, %c0_153] : memref<2x4x8x384xf32, #tpu.memory_space<vmem>>, vector<1x1x8x384xf32>
    %342 = vector.shape_cast %341 : vector<1x1x8x384xf32> to vector<8x384xf32>
    %343 = vector.shape_cast %340 : vector<8x384xf32> to vector<1x1x8x384xf32>
    tpu.vector_store %arg6[%c1_150, %c3_151, %c0_152, %c0_153], %343 {strides = array<i32>} : memref<2x4x8x384xf32, #tpu.memory_space<vmem>>, vector<1x1x8x384xf32>,
    return
  }
}

</mosaic_0001>

<bundles_post_ra>
// kernel: rotating_conv2d_forward.1
= control target key start
LH: loop header
LB: loop body
LE: loop exit
PB: predicated region body
PF: predicated region fallthrough
CT: control target
= control target key end

     0   :  { %v15316_v3 = vmov 0.0   ;;  %s12299_s9 = smov 127   ;;  %s12300_s24 = smov 126   ;;  %vm154_vm0 = vcmask 1039360   ;;  %vm203_vm1 = vcmask 64512   ;;  %vm1964_vm2 = vcmask 1031168   ;;  %s15299_s0 = inlined_call_operand.vmem [shape: bf16[8,3200], index: 0, kind: input, shape index: {}]   ;;  %s15300_s1 = inlined_call_operand.vmem [shape: bf16[9,8,8], index: 1, kind: input, shape index: {}]   ;;  %s15301_s5 = inlined_call_operand.vmem [shape: f32[1,384], index: 5, kind: input, shape index: {}]   ;;  %s15302_s2 = inlined_call_operand.vmem [shape: f32[4,8,1], index: 2, kind: input, shape index: {}]   ;;  %s15303_s3 = inlined_call_operand.vmem [shape: f32[8,1], index: 3, kind: input, shape index: {}]   ;;  %s15304_s4 = inlined_call_operand.vmem [shape: f32[8,1], index: 4, kind: input, shape index: {}]   ;;  %s15305_s6 = inlined_call_operand.vmem [shape: f32[2,4,8,384], index: 6, kind: output, shape index: {}]  }
   0x1   :  { %v12346_v0 = vld [vmem:[%s15299_s0 + $0x10] sm:$0xff]  ;;  %v12351_v1 = vld [vmem:[%s15299_s0] sm:$0xff]  ;;  %v12356_v2 = vld [vmem:[%s15299_s0 + $0x8] sm:$0xff]  ;;  %271 = vmatprep.mubr.f32.mxu0 %v15316_v3  ;;  %342 = vmatprep.mubr.f32.mxu1 %v15316_v3  ;;  %s12301_s25 = smov 110   ;;  %s12302_s26 = smov 109   ;;  %vm2942_vm3 = vcmask 900096  }
   0x2   :  { %v58_v4 = vunpack.c.l.bf16 %v12346_v0  ;;  %v59_v5 = vunpack.c.h.bf16 %v12346_v0  ;;  %v55_v6 = vunpack.c.h.bf16 %v12351_v1  ;;  %v56_v7 = vunpack.c.l.bf16 %v12356_v2  ;;  %v12367_v8 = vld [vmem:[%s15299_s0 + $0x18] sm:$0xff]  ;;  %v12372_v9 = vld [vmem:[%s15299_s0 + $0x28] sm:$0xff]  ;;  %v12381_v14 = vld [vmem:[%s15299_s0 + $0x20] sm:$0xff]  ;;  %s12303_s27 = smov 108   ;;  %s12304_s30 = smov 92  }
   0x3   :  { %v57_v10 = vunpack.c.h.bf16 %v12356_v2  ;;  %v54_v11 = vunpack.c.l.bf16 %v12351_v1  ;;  %v60_v12 = vunpack.c.l.bf16 %v12367_v8  ;;  %v61_v13 = vunpack.c.h.bf16 %v12367_v8  ;;  %v12418_v23 = vld [vmem:[%s15299_s0 + $0x38] sm:$0xff]  ;;  %v12423_v24 = vld [vmem:[%s15299_s0 + $0x30] sm:$0xff]  ;;  %v12448_v31 = vld [vmem:[%s15299_s0 + $0x48] sm:$0xff]  ;;  %s12305_s7 = smov 91   ;;  %s12306_s16 = smov 90  }
   0x4   :  { %v12387_v15 = vpack.i.bf16 %v59_v5, %v58_v4  ;;  %v12393_v16 = vpack.i.bf16 %v56_v7, %v55_v6  ;;  %v64_v17 = vunpack.c.l.bf16 %v12372_v9  ;;  %v65_v18 = vunpack.c.h.bf16 %v12372_v9  ;;  %v12453_v32 = vld [vmem:[%s15299_s0 + $0x40] sm:$0xff]  ;;  %v12478_v39 = vld [vmem:[%s15299_s0 + $0x58] sm:$0xff]  ;;  %v12483_v40 = vld [vmem:[%s15299_s0 + $0x50] sm:$0xff] }
   0x5   :  { %v12405_v19 = vpack.i.bf16 %v61_v13, %v60_v12  ;;  %v12411_v20 = vpack.i.bf16 %v57_v10, %v54_v11  ;;  %v62_v21 = vunpack.c.l.bf16 %v12381_v14  ;;  %v63_v22 = vunpack.c.h.bf16 %v12381_v14  ;;  %v53_v49 = vld [vmem:[%s15299_s0 + $0x60] sm:$0xf]  ;;  %v12826_v9 = vld [vmem:[%s15299_s0 + $0x8] sm:$0xff] }
   0x6   :  { %11777 = vrot.lane.b32.xlu1 %v12387_v15, %s12299_s9  ;;  %11767 = vrot.lane.b32.xlu0 %v12393_v16, %s12299_s9  ;;  %v12429_v25 = vpack.i.bf16 %v65_v18, %v64_v17  ;;  %v68_v26 = vunpack.c.l.bf16 %v12418_v23  ;;  %v69_v28 = vunpack.c.h.bf16 %v12418_v23  ;;  %v66_v29 = vunpack.c.l.bf16 %v12423_v24  ;;  %v12625_v55 = vld [vmem:[%s15300_s1] sm:$0xff]  }
   0x7   :  { %v12440_v27 = vpack.i.bf16 %v63_v22, %v62_v21  ;;  %v67_v30 = vunpack.c.h.bf16 %v12423_v24  ;;  %v15310_v33 = vunpack.c.l.bf16 %v12448_v31  ;;  %v15311_v34 = vunpack.c.h.bf16 %v12448_v31  ;;  %v12852_v24 = vld [vmem:[%s15299_s0] sm:$0xff] }
   0x8   :  { %v12465_v35 = vpack.i.bf16 %v69_v28, %v68_v26  ;;  %v15312_v37 = vunpack.c.l.bf16 %v12453_v32  ;;  %v71_v38 = vunpack.c.h.bf16 %v12453_v32  ;;  %v15306_v42 = vunpack.c.l.bf16 %v12478_v39 }
   0x9   :  { %v12471_v36 = vpack.i.bf16 %v67_v30, %v66_v29  ;;  %v12489_v41 = vpack.i.bf16 %v15311_v34, %v15310_v33  ;;  %v15307_v44 = vunpack.c.h.bf16 %v12478_v39  ;;  %v15308_v45 = vunpack.c.l.bf16 %v12483_v40 }
   0xa   :  { %11782 = vrot.lane.b32.xlu1 %v12405_v19, %s12299_s9  ;;  %11772 = vrot.lane.b32.xlu0 %v12411_v20, %s12299_s9  ;;  %v12500_v43 = vpack.i.bf16 %v71_v38, %v15312_v37  ;;  %v15309_v46 = vunpack.c.h.bf16 %v12483_v40  ;;  %v12528_v50 = vunpack.c.l.bf16 %v53_v49  ;;  %v12633_v60 = vunpack.c.h.bf16 %v12625_v55 }
   0xb   :  { %v12513_v47 = vpack.i.bf16 %v15307_v44, %v15306_v42  ;;  %v15348_v14 = vunpack.c.h.bf16 %v12448_v31  ;;  %vm3920_vm12 = vcmask 891904  }
   0xc   :  { %v12519_v48 = vpack.i.bf16 %v15309_v46, %v15308_v45  ;;  %15345 = vst [vmem:[#allocation4_spill] sm:$0xff] %v12633_v60 }
   0xe   :  { %11792 = vrot.lane.b32.xlu1 %v12429_v25, %s12299_s9  ;;  %11787 = vrot.lane.b32.xlu0 %v12440_v27, %s12299_s9 }
  0x12   :  { %11802 = vrot.lane.b32.xlu1 %v12465_v35, %s12299_s9  ;;  %11797 = vrot.lane.b32.xlu0 %v12471_v36, %s12299_s9 }
  0x16   :  { %11812 = vrot.lane.b32.xlu1 %v12489_v41, %s12299_s9  ;;  %11807 = vrot.lane.b32.xlu0 %v12500_v43, %s12299_s9 }
  0x1a   :  { %11822 = vrot.lane.b32.xlu1 %v12513_v47, %s12299_s9  ;;  %11817 = vrot.lane.b32.xlu0 %v12519_v48, %s12299_s9 }
  0x1e   :  { %11827 = vrot.lane.b32.xlu1 %v12393_v16, %s12300_s24  ;;  %152 = vrot.lane.b32.xlu0 %v12528_v50, %s12299_s9 }
  0x22   :  { %11837 = vrot.lane.b32.xlu1 %v12387_v15, %s12300_s24  ;;  %11832 = vrot.lane.b32.xlu0 %v12411_v20, %s12300_s24 }
  0x26   :  { %11847 = vrot.lane.b32.xlu1 %v12440_v27, %s12300_s24  ;;  %11842 = vrot.lane.b32.xlu0 %v12405_v19, %s12300_s24 }
  0x2a   :  { %11857 = vrot.lane.b32.xlu1 %v12471_v36, %s12300_s24  ;;  %11852 = vrot.lane.b32.xlu0 %v12429_v25, %s12300_s24 }
  0x2e   :  { %11867 = vrot.lane.b32.xlu1 %v12500_v43, %s12300_s24  ;;  %11862 = vrot.lane.b32.xlu0 %v12465_v35, %s12300_s24 }
  0x32   :  { %11877 = vrot.lane.b32.xlu1 %v12519_v48, %s12300_s24  ;;  %11872 = vrot.lane.b32.xlu0 %v12489_v41, %s12300_s24 }
  0x36   :  { %1962 = vrot.lane.b32.xlu1 %v12528_v50, %s12300_s24  ;;  %11882 = vrot.lane.b32.xlu0 %v12513_v47, %s12300_s24 }
  0x3a   :  { %11892 = vrot.lane.b32.xlu1 %v12411_v20, %s12301_s25  ;;  %11887 = vrot.lane.b32.xlu0 %v12393_v16, %s12301_s25 }
  0x3e   :  { %11902 = vrot.lane.b32.xlu1 %v12405_v19, %s12301_s25  ;;  %11897 = vrot.lane.b32.xlu0 %v12387_v15, %s12301_s25 }
  0x42   :  { %11912 = vrot.lane.b32.xlu1 %v12429_v25, %s12301_s25  ;;  %11907 = vrot.lane.b32.xlu0 %v12440_v27, %s12301_s25 }
  0x46   :  { %11922 = vrot.lane.b32.xlu1 %v12465_v35, %s12301_s25  ;;  %11917 = vrot.lane.b32.xlu0 %v12471_v36, %s12301_s25 }
  0x4a   :  { %11932 = vrot.lane.b32.xlu1 %v12489_v41, %s12301_s25  ;;  %11927 = vrot.lane.b32.xlu0 %v12500_v43, %s12301_s25 }
  0x4e   :  { %11942 = vrot.lane.b32.xlu1 %v12513_v47, %s12301_s25  ;;  %11937 = vrot.lane.b32.xlu0 %v12519_v48, %s12301_s25 }
  0x52   :  { %11947 = vrot.lane.b32.xlu1 %v12393_v16, %s12302_s26  ;;  %2940 = vrot.lane.b32.xlu0 %v12528_v50, %s12301_s25 }
  0x56   :  { %11957 = vrot.lane.b32.xlu1 %v12387_v15, %s12302_s26  ;;  %11952 = vrot.lane.b32.xlu0 %v12411_v20, %s12302_s26 }
  0x5a   :  { %11967 = vrot.lane.b32.xlu1 %v12440_v27, %s12302_s26  ;;  %11962 = vrot.lane.b32.xlu0 %v12405_v19, %s12302_s26 }
  0x5e   :  { %11977 = vrot.lane.b32.xlu1 %v12471_v36, %s12302_s26  ;;  %11972 = vrot.lane.b32.xlu0 %v12429_v25, %s12302_s26 }
  0x62   :  { %11987 = vrot.lane.b32.xlu1 %v12500_v43, %s12302_s26  ;;  %11982 = vrot.lane.b32.xlu0 %v12465_v35, %s12302_s26 }
  0x66   :  { %11997 = vrot.lane.b32.xlu1 %v12519_v48, %s12302_s26  ;;  %11992 = vrot.lane.b32.xlu0 %v12489_v41, %s12302_s26 }
  0x6a   :  { %3918 = vrot.lane.b32.xlu1 %v12528_v50, %s12302_s26  ;;  %12002 = vrot.lane.b32.xlu0 %v12513_v47, %s12302_s26 }
  0x6e   :  { %12012 = vrot.lane.b32.xlu1 %v12411_v20, %s12303_s27  ;;  %12007 = vrot.lane.b32.xlu0 %v12393_v16, %s12303_s27 }
  0x72   :  { %12022 = vrot.lane.b32.xlu1 %v12405_v19, %s12303_s27  ;;  %12017 = vrot.lane.b32.xlu0 %v12387_v15, %s12303_s27 }
  0x76   :  { %12032 = vrot.lane.b32.xlu1 %v12429_v25, %s12303_s27  ;;  %12027 = vrot.lane.b32.xlu0 %v12440_v27, %s12303_s27 }
  0x78   :  { %v11778_v51 = vpop.permute.xlu1 %11777  ;;  %v11768_v52 = vpop.permute.xlu0 %11767 }
  0x79   :  { %v11770_v53 = vunpack.i.h.bf16 %v11768_v52  ;;  %v11769_v54 = vunpack.i.l.bf16 %v11768_v52  ;;  %v11780_v57 = vunpack.i.h.bf16 %v11778_v51  ;;  %v11779_v61 = vunpack.i.l.bf16 %v11778_v51 }
  0x7a   :  { %12042 = vrot.lane.b32.xlu1 %v12465_v35, %s12303_s27  ;;  %12037 = vrot.lane.b32.xlu0 %v12471_v36, %s12303_s27 }
  0x7b   :  { %v156_v56 = vsel %vm154_vm0, %v11769_v54, %v11770_v53 }
  0x7c   :  { %v11783_v58 = vpop.permute.xlu1 %11782  ;;  %237 = vmatprep.subr.mxu0 %v156_v56  ;;  %v11773_v59 = vpop.permute.xlu0 %11772 }
  0x7d   :  { %v11784_v62 = vunpack.i.l.bf16 %v11783_v58  ;;  %v11775_v63 = vunpack.i.h.bf16 %v11773_v59  ;;  %v11774_v49 = vunpack.i.l.bf16 %v11773_v59  ;;  %v11785_v45 = vunpack.i.h.bf16 %v11783_v58 }
  0x7e   :  { %12052 = vrot.lane.b32.xlu1 %v12489_v41, %s12303_s27  ;;  %12047 = vrot.lane.b32.xlu0 %v12500_v43, %s12303_s27 }
  0x7f   :  { %v155_v52 = vsel %vm154_vm0, %v11774_v49, %v11769_v54  ;;  %v158_v42 = vsel %vm154_vm0, %v11775_v63, %v11779_v61  ;;  %v157_v56 = vsel %vm154_vm0, %v11770_v53, %v11775_v63  ;;  %v160_v44 = vsel %vm154_vm0, %v11780_v57, %v11784_v62 }
  0x80   :  { %v11793_v51 = vpop.permute.xlu1 %11792  ;;  %v11788_v46 = vpop.permute.xlu0 %11787  ;;  %238 = vmatpush1.msra.mxu0 %v155_v52  ;;  %308 = vmatprep.subr.mxu1 %v158_v42  ;;  %v159_v53 = vsel %vm154_vm0, %v11779_v61, %v11780_v57 }
  0x81   :  { %v11794_v59 = vunpack.i.l.bf16 %v11793_v51  ;;  %v11790_v33 = vunpack.i.h.bf16 %v11788_v46  ;;  %v11789_v34 = vunpack.i.l.bf16 %v11788_v46  ;;  %11581 = vmatmul.mubr.msk.f32.vlgmr.msra.gmra.mxu0 %vm203_vm1, %v12633_v60  ;;  %309 = vmatpush1.msra.mxu1 %v157_v56  ;;  %v11795_v49 = vunpack.i.h.bf16 %v11793_v51 }
  0x82   :  { %379 = vmatprep.subr.mxu0 %v160_v44  ;;  %12062 = vrot.lane.b32.xlu1 %v12513_v47, %s12303_s27  ;;  %v161_v44 = vsel %vm154_vm0, %v11784_v62, %v11785_v45 }
  0x83   :  { %12057 = vrot.lane.b32.xlu0 %v12519_v48, %s12303_s27  ;;  %11582 = vmatmul.mubr.msk.f32.vlgmr.msra.gmra.mxu1 %vm203_vm1, %v12633_v60  ;;  %v162_v42 = vsel %vm154_vm0, %v11785_v45, %v11789_v34  ;;  %v164_v46 = vsel %vm154_vm0, %v11790_v33, %v11794_v59  ;;  %v163_v63 = vsel %vm154_vm0, %v11789_v34, %v11790_v33 }
  0x84   :  { %380 = vmatpush1.msra.mxu0 %v159_v53  ;;  %v11803_v54 = vpop.permute.xlu1 %11802  ;;  %v11798_v58 = vpop.permute.xlu0 %11797  ;;  %413 = vmatprep.mubr.f32.mxu0 %v15316_v3 }
  0x85   :  { %v11804_v52 = vunpack.i.l.bf16 %v11803_v54  ;;  %v11800_v56 = vunpack.i.h.bf16 %v11798_v58  ;;  %v11799_v37 = vunpack.i.l.bf16 %v11798_v58  ;;  %450 = vmatprep.subr.mxu1 %v162_v42  ;;  %521 = vmatprep.subr.mxu0 %v164_v46  ;;  %v11805_v42 = vunpack.i.h.bf16 %v11803_v54 }
  0x86   :  { %11583 = vmatmul.mubr.msk.f32.vlgmr.msra.gmra.mxu0 %vm203_vm1, %v12633_v60  ;;  %451 = vmatpush1.msra.mxu1 %v161_v44  ;;  %v165_v46 = vsel %vm154_vm0, %v11794_v59, %v11795_v49 }
  0x87   :  { %484 = vmatprep.mubr.f32.mxu1 %v15316_v3  ;;  %522 = vmatpush1.msra.mxu0 %v163_v63  ;;  %v166_v57 = vsel %vm154_vm0, %v11795_v49, %v11799_v37  ;;  %v168_v61 = vsel %vm154_vm0, %v11800_v56, %v11804_v52  ;;  %v167_v53 = vsel %vm154_vm0, %v11799_v37, %v11800_v56 }
  0x88   :  { %12067 = vrot.lane.b32.xlu1 %v12393_v16, %s12304_s30  ;;  %4896 = vrot.lane.b32.xlu0 %v12528_v50, %s12303_s27  ;;  %v11813_v33 = vpop.permute.xlu1 %11812  ;;  %v11808_v34 = vpop.permute.xlu0 %11807 }
  0x89   :  { %11584 = vmatmul.mubr.msk.f32.vlgmr.msra.gmra.mxu1 %vm203_vm1, %v12633_v60  ;;  %v11814_v45 = vunpack.i.l.bf16 %v11813_v33  ;;  %v11810_v62 = vunpack.i.h.bf16 %v11808_v34  ;;  %v11809_v51 = vunpack.i.l.bf16 %v11808_v34  ;;  %555 = vmatprep.mubr.f32.mxu0 %v15316_v3  ;;  %v11815_v56 = vunpack.i.h.bf16 %v11813_v33 }
  0x8a   :  { %592 = vmatprep.subr.mxu1 %v166_v57  ;;  %663 = vmatprep.subr.mxu0 %v168_v61  ;;  %v169_v57 = vsel %vm154_vm0, %v11804_v52, %v11805_v42 }
  0x8b   :  { %11585 = vmatmul.mubr.msk.f32.vlgmr.msra.gmra.mxu0 %vm203_vm1, %v12633_v60  ;;  %593 = vmatpush1.msra.mxu1 %v165_v46  ;;  %v170_v63 = vsel %vm154_vm0, %v11805_v42, %v11809_v51  ;;  %v172_v34 = vsel %vm154_vm0, %v11810_v62, %v11814_v45  ;;  %v171_v49 = vsel %vm154_vm0, %v11809_v51, %v11810_v62 }
  0x8c   :  { %626 = vmatprep.mubr.f32.mxu1 %v15316_v3  ;;  %664 = vmatpush1.msra.mxu0 %v167_v53  ;;  %v11823_v58 = vpop.permute.xlu1 %11822  ;;  %v11818_v44 = vpop.permute.xlu0 %11817  ;;  %v173_v62 = vsel %vm154_vm0, %v11814_v45, %v11815_v56 }
  0x8d   :  { %12077 = vrot.lane.b32.xlu1 %v12387_v15, %s12304_s30  ;;  %12072 = vrot.lane.b32.xlu0 %v12411_v20, %s12304_s30  ;;  %v11824_v37 = vunpack.i.l.bf16 %v11823_v58  ;;  %v11820_v59 = vunpack.i.h.bf16 %v11818_v44  ;;  %v11819_v54 = vunpack.i.l.bf16 %v11818_v44  ;;  %v11825_v52 = vunpack.i.h.bf16 %v11823_v58 }
  0x8e   :  { %11586 = vmatmul.mubr.msk.f32.vlgmr.msra.gmra.mxu1 %vm203_vm1, %v12633_v60  ;;  %697 = vmatprep.mubr.f32.mxu0 %v15316_v3 }
  0x8f   :  { %734 = vmatprep.subr.mxu1 %v170_v63  ;;  %805 = vmatprep.subr.mxu0 %v172_v34  ;;  %v174_v46 = vsel %vm154_vm0, %v11815_v56, %v11819_v54  ;;  %v176_v44 = vsel %vm154_vm0, %v11820_v59, %v11824_v37  ;;  %v175_v33 = vsel %vm154_vm0, %v11819_v54, %v11820_v59  ;;  %v12725_v59 = vunpack.c.l.bf16 %v12625_v55 }
  0x90   :  { %11587 = vmatmul.mubr.msk.f32.vlgmr.msra.gmra.mxu0 %vm203_vm1, %v12633_v60  ;;  %735 = vmatpush1.msra.mxu1 %v169_v57  ;;  %v12687_v61 = vpop.permute.xlu1 %11827  ;;  %v153_v53 = vpop.permute.xlu0 %152  ;;  %v177_v45 = vsel %vm154_vm0, %v11824_v37, %v11825_v52 }
  0x91   :  { %768 = vmatprep.mubr.f32.mxu1 %v15316_v3  ;;  %806 = vmatpush1.msra.mxu0 %v171_v49  ;;  %v178_v58 = vsel %vm154_vm0, %v11825_v52, %v153_v53  ;;  %15346 = vst [vmem:[#allocation5_spill] sm:$0xff] %v12725_v59  ;;  %v15352_v49 = vunpack.c.h.bf16 %v12478_v39 }
  0x92   :  { %12087 = vrot.lane.b32.xlu1 %v12440_v27, %s12304_s30  ;;  %12082 = vrot.lane.b32.xlu0 %v12405_v19, %s12304_s30 }
  0x93   :  { %11588 = vmatmul.mubr.msk.f32.vlgmr.msra.gmra.mxu1 %vm203_vm1, %v12633_v60  ;;  %839 = vmatprep.mubr.f32.mxu0 %v15316_v3 }
  0x94   :  { %876 = vmatprep.subr.mxu1 %v174_v46  ;;  %947 = vmatprep.subr.mxu0 %v176_v44  ;;  %v12701_v51 = vpop.permute.xlu1 %11837  ;;  %v12703_v42 = vpop.permute.xlu0 %11832  ;;  %v15353_v44 = vunpack.c.l.bf16 %v12478_v39 }
  0x95   :  { %11589 = vmatmul.mubr.msk.f32.vlgmr.msra.gmra.mxu0 %vm203_vm1, %v12633_v60  ;;  %877 = vmatpush1.msra.mxu1 %v173_v62  ;;  %v11834_v55 = vunpack.i.l.bf16 %v12703_v42 }
  0x96   :  { %910 = vmatprep.mubr.f32.mxu1 %v15316_v3  ;;  %948 = vmatpush1.msra.mxu0 %v175_v33  ;;  %v12892_v33 = vld [vmem:[%s15300_s1 + $0x8] sm:$0xff]  }
  0x97   :  { %12097 = vrot.lane.b32.xlu1 %v12471_v36, %s12304_s30  ;;  %12092 = vrot.lane.b32.xlu0 %v12429_v25, %s12304_s30 }
  0x98   :  { %11590 = vmatmul.mubr.msk.f32.vlgmr.msra.gmra.mxu1 %vm203_vm1, %v12633_v60  ;;  %1018 = vmatprep.subr.mxu1 %v178_v58  ;;  %v12716_v63 = vpop.permute.xlu1 %11847  ;;  %v12718_v34 = vpop.permute.xlu0 %11842 }
  0x99   :  { %1019 = vmatpush1.msra.mxu1 %v177_v45  ;;  %981 = vmatprep.mubr.f32.mxu0 %v15316_v3  ;;  %v11844_v46 = vunpack.i.l.bf16 %v12718_v34  ;;  %v11845_v58 = vunpack.i.h.bf16 %v12718_v34 }
  0x9a   :  { %11591 = vmatmul.mubr.msk.f32.vlgmr.msra.gmra.mxu0 %vm203_vm1, %v12633_v60  ;;  %1052 = vmatprep.mubr.f32.mxu1 %v15316_v3 }
  0x9b   :  { %12107 = vrot.lane.b32.xlu1 %v12500_v43, %s12304_s30  ;;  %12102 = vrot.lane.b32.xlu0 %v12465_v35, %s12304_s30 }
  0x9c   :  { %11592 = vmatmul.mubr.msk.f32.vlgmr.msra.gmra.mxu1 %vm203_vm1, %v12633_v60  ;;  %1092 = vmatprep.subr.mxu0 %v55_v6  ;;  %v12735_v37 = vpop.permute.xlu1 %11857  ;;  %v12737_v54 = vpop.permute.xlu0 %11852  ;;  %v15357_v60 = vmov 0.0  }
  0x9d   :  { %1093 = vmatpush1.msra.mxu0 %v54_v11  ;;  %1126 = vmatprep.mubr.f32.mxu0 %v15316_v3 }
  0x9e   :  { %1163 = vmatprep.subr.mxu1 %v57_v10  ;;  %11593 = vmatmul.mubr.msk.f32.vlgmr.msra.gmra.mxu0 %vm203_vm1, %v12725_v59  ;;  %v8786_v10 = vld [vmem:[%s15299_s0 + $0x10] sm:$0xff] }
  0x9f   :  { %1164 = vmatpush1.msra.mxu1 %v56_v7  ;;  %1197 = vmatprep.mubr.f32.mxu1 %v15316_v3  ;;  %v8801_v23 = vunpack.c.h.bf16 %v8786_v10  ;;  %v8800_v53 = vunpack.c.l.bf16 %v8786_v10  ;;  %v12905_v10 = vld [vmem:[%s15299_s0 + $0x18] sm:$0xff] }
  0xa0   :  { %12117 = vrot.lane.b32.xlu1 %v12519_v48, %s12304_s30  ;;  %12112 = vrot.lane.b32.xlu0 %v12489_v41, %s12304_s30  ;;  %v12753_v1 = vpop.permute.xlu1 %11867  ;;  %v12755_v6 = vpop.permute.xlu0 %11862 }
  0xa1   :  { %11594 = vmatmul.mubr.msk.f32.vlgmr.msra.gmra.mxu1 %vm203_vm1, %v12725_v59  ;;  %1234 = vmatprep.subr.mxu0 %v59_v5 }
  0xa2   :  { %1235 = vmatpush1.msra.mxu0 %v58_v4  ;;  %1268 = vmatprep.mubr.f32.mxu0 %v15316_v3 }
  0xa3   :  { %1305 = vmatprep.subr.mxu1 %v61_v13  ;;  %11595 = vmatmul.mubr.msk.f32.vlgmr.msra.gmra.mxu0 %vm203_vm1, %v12725_v59  ;;  %v15347_v13 = vunpack.c.l.bf16 %v12453_v32 }
  0xa4   :  { %1306 = vmatpush1.msra.mxu1 %v60_v12  ;;  %1339 = vmatprep.mubr.f32.mxu1 %v15316_v3  ;;  %v12771_v2 = vpop.permute.xlu1 %11877  ;;  %v12773_v7 = vpop.permute.xlu0 %11872 }
  0xa5   :  { %5874 = vrot.lane.b32.xlu1 %v12528_v50, %s12304_s30  ;;  %12122 = vrot.lane.b32.xlu0 %v12513_v47, %s12304_s30 }
  0xa6   :  { %11596 = vmatmul.mubr.msk.f32.vlgmr.msra.gmra.mxu1 %vm203_vm1, %v12725_v59  ;;  %1376 = vmatprep.subr.mxu0 %v63_v22  ;;  %v8798_v22 = vunpack.c.l.bf16 %v12826_v9 }
  0xa7   :  { %1377 = vmatpush1.msra.mxu0 %v62_v21  ;;  %1410 = vmatprep.mubr.f32.mxu0 %v15316_v3  ;;  %v15349_v21 = vunpack.c.l.bf16 %v12448_v31 }
  0xa8   :  { %1447 = vmatprep.subr.mxu1 %v65_v18  ;;  %11597 = vmatmul.mubr.msk.f32.vlgmr.msra.gmra.mxu0 %vm203_vm1, %v12725_v59  ;;  %v12790_v0 = vpop.permute.xlu1 %1962  ;;  %v12792_v4 = vpop.permute.xlu0 %11882  ;;  %v11829_v18 = vunpack.i.l.bf16 %v12687_v61  ;;  %v8822_v57 = vmul.f32 %v8798_v22, %v8798_v22 }
  0xa9   :  { %1448 = vmatpush1.msra.mxu1 %v64_v17  ;;  %1481 = vmatprep.mubr.f32.mxu1 %v15316_v3  ;;  %v11830_v17 = vunpack.i.h.bf16 %v12687_v61  ;;  %v8828_v61 = vmul.f32 %v8801_v23, %v8801_v23 }
  0xaa   :  { %12132 = vrot.lane.b32.xlu1 %v12411_v20, %s12305_s7  ;;  %12127 = vrot.lane.b32.xlu0 %v12393_v16, %s12305_s7  ;;  %v1965_v34 = vsel %vm1964_vm2, %v11834_v55, %v11829_v18 }
  0xab   :  { %11598 = vmatmul.mubr.msk.f32.vlgmr.msra.gmra.mxu1 %vm203_vm1, %v12725_v59  ;;  %1518 = vmatprep.subr.mxu0 %v67_v30  ;;  %v15351_v30 = vunpack.c.l.bf16 %v12483_v40  ;;  %v1966_v56 = vsel %vm1964_vm2, %v11829_v18, %v11830_v17  ;;  %v8831_v22 = vadd.f32 %v8828_v61, %v8822_v57  ;;  %v12930_v18 = vld [vmem:[%s15299_s0 + $0x38] sm:$0xff]  ;;  %v11854_v57 = vunpack.i.l.bf16 %v12737_v54 }
  0xac   :  { %1519 = vmatpush1.msra.mxu0 %v66_v29  ;;  %1552 = vmatprep.mubr.f32.mxu0 %v15316_v3  ;;  %v12808_v5 = vpop.permute.xlu1 %11892  ;;  %v12810_v8 = vpop.permute.xlu0 %11887  ;;  %v15350_v29 = vunpack.c.h.bf16 %v12483_v40  ;;  %v8797_v40 = vunpack.c.h.bf16 %v12852_v24 }
  0xad   :  { %1589 = vmatprep.subr.mxu1 %v69_v28  ;;  %11599 = vmatmul.mubr.msk.f32.vlgmr.msra.gmra.mxu0 %vm203_vm1, %v12725_v59  ;;  %v11835_v28 = vunpack.i.h.bf16 %v12703_v42  ;;  %v15313_v42 = vunpack.i.l.bf16 %v12716_v63 }
  0xae   :  { %1590 = vmatpush1.msra.mxu1 %v68_v26  ;;  %1623 = vmatprep.mubr.f32.mxu1 %v15316_v3  ;;  %v11839_v26 = vunpack.i.l.bf16 %v12701_v51  ;;  %v8821_v23 = vmul.f32 %v8797_v40, %v8797_v40 }
  0xaf   :  { %12142 = vrot.lane.b32.xlu1 %v12405_v19, %s12305_s7  ;;  %12137 = vrot.lane.b32.xlu0 %v12387_v15, %s12305_s7  ;;  %v1967_v55 = vsel %vm1964_vm2, %v11830_v17, %v11835_v28  ;;  %v1972_v61 = vsel %vm1964_vm2, %v11845_v58, %v15313_v42 }
  0xb0   :  { %11600 = vmatmul.mubr.msk.f32.vlgmr.msra.gmra.mxu1 %vm203_vm1, %v12725_v59  ;;  %1660 = vmatprep.subr.mxu0 %v71_v38  ;;  %v12835_v11 = vpop.permute.xlu1 %11902  ;;  %v12837_v12 = vpop.permute.xlu0 %11897  ;;  %v12870_v38 = vld [vmem:[%s15299_s0 + $0x20] sm:$0xff]  ;;  %v1968_v52 = vsel %vm1964_vm2, %v11835_v28, %v11839_v26  ;;  %v11855_v28 = vunpack.i.h.bf16 %v12737_v54 }
  0xb1   :  { %1661 = vmatpush1.msra.mxu0 %v15347_v13  ;;  %1731 = vmatprep.subr.mxu1 %v15348_v14  ;;  %v8804_v62 = vunpack.c.l.bf16 %v12870_v38  ;;  %v11840_v13 = vunpack.i.h.bf16 %v12701_v51  ;;  %v12915_v14 = vld [vmem:[%s15299_s0 + $0x28] sm:$0xff] }
  0xb2   :  { %1694 = vmatprep.mubr.f32.mxu0 %v15316_v3  ;;  %1732 = vmatpush1.msra.mxu1 %v15349_v21  ;;  %v12920_v21 = vunpack.c.l.bf16 %v12892_v33  ;;  %v8806_v42 = vunpack.c.l.bf16 %v12915_v14 }
  0xb3   :  { %1802 = vmatprep.subr.mxu0 %v15350_v29  ;;  %11601 = vmatmul.mubr.msk.f32.vlgmr.msra.gmra.mxu0 %vm203_vm1, %v12725_v59  ;;  %v8827_v29 = vmul.f32 %v8800_v53, %v8800_v53  ;;  %v8834_v40 = vmul.f32 %v8804_v62, %v8804_v62  ;;  %v12954_v62 = vld [vmem:[%s15299_s0 + $0x48] sm:$0xff]  ;;  %v1969_v54 = vsel %vm1964_vm2, %v11839_v26, %v11840_v13 }
  0xb4   :  { %1765 = vmatprep.mubr.f32.mxu1 %v15316_v3  ;;  %1803 = vmatpush1.msra.mxu0 %v15351_v30  ;;  %v12863_v31 = vpop.permute.xlu1 %11912  ;;  %v12865_v32 = vpop.permute.xlu0 %11907  ;;  %v12925_v30 = vld [vmem:[%s15299_s0 + $0x30] sm:$0xff] }
  0xb5   :  { %1873 = vmatprep.subr.mxu1 %v15352_v49  ;;  %12152 = vrot.lane.b32.xlu1 %v12429_v25, %s12305_s7  ;;  %v1970_v49 = vsel %vm1964_vm2, %v11840_v13, %v11844_v46  ;;  %v8830_v17 = vadd.f32 %v8827_v29, %v8821_v23  ;;  %v15356_v23 = vunpack.i.l.bf16 %v12735_v37 }
  0xb6   :  { %12147 = vrot.lane.b32.xlu0 %v12440_v27, %s12305_s7  ;;  %11602 = vmatmul.mubr.msk.f32.vlgmr.msra.gmra.mxu1 %vm203_vm1, %v12725_v59 }
  0xb7   :  { %1874 = vmatpush1.msra.mxu1 %v15353_v44  ;;  %2046 = vmatprep.subr.mxu0 %v1966_v56  ;;  %v8803_v56 = vunpack.c.h.bf16 %v12905_v10  ;;  %v1976_v29 = vsel %vm1964_vm2, %v11855_v28, %v15356_v23  ;;  %v11860_v23 = vunpack.i.h.bf16 %v12735_v37 }
  0xb8   :  { %2117 = vmatprep.subr.mxu1 %v1968_v52  ;;  %1836 = vmatprep.mubr.f32.mxu0 %v15316_v3  ;;  %v12898_v39 = vpop.permute.xlu1 %11922  ;;  %v12900_v45 = vpop.permute.xlu0 %11917  ;;  %v8807_v52 = vunpack.c.h.bf16 %v12915_v14  ;;  %v8839_v14 = vmul.f32 %v8806_v42, %v8806_v42 }
  0xb9   :  { %11603 = vmatmul.mubr.msk.f32.vlgmr.msra.gmra.mxu0 %vm203_vm1, %v12725_v59  ;;  %1907 = vmatprep.mubr.f32.mxu1 %v15316_v3 }
  0xba   :  { %2047 = vmatpush1.msra.mxu0 %v1965_v34  ;;  %12162 = vrot.lane.b32.xlu1 %v12465_v35, %s12305_s7  ;;  %v8808_v34 = vunpack.c.l.bf16 %v12925_v30 }
  0xbb   :  { %12157 = vrot.lane.b32.xlu0 %v12471_v36, %s12305_s7  ;;  %11604 = vmatmul.mubr.msk.f32.vlgmr.msra.gmra.mxu1 %vm203_vm1, %v12725_v59  ;;  %v8833_v59 = vmul.f32 %v8803_v56, %v8803_v56 }
  0xbc   :  { %2118 = vmatpush1.msra.mxu1 %v1967_v55  ;;  %2188 = vmatprep.subr.mxu0 %v1970_v49  ;;  %v12943_v53 = vpop.permute.xlu1 %11932  ;;  %v12945_v44 = vpop.permute.xlu0 %11927  ;;  %v8811_v55 = vunpack.c.h.bf16 %v12930_v18  ;;  %v11850_v49 = vunpack.i.h.bf16 %v12716_v63 }
  0xbd   :  { %2259 = vmatprep.subr.mxu1 %v1972_v61  ;;  %2080 = vmatprep.mubr.f32.mxu0 %v15316_v3  ;;  %v8837_v61 = vadd.f32 %v8834_v40, %v8831_v22  ;;  %v8814_v22 = vunpack.c.l.bf16 %v12954_v62  ;;  %v8836_v56 = vadd.f32 %v8833_v59, %v8830_v17  ;;  %v1975_v59 = vsel %vm1964_vm2, %v11854_v57, %v11855_v28 }
  0xbe   :  { %11605 = vmatmul.mubr.msk.f32.vlgmr.msra.gmra.mxu0 %vm203_vm1, %v12920_v21  ;;  %2151 = vmatprep.mubr.f32.mxu1 %v15316_v3  ;;  %v1971_v3 = vsel %vm1964_vm2, %v11844_v46, %v11845_v58  ;;  %v1974_v51 = vsel %vm1964_vm2, %v11850_v49, %v11854_v57  ;;  %v12986_v46 = vld [vmem:[%s15299_s0 + $0x50] sm:$0xff]  ;;  %v8868_v58 = vmul.f32 %v8808_v34, %v8808_v34  ;;  %v15358_v34 = vunpack.i.l.bf16 %v12716_v63  ;;  %v8792_v63 = vld [vmem:[%s15299_s0 + $0x40] sm:$0xff] }
  0xbf   :  { %2189 = vmatpush1.msra.mxu0 %v1969_v54  ;;  %12172 = vrot.lane.b32.xlu1 %v12489_v41, %s12305_s7  ;;  %v8840_v54 = vmul.f32 %v8807_v52, %v8807_v52  ;;  %v8874_v40 = vmul.f32 %v8811_v55, %v8811_v55  ;;  %v11865_v52 = vunpack.i.h.bf16 %v12755_v6  ;;  %v15361_v17 = vunpack.i.l.bf16 %v12755_v6 }
  0xc0   :  { %12167 = vrot.lane.b32.xlu0 %v12500_v43, %s12305_s7  ;;  %11606 = vmatmul.mubr.msk.f32.vlgmr.msra.gmra.mxu1 %vm203_vm1, %v12920_v21  ;;  %v12974_v26 = vpop.permute.xlu1 %11942  ;;  %v12976_v13 = vpop.permute.xlu0 %11937  ;;  %v1973_v55 = vsel %vm1964_vm2, %v15358_v34, %v11850_v49  ;;  %v11875_v57 = vunpack.i.h.bf16 %v12773_v7  ;;  %v8810_v28 = vunpack.c.l.bf16 %v12930_v18 }
  0xc1   :  { %15354 = vst [vmem:[#allocation6_spill] sm:$0xff] %v12974_v26  ;;  %15355 = vst [vmem:[#allocation7_spill] sm:$0xff] %v12976_v13  ;;  %2260 = vmatpush1.msra.mxu1 %v1971_v3  ;;  %2330 = vmatprep.subr.mxu0 %v1974_v51  ;;  %v8796_v3 = vunpack.c.l.bf16 %v12852_v24  ;;  %v8799_v51 = vunpack.c.h.bf16 %v12826_v9  ;;  %v13006_v9 = vadd.f32 %v8840_v54, %v8837_v61  ;;  %v8817_v26 = vunpack.c.h.bf16 %v12986_v46 }
  0xc2   :  { %2401 = vmatprep.subr.mxu1 %v1976_v29  ;;  %2222 = vmatprep.mubr.f32.mxu0 %v15357_v60  ;;  %v8880_v13 = vmul.f32 %v8814_v22, %v8814_v22  ;;  %v1978_v49 = vsel %vm1964_vm2, %v11860_v23, %v15361_v17  ;;  %v8877_v42 = vadd.f32 %v8874_v40, %v8868_v58  ;;  %v8802_v61 = vunpack.c.l.bf16 %v12905_v10 }
  0xc3   :  { %11607 = vmatmul.mubr.msk.f32.vlgmr.msra.gmra.mxu0 %vm203_vm1, %v12920_v21  ;;  %2293 = vmatprep.mubr.f32.mxu1 %v15357_v60  ;;  %v11874_v54 = vunpack.i.l.bf16 %v12773_v7  ;;  %v15362_v22 = vunpack.i.l.bf16 %v12753_v1  ;;  %v8813_v10 = vunpack.c.h.bf16 %v8792_v63  ;;  %v11870_v58 = vunpack.i.h.bf16 %v12753_v1 }
  0xc4   :  { %2331 = vmatpush1.msra.mxu0 %v1973_v55  ;;  %12182 = vrot.lane.b32.xlu1 %v12513_v47, %s12305_s7  ;;  %v13002_v29 = vpop.permute.xlu1 %11947  ;;  %v13004_v24 = vpop.permute.xlu0 %2940  ;;  %v8820_v55 = vmul.f32 %v8796_v3, %v8796_v3  ;;  %v15363_v40 = vunpack.i.l.bf16 %v12735_v37  ;;  %v8886_v17 = vmul.f32 %v8817_v26, %v8817_v26  ;;  %v8883_v18 = vadd.f32 %v8880_v13, %v8877_v42 }
  0xc5   :  { %15359 = vst [vmem:[#allocation8_spill] sm:$0xff] %v13002_v29  ;;  %15360 = vst [vmem:[#allocation9_spill] sm:$0xff] %v13004_v24  ;;  %12177 = vrot.lane.b32.xlu0 %v12519_v48, %s12305_s7  ;;  %11608 = vmatmul.mubr.msk.f32.vlgmr.msra.gmra.mxu1 %vm203_vm1, %v12920_v21  ;;  %v1980_v34 = vsel %vm1964_vm2, %v11865_v52, %v15362_v22  ;;  %v8826_v24 = vmul.f32 %v8799_v51, %v8799_v51  ;;  %v11879_v29 = vunpack.i.l.bf16 %v12771_v2 }
  0xc6   :  { %2402 = vmatpush1.msra.mxu1 %v1975_v59  ;;  %2472 = vmatprep.subr.mxu0 %v1978_v49  ;;  %v1977_v3 = vsel %vm1964_vm2, %v15363_v40, %v11860_v23  ;;  %v8805_v49 = vunpack.c.h.bf16 %v12870_v38  ;;  %v8832_v22 = vmul.f32 %v8802_v61, %v8802_v61  ;;  %v8812_v37 = vunpack.c.l.bf16 %v8792_v63 }
  0xc7   :  { %2543 = vmatprep.subr.mxu1 %v1980_v34  ;;  %2364 = vmatprep.mubr.f32.mxu0 %v15357_v60  ;;  %v8809_v34 = vunpack.c.h.bf16 %v12925_v30  ;;  %v15364_v26 = vunpack.i.l.bf16 %v12755_v6  ;;  %v8829_v23 = vadd.f32 %v8826_v24, %v8820_v55  ;;  %v8816_v13 = vunpack.c.l.bf16 %v12986_v46  ;;  %v8795_v6 = vld [vmem:[%s15299_s0 + $0x58] sm:$0xff] }
  0xc8   :  { %11609 = vmatmul.mubr.msk.f32.vlgmr.msra.gmra.mxu0 %vm203_vm1, %v12920_v21  ;;  %2435 = vmatprep.mubr.f32.mxu1 %v15357_v60  ;;  %v13036_v51 = vpop.permute.xlu1 %11957  ;;  %v13038_v59 = vpop.permute.xlu0 %11952  ;;  %v11884_v30 = vunpack.i.l.bf16 %v12792_v4  ;;  %v1984_v63 = vsel %vm1964_vm2, %v11875_v57, %v11879_v29  ;;  %v8876_v42 = vmul.f32 %v8813_v10, %v8813_v10  ;;  %v11885_v61 = vunpack.i.h.bf16 %v12792_v4 }
  0xc9   :  { %2473 = vmatpush1.msra.mxu0 %v1977_v3  ;;  %12187 = vrot.lane.b32.xlu1 %v12393_v16, %s12306_s16  ;;  %v1979_v38 = vsel %vm1964_vm2, %v15364_v26, %v11865_v52  ;;  %v1982_v16 = vsel %vm1964_vm2, %v11870_v58, %v11874_v54  ;;  %v8870_v52 = vmul.f32 %v8810_v28, %v8810_v28  ;;  %v8815_v3 = vunpack.c.h.bf16 %v12954_v62 }
  0xca   :  { %6852 = vrot.lane.b32.xlu0 %v12528_v50, %s12305_s7  ;;  %11610 = vmatmul.mubr.msk.f32.vlgmr.msra.gmra.mxu1 %vm203_vm1, %v12920_v21  ;;  %v13068_v55 = vadd.f32 %v8839_v14, %v8836_v56  ;;  %v8838_v40 = vmul.f32 %v8805_v49, %v8805_v49  ;;  %v11880_v26 = vunpack.i.h.bf16 %v12771_v2  ;;  %v15365_v4 = vunpack.i.l.bf16 %v12753_v1 }
  0xcb   :  { %2544 = vmatpush1.msra.mxu1 %v1979_v38  ;;  %2614 = vmatprep.subr.mxu0 %v1982_v16  ;;  %v8869_v10 = vmul.f32 %v8809_v34, %v8809_v34  ;;  %v8875_v38 = vmul.f32 %v8812_v37, %v8812_v37  ;;  %v13080_v14 = vadd.f32 %v8886_v17, %v8883_v18  ;;  %v8819_v56 = vunpack.c.h.bf16 %v8795_v6 }
  0xcc   :  { %2685 = vmatprep.subr.mxu1 %v1984_v63  ;;  %2506 = vmatprep.mubr.f32.mxu0 %v15357_v60  ;;  %v13064_v46 = vpop.permute.xlu1 %11967  ;;  %v13066_v24 = vpop.permute.xlu0 %11962  ;;  %v1981_v28 = vsel %vm1964_vm2, %v15365_v4, %v11870_v58  ;;  %v8835_v62 = vadd.f32 %v8832_v22, %v8829_v23  ;;  %v8882_v49 = vmul.f32 %v8816_v13, %v8816_v13  ;;  %12248 = vrsqrt.f32 %v13006_v9 }
  0xcd   :  { %11611 = vmatmul.mubr.msk.f32.vlgmr.msra.gmra.mxu0 %vm203_vm1, %v12920_v21  ;;  %2577 = vmatprep.mubr.f32.mxu1 %v15357_v60  ;;  %v1983_v1 = vsel %vm1964_vm2, %v11874_v54, %v11875_v57  ;;  %v1986_v58 = vsel %vm1964_vm2, %v11880_v26, %v11884_v30  ;;  %v11890_v17 = vunpack.i.h.bf16 %v12810_v8  ;;  %v11889_v18 = vunpack.i.l.bf16 %v12810_v8 }
  0xce   :  { %2615 = vmatpush1.msra.mxu0 %v1981_v28  ;;  %12197 = vrot.lane.b32.xlu1 %v12387_v15, %s12306_s16  ;;  %v8879_v15 = vadd.f32 %v8876_v42, %v8870_v52  ;;  %v8818_v7 = vunpack.c.l.bf16 %v8795_v6  ;;  %v11899_v54 = vunpack.i.l.bf16 %v12837_v12  ;;  %v8878_v57 = vadd.f32 %v8875_v38, %v8869_v10 }
  0xcf   :  { %12192 = vrot.lane.b32.xlu0 %v12411_v20, %s12306_s16  ;;  %11612 = vmatmul.mubr.msk.f32.vlgmr.msra.gmra.mxu1 %vm203_vm1, %v12920_v21  ;;  %v1988_v20 = vsel %vm1964_vm2, %v11885_v61, %v12790_v0  ;;  %v8881_v37 = vmul.f32 %v8815_v3, %v8815_v3  ;;  %v1985_v0 = vsel %vm1964_vm2, %v11879_v29, %v11880_v26  ;;  %12250 = vrsqrt.f32 %v13068_v55 }
  0xd0   :  { %2686 = vmatpush1.msra.mxu1 %v1983_v1  ;;  %2756 = vmatprep.subr.mxu0 %v1986_v58  ;;  %v13095_v22 = vpop.permute.xlu1 %11977  ;;  %v13097_v34 = vpop.permute.xlu0 %11972  ;;  %v8888_v8 = vmul.f32 %v8819_v56, %v8819_v56  ;;  %v11895_v16 = vunpack.i.h.bf16 %v12808_v5  ;;  %v11894_v23 = vunpack.i.l.bf16 %v12808_v5  ;;  %v13112_v13 = vadd.f32 %v8838_v40, %v8835_v62 }
  0xd1   :  { %2827 = vmatprep.subr.mxu1 %v1988_v20  ;;  %2648 = vmatprep.mubr.f32.mxu0 %v15357_v60  ;;  %v8885_v63 = vadd.f32 %v8882_v49, %v8879_v15  ;;  %v1987_v2 = vsel %vm1964_vm2, %v11884_v30, %v11885_v61  ;;  %v2944_v29 = vsel %vm2942_vm3, %v11889_v18, %v11890_v17  ;;  %12252 = vrsqrt.f32 %v13080_v14 }
  0xd2   :  { %11613 = vmatmul.mubr.msk.f32.vlgmr.msra.gmra.mxu0 %vm203_vm1, %v12920_v21  ;;  %2719 = vmatprep.mubr.f32.mxu1 %v15357_v60  ;;  %v11904_v52 = vunpack.i.l.bf16 %v12835_v11  ;;  %v11900_v42 = vunpack.i.h.bf16 %v12837_v12  ;;  %v8884_v40 = vadd.f32 %v8881_v37, %v8878_v57  ;;  %v11909_v30 = vunpack.i.l.bf16 %v12865_v32 }
  0xd3   :  { %2757 = vmatpush1.msra.mxu0 %v1985_v0  ;;  %12207 = vrot.lane.b32.xlu1 %v12440_v27, %s12306_s16  ;;  %v8887_v27 = vmul.f32 %v8818_v7, %v8818_v7  ;;  %v2943_v61 = vsel %vm2942_vm3, %v11894_v23, %v11889_v18  ;;  %v13135_v3 = vunpack.c.h.bf16 %v12892_v33  ;;  %v11905_v12 = vunpack.i.h.bf16 %v12835_v11 }
  0xd4   :  { %12202 = vrot.lane.b32.xlu0 %v12405_v19, %s12306_s16  ;;  %11614 = vmatmul.mubr.msk.f32.vlgmr.msra.gmra.mxu1 %vm203_vm1, %v12920_v21  ;;  %v13120_v6 = vpop.permute.xlu1 %11987  ;;  %v13122_v5 = vpop.permute.xlu0 %11982  ;;  %v2946_v19 = vsel %vm2942_vm3, %v11895_v16, %v11899_v54  ;;  %12254 = vrsqrt.f32 %v13112_v13  ;;  %v13145_v28 = vadd.f32 %v8888_v8, %v8885_v63  ;;  %v2945_v11 = vsel %vm2942_vm3, %v11890_v17, %v11895_v16 }
  0xd5   :  { %2828 = vmatpush1.msra.mxu1 %v1987_v2  ;;  %3024 = vmatprep.subr.mxu0 %v2944_v29  ;;  %v2948_v33 = vsel %vm2942_vm3, %v11900_v42, %v11904_v52  ;;  %v13153_v10 = vadd.f32 %v8887_v27, %v8884_v40  ;;  %v11910_v38 = vunpack.i.h.bf16 %v12865_v32  ;;  %v2950_v62 = vsel %vm2942_vm3, %v11905_v12, %v11909_v30 }
  0xd6   :  { %3095 = vmatprep.subr.mxu1 %v2946_v19  ;;  %2790 = vmatprep.mubr.f32.mxu0 %v15357_v60  ;;  %v11919_v56 = vunpack.i.l.bf16 %v12900_v45  ;;  %v2947_v49 = vsel %vm2942_vm3, %v11899_v54, %v11900_v42  ;;  %12256 = vrsqrt.f32 %v13145_v28  ;;  %v11915_v58 = vunpack.i.h.bf16 %v12863_v31  ;;  %v15366_v19 = vld [vmem:[#allocation7_spill] sm:$0xff] }
  0xd7   :  { %11615 = vmatmul.mubr.msk.f32.vlgmr.msra.gmra.mxu0 %vm203_vm1, %v12920_v21  ;;  %2861 = vmatprep.mubr.f32.mxu1 %v15357_v60  ;;  %12258 = vrsqrt.f32 %v13153_v10  ;;  %v2949_v15 = vsel %vm2942_vm3, %v11904_v52, %v11905_v12  ;;  %v11924_v20 = vunpack.i.l.bf16 %v12898_v39  ;;  %v11929_v7 = vunpack.i.l.bf16 %v12945_v44 }
  0xd8   :  { %3025 = vmatpush1.msra.mxu0 %v2943_v61  ;;  %12217 = vrot.lane.b32.xlu1 %v12471_v36, %s12306_s16  ;;  %v13140_v26 = vpop.permute.xlu1 %11997  ;;  %v13142_v4 = vpop.permute.xlu0 %11992  ;;  %v11914_v36 = vunpack.i.l.bf16 %v12863_v31  ;;  %v11920_v31 = vunpack.i.h.bf16 %v12900_v45  ;;  %vm8860_vm4 = vcmp.eq.f32.partialorder %v13006_v9, inf  ;;  %v2951_v0 = vsel %vm2942_vm3, %v11909_v30, %v11910_v38 }
  0xd9   :  { %12212 = vrot.lane.b32.xlu0 %v12429_v25, %s12306_s16  ;;  %11616 = vmatmul.mubr.msk.f32.vlgmr.msra.gmra.mxu1 %vm203_vm1, %v12920_v21  ;;  %v12249_v25 = vpop.eup %12248  ;;  %v11925_v8 = vunpack.i.h.bf16 %v12898_v39  ;;  %v8863_v16 = vand.u32 2147483648, %v13006_v9  ;;  %vm8862_vm5 = vcmp.eq.f32.partialorder %v13006_v9, 0.0  ;;  %v11930_v29 = vunpack.i.h.bf16 %v12945_v44 }
  0xda   :  { %3096 = vmatpush1.msra.mxu1 %v2945_v11  ;;  %3166 = vmatprep.subr.mxu0 %v2948_v33  ;;  %v2952_v17 = vsel %vm2942_vm3, %v11910_v38, %v11914_v36  ;;  %v2953_v63 = vsel %vm2942_vm3, %v11914_v36, %v11915_v58  ;;  %v2956_v2 = vsel %vm2942_vm3, %v11920_v31, %v11924_v20  ;;  %vm8853_vm6 = vcmp.eq.f32.partialorder %v13068_v55, inf }
  0xdb   :  { %3237 = vmatprep.subr.mxu1 %v2950_v62  ;;  %3058 = vmatprep.mubr.f32.mxu0 %v15357_v60  ;;  %v11939_v40 = vunpack.i.l.bf16 %v15366_v19  ;;  %vm8855_vm7 = vcmp.eq.f32.partialorder %v13068_v55, 0.0  ;;  %v2955_v61 = vsel %vm2942_vm3, %v11919_v56, %v11920_v31  ;;  %v8856_v11 = vand.u32 2147483648, %v13068_v55 }
  0xdc   :  { %11617 = vmatmul.mubr.msk.f32.vlgmr.msra.gmra.mxu0 %vm203_vm1, %v13135_v3  ;;  %3129 = vmatprep.mubr.f32.mxu1 %v15357_v60  ;;  %v13164_v1 = vpop.permute.xlu1 %3918  ;;  %v13166_v32 = vpop.permute.xlu0 %12002  ;;  %vm8894_vm8 = vcmp.eq.f32.partialorder %v13080_v14, inf  ;;  %v11935_v33 = vunpack.i.h.bf16 %v12943_v53  ;;  %v8897_v36 = vand.u32 2147483648, %v13080_v14  ;;  %vm8846_vm9 = vcmp.eq.f32.partialorder %v13112_v13, inf }
  0xdd   :  { %3167 = vmatpush1.msra.mxu0 %v2947_v49  ;;  %12227 = vrot.lane.b32.xlu1 %v12500_v43, %s12306_s16  ;;  %v12251_v18 = vpop.eup %12250  ;;  %v2954_v43 = vsel %vm2942_vm3, %v11915_v58, %v11919_v56  ;;  %vm8896_vm10 = vcmp.eq.f32.partialorder %v13080_v14, 0.0  ;;  %vm8848_vm11 = vcmp.eq.f32.partialorder %v13112_v13, 0.0  ;;  %v8849_v31 = vand.u32 2147483648, %v13112_v13 }
  0xde   :  { %12222 = vrot.lane.b32.xlu0 %v12465_v35, %s12306_s16  ;;  %11618 = vmatmul.mubr.msk.f32.vlgmr.msra.gmra.mxu1 %vm203_vm1, %v13135_v3  ;;  %v8859_v35 = vmul.f32 %v12249_v25, %v13006_v9  ;;  %v12253_v37 = vpop.eup %12252  ;;  %v8852_v23 = vmul.f32 %v12251_v18, %v13068_v55  ;;  %v15367_v25 = vld [vmem:[#allocation6_spill] sm:$0xff]  ;;  %v2962_v58 = vsel %vm2942_vm3, %v11935_v33, %v11939_v40  ;;  %vm8908_vm13 = vcmp.eq.f32.partialorder %v13145_v28, inf }
  0xdf   :  { %3238 = vmatpush1.msra.mxu1 %v2949_v15  ;;  %3308 = vmatprep.subr.mxu0 %v2952_v17  ;;  %v8893_v30 = vmul.f32 %v12253_v37, %v13080_v14  ;;  %v11944_v49 = vunpack.i.l.bf16 %v15367_v25  ;;  %vm8901_vm14 = vcmp.eq.f32.partialorder %v13153_v10, inf  ;;  %vm8910_vm15 = vcmp.eq.f32.partialorder %v13145_v28, 0.0 }
  0xe0   :  { %3379 = vmatprep.subr.mxu1 %v2954_v43  ;;  %3200 = vmatprep.mubr.f32.mxu0 %v15357_v60  ;;  %v13188_v54 = vpop.permute.xlu1 %12012  ;;  %v13190_v57 = vpop.permute.xlu0 %12007  ;;  %v8861_v39 = vsel %vm8860_vm4, %v13006_v9, %v8859_v35  ;;  %v8854_v45 = vsel %vm8853_vm6, %v13068_v55, %v8852_v23  ;;  %v11945_v43 = vunpack.i.h.bf16 %v15367_v25  ;;  %vm8903_vm4 = vcmp.eq.f32.partialorder %v13153_v10, 0.0 }
  0xe1   :  { %11619 = vmatmul.mubr.msk.f32.vlgmr.msra.gmra.mxu0 %vm203_vm1, %v13135_v3  ;;  %3271 = vmatprep.mubr.f32.mxu1 %v15357_v60  ;;  %v12255_v42 = vpop.eup %12254  ;;  %v13233_v12 = vsel %vm8862_vm5, %v8863_v16, %v8861_v39  ;;  %v8895_v15 = vsel %vm8894_vm8, %v13080_v14, %v8893_v30  ;;  %v13268_v18 = vsel %vm8855_vm7, %v8856_v11, %v8854_v45  ;;  %v15368_v16 = vld [vmem:[#allocation8_spill] sm:$0xff]  ;;  %v11954_v45 = vunpack.i.l.bf16 %v13038_v59 }
  0xe2   :  { %3309 = vmatpush1.msra.mxu0 %v2951_v0  ;;  %12237 = vrot.lane.b32.xlu1 %v12519_v48, %s12306_s16  ;;  %v11934_v48 = vunpack.i.l.bf16 %v12943_v53  ;;  %v2957_v53 = vsel %vm2942_vm3, %v11924_v20, %v11925_v8  ;;  %v2959_v20 = vsel %vm2942_vm3, %v11929_v7, %v11930_v29  ;;  %v13283_v55 = vsel %vm8896_vm10, %v8897_v36, %v8895_v15 }
  0xe3   :  { %12232 = vrot.lane.b32.xlu0 %v12489_v41, %s12306_s16  ;;  %11620 = vmatmul.mubr.msk.f32.vlgmr.msra.gmra.mxu1 %vm203_vm1, %v13135_v3  ;;  %v2958_v41 = vsel %vm2942_vm3, %v11925_v8, %v11929_v7  ;;  %v12257_v56 = vpop.eup %12256  ;;  %v11950_v23 = vunpack.i.h.bf16 %v15368_v16  ;;  %v11964_v36 = vunpack.i.l.bf16 %v13066_v24  ;;  %vm4898_vm5 = vcmask 883712  }
  0xe4   :  { %3380 = vmatpush1.msra.mxu1 %v2953_v63  ;;  %3450 = vmatprep.subr.mxu0 %v2956_v2  ;;  %v13217_v27 = vpop.permute.xlu1 %12022  ;;  %v13219_v52 = vpop.permute.xlu0 %12017  ;;  %v2960_v9 = vsel %vm2942_vm3, %v11930_v29, %v11934_v48  ;;  %v8907_v35 = vmul.f32 %v12257_v56, %v13145_v28  ;;  %v2961_v14 = vsel %vm2942_vm3, %v11934_v48, %v11935_v33  ;;  %v11949_v63 = vunpack.i.l.bf16 %v15368_v16  ;;  %v15369_v2 = vld [vmem:[#allocation9_spill] sm:$0xff] }
  0xe5   :  { %3521 = vmatprep.subr.mxu1 %v2958_v41  ;;  %3342 = vmatprep.mubr.f32.mxu0 %v15357_v60  ;;  %v12259_v17 = vpop.eup %12258  ;;  %v2966_v39 = vsel %vm2942_vm3, %v11945_v43, %v15369_v2  ;;  %v11959_v29 = vunpack.i.l.bf16 %v13036_v51  ;;  %v11955_v48 = vunpack.i.h.bf16 %v13038_v59  ;;  %v11965_v56 = vunpack.i.h.bf16 %v13066_v24 }
  0xe6   :  { %11621 = vmatmul.mubr.msk.f32.vlgmr.msra.gmra.mxu0 %vm203_vm1, %v13135_v3  ;;  %3413 = vmatprep.mubr.f32.mxu1 %v15357_v60  ;;  %v8900_v8 = vmul.f32 %v12259_v17, %v13153_v10  ;;  %v3922_v59 = vsel %vm3920_vm12, %v11949_v63, %v11950_v23  ;;  %v11974_v17 = vunpack.i.l.bf16 %v13097_v34  ;;  %v11980_v2 = vunpack.i.h.bf16 %v13095_v22 }
  0xe7   :  { %3451 = vmatpush1.msra.mxu0 %v2955_v61  ;;  %7830 = vrot.lane.b32.xlu1 %v12528_v50, %s12306_s16  ;;  %v8845_v50 = vmul.f32 %v12255_v42, %v13112_v13  ;;  %v8911_v42 = vand.u32 2147483648, %v13145_v28  ;;  %v8909_v61 = vsel %vm8908_vm13, %v13145_v28, %v8907_v35  ;;  %v11960_v28 = vunpack.i.h.bf16 %v13036_v51 }
  0xe8   :  { %12242 = vrot.lane.b32.xlu0 %v12513_v47, %s12306_s16  ;;  %11622 = vmatmul.mubr.msk.f32.vlgmr.msra.gmra.mxu1 %vm203_vm1, %v13135_v3  ;;  %v13253_v38 = vpop.permute.xlu1 %12032  ;;  %v13255_v62 = vpop.permute.xlu0 %12027  ;;  %v11940_v47 = vunpack.i.h.bf16 %v15366_v19  ;;  %v8902_v19 = vsel %vm8901_vm14, %v13153_v10, %v8900_v8  ;;  %v3923_v51 = vsel %vm3920_vm12, %v11950_v23, %v11955_v48  ;;  %v11984_v8 = vunpack.i.l.bf16 %v13122_v5 }
  0xe9   :  { %3522 = vmatpush1.msra.mxu1 %v2957_v53  ;;  %3592 = vmatprep.subr.mxu0 %v2960_v9  ;;  %v8847_v44 = vsel %vm8846_vm9, %v13112_v13, %v8845_v50  ;;  %v8904_v13 = vand.u32 2147483648, %v13153_v10  ;;  %v3924_v53 = vsel %vm3920_vm12, %v11955_v48, %v11959_v29  ;;  %v13346_v9 = vsel %vm8910_vm15, %v8911_v42, %v8909_v61  ;;  %v13351_v10 = vld [vmem:[%s15300_s1 + $0x10] sm:$0xff]  }
  0xea   :  { %3663 = vmatprep.subr.mxu1 %v2962_v58  ;;  %3484 = vmatprep.mubr.f32.mxu0 %v15357_v60  ;;  %v2964_v0 = vsel %vm2942_vm3, %v11940_v47, %v11944_v49  ;;  %v13311_v41 = vsel %vm8848_vm11, %v8849_v31, %v8847_v44  ;;  %v2963_v30 = vsel %vm2942_vm3, %v11939_v40, %v11940_v47  ;;  %v11969_v50 = vunpack.i.l.bf16 %v13064_v46 }
  0xeb   :  { %11623 = vmatmul.mubr.msk.f32.vlgmr.msra.gmra.mxu0 %vm203_vm1, %v13135_v3  ;;  %3555 = vmatprep.mubr.f32.mxu1 %v15357_v60  ;;  %v2965_v40 = vsel %vm2942_vm3, %v11944_v49, %v11945_v43  ;;  %v13356_v25 = vsel %vm8903_vm4, %v8904_v13, %v8902_v19  ;;  %v3921_v47 = vsel %vm3920_vm12, %v11954_v45, %v11949_v63  ;;  %v13370_v24 = vunpack.c.l.bf16 %v13351_v10 }
  0xec   :  { %3593 = vmatpush1.msra.mxu0 %v2959_v20  ;;  %8935 = vrot.lane.b32.xlu1 %v13233_v12, %s12299_s9  ;;  %v13289_v7 = vpop.permute.xlu1 %12042  ;;  %v13291_v37 = vpop.permute.xlu0 %12037  ;;  %v3926_v15 = vsel %vm3920_vm12, %v11960_v28, %v11964_v36  ;;  %v3928_v20 = vsel %vm3920_vm12, %v11965_v56, %v11969_v50  ;;  %v11979_v31 = vunpack.i.l.bf16 %v13095_v22  ;;  %v11975_v43 = vunpack.i.h.bf16 %v13097_v34 }
  0xed   :  { %8933 = vrot.lane.b32.xlu0 %v13268_v18, %s12299_s9  ;;  %11624 = vmatmul.mubr.msk.f32.vlgmr.msra.gmra.mxu1 %vm203_vm1, %v13135_v3  ;;  %15370 = vst [vmem:[#allocation7_spill] sm:$0xff] %v13370_v24  ;;  %v11970_v44 = vunpack.i.h.bf16 %v13064_v46  ;;  %v3925_v35 = vsel %vm3920_vm12, %v11959_v29, %v11960_v28  ;;  %v3927_v46 = vsel %vm3920_vm12, %v11964_v36, %v11965_v56  ;;  %v11989_v23 = vunpack.i.l.bf16 %v13120_v6 }
  0xee   :  { %3664 = vmatpush1.msra.mxu1 %v2961_v14  ;;  %3734 = vmatprep.subr.mxu0 %v2964_v0  ;;  %v3932_v16 = vsel %vm3920_vm12, %v11975_v43, %v11979_v31  ;;  %v11985_v63 = vunpack.i.h.bf16 %v13122_v5  ;;  %v3931_v22 = vsel %vm3920_vm12, %v11974_v17, %v11975_v43  ;;  %v3934_v5 = vsel %vm3920_vm12, %v11980_v2, %v11984_v8 }
  0xef   :  { %3805 = vmatprep.subr.mxu1 %v2966_v39  ;;  %3626 = vmatprep.mubr.f32.mxu0 %v15357_v60  ;;  %v3930_v34 = vsel %vm3920_vm12, %v11970_v44, %v11974_v17  ;;  %v3929_v39 = vsel %vm3920_vm12, %v11969_v50, %v11970_v44  ;;  %v11994_v42 = vunpack.i.l.bf16 %v13142_v4  ;;  %v11999_v61 = vunpack.i.l.bf16 %v13140_v26 }
  0xf0   :  { %11625 = vmatmul.mubr.msk.f32.vlgmr.msra.gmra.mxu0 %vm203_vm1, %v13135_v3  ;;  %3697 = vmatprep.mubr.f32.mxu1 %v15357_v60  ;;  %v13325_v11 = vpop.permute.xlu1 %12052  ;;  %v13327_v33 = vpop.permute.xlu0 %12047  ;;  %v11995_v13 = vunpack.i.h.bf16 %v13142_v4  ;;  %v11990_v45 = vunpack.i.h.bf16 %v13120_v6  ;;  %v3933_v19 = vsel %vm3920_vm12, %v11979_v31, %v11980_v2  ;;  %v3935_v6 = vsel %vm3920_vm12, %v11984_v8, %v11985_v63 }
  0xf1   :  { %3735 = vmatpush1.msra.mxu0 %v2963_v30  ;;  %8937 = vrot.lane.b32.xlu1 %v13283_v55, %s12299_s9  ;;  %v3936_v30 = vsel %vm3920_vm12, %v11985_v63, %v11989_v23  ;;  %v12004_v36 = vunpack.i.l.bf16 %v13166_v32  ;;  %v12005_v50 = vunpack.i.h.bf16 %v13166_v32  ;;  %v12000_v56 = vunpack.i.h.bf16 %v13140_v26 }
  0xf2   :  { %8931 = vrot.lane.b32.xlu0 %v13311_v41, %s12299_s9  ;;  %11626 = vmatmul.mubr.msk.f32.vlgmr.msra.gmra.mxu1 %vm203_vm1, %v13135_v3  ;;  %v3938_v4 = vsel %vm3920_vm12, %v11990_v45, %v11994_v42  ;;  %v3937_v28 = vsel %vm3920_vm12, %v11989_v23, %v11990_v45  ;;  %v3939_v26 = vsel %vm3920_vm12, %v11994_v42, %v11995_v13  ;;  %v12009_v17 = vunpack.i.l.bf16 %v13190_v57 }
  0xf3   :  { %3806 = vmatpush1.msra.mxu1 %v2965_v40  ;;  %4002 = vmatprep.subr.mxu0 %v3922_v59  ;;  %v3942_v32 = vsel %vm3920_vm12, %v12000_v56, %v12004_v36  ;;  %v12019_v31 = vunpack.i.l.bf16 %v13219_v52  ;;  %v12024_v8 = vunpack.i.l.bf16 %v13217_v27  ;;  %v12029_v23 = vunpack.i.l.bf16 %v13255_v62 }
  0xf4   :  { %4073 = vmatprep.subr.mxu1 %v3924_v53  ;;  %3768 = vmatprep.mubr.f32.mxu0 %v15357_v60  ;;  %v13358_v49 = vpop.permute.xlu1 %12062  ;;  %v3940_v53 = vsel %vm3920_vm12, %v11995_v13, %v11999_v61  ;;  %vm5876_vm6 = vcmask 752640   ;;  %vm6854_vm7 = vcmask 744448   ;;  %vm7832_vm8 = vcmask 736256  }
  0xf5   :  { %11627 = vmatmul.mubr.msk.f32.vlgmr.msra.gmra.mxu0 %vm203_vm1, %v13135_v3  ;;  %3839 = vmatprep.mubr.f32.mxu1 %v15357_v60  ;;  %v13365_v58 = vpop.permute.xlu0 %12057 }
  0xf6   :  { %4003 = vmatpush1.msra.mxu0 %v3921_v47  ;;  %8941 = vrot.lane.b32.xlu1 %v13346_v9, %s12299_s9 }
  0xf7   :  { %8939 = vrot.lane.b32.xlu0 %v13356_v25, %s12299_s9  ;;  %11628 = vmatmul.mubr.msk.f32.vlgmr.msra.gmra.mxu1 %vm203_vm1, %v13135_v3 }
  0xf8   :  { %4074 = vmatpush1.msra.mxu1 %v3923_v51  ;;  %4144 = vmatprep.subr.mxu0 %v3926_v15  ;;  %v12010_v15 = vunpack.i.h.bf16 %v13190_v57  ;;  %v3941_v57 = vsel %vm3920_vm12, %v11999_v61, %v12000_v56 }
  0xf9   :  { %4215 = vmatprep.subr.mxu1 %v3928_v20  ;;  %4036 = vmatprep.mubr.f32.mxu0 %v15357_v60  ;;  %v3944_v20 = vsel %vm3920_vm12, %v12005_v50, %v13164_v1  ;;  %v12014_v1 = vunpack.i.l.bf16 %v13188_v54 }
  0xfa   :  { %11629 = vmatmul.mubr.msk.f32.vlgmr.msra.gmra.mxu0 %vm203_vm1, %v13370_v24  ;;  %4107 = vmatprep.mubr.f32.mxu1 %v15357_v60  ;;  %v13388_v14 = vpop.permute.xlu1 %12067  ;;  %v13390_v0 = vpop.permute.xlu0 %4896 }
  0xfb   :  { %4145 = vmatpush1.msra.mxu0 %v3925_v35  ;;  %9385 = vrot.lane.b32.xlu1 %v13268_v18, %s12300_s24  ;;  %v12015_v35 = vunpack.i.h.bf16 %v13188_v54 }
  0xfc   :  { %8943 = vrot.lane.b32.xlu0 %v15357_v60, %s12299_s9  ;;  %11630 = vmatmul.mubr.msk.f32.vlgmr.msra.gmra.mxu1 %vm203_vm1, %v13370_v24 }
  0xfd   :  { %4216 = vmatpush1.msra.mxu1 %v3927_v46  ;;  %4286 = vmatprep.subr.mxu0 %v3930_v34  ;;  %v3943_v46 = vsel %vm3920_vm12, %v12004_v36, %v12005_v50  ;;  %v4900_v34 = vsel %vm4898_vm5, %v12009_v17, %v12010_v15  ;;  %v4902_v54 = vsel %vm4898_vm5, %v12015_v35, %v12019_v31  ;;  %v12044_v36 = vunpack.i.l.bf16 %v13289_v7 }
  0xfe   :  { %4357 = vmatprep.subr.mxu1 %v3932_v16  ;;  %4178 = vmatprep.mubr.f32.mxu0 %v15357_v60  ;;  %v12020_v16 = vunpack.i.h.bf16 %v13219_v52  ;;  %v4899_v52 = vsel %vm4898_vm5, %v12014_v1, %v12009_v17  ;;  %v12049_v50 = vunpack.i.l.bf16 %v13327_v33  ;;  %v12054_v17 = vunpack.i.l.bf16 %v13325_v11 }
  0xff   :  { %11631 = vmatmul.mubr.msk.f32.vlgmr.msra.gmra.mxu0 %vm203_vm1, %v13370_v24  ;;  %4249 = vmatprep.mubr.f32.mxu1 %v15357_v60  ;;  %v13410_v29 = vpop.permute.xlu1 %12077  ;;  %v13412_v48 = vpop.permute.xlu0 %12072 }
 0x100   :  { %4287 = vmatpush1.msra.mxu0 %v3929_v39  ;;  %9383 = vrot.lane.b32.xlu1 %v13311_v41, %s12300_s24  ;;  %v12025_v39 = vunpack.i.h.bf16 %v13217_v27  ;;  %v4904_v42 = vsel %vm4898_vm5, %v12020_v16, %v12024_v8  ;;  %v12030_v27 = vunpack.i.h.bf16 %v13255_v62  ;;  %v4903_v62 = vsel %vm4898_vm5, %v12019_v31, %v12020_v16 }
 0x101   :  { %9387 = vrot.lane.b32.xlu0 %v13233_v12, %s12300_s24  ;;  %11632 = vmatmul.mubr.msk.f32.vlgmr.msra.gmra.mxu1 %vm203_vm1, %v13370_v24  ;;  %v12059_v31 = vunpack.i.l.bf16 %v13365_v58  ;;  %v12060_v16 = vunpack.i.h.bf16 %v13365_v58 }
 0x102   :  { %4358 = vmatpush1.msra.mxu1 %v3931_v22  ;;  %4428 = vmatprep.subr.mxu0 %v3934_v5  ;;  %v13506_v22 = vunpack.c.h.bf16 %v13351_v10  ;;  %v4901_v5 = vsel %vm4898_vm5, %v12010_v15, %v12015_v35  ;;  %v4906_v61 = vsel %vm4898_vm5, %v12025_v39, %v12029_v23  ;;  %v12039_v10 = vunpack.i.l.bf16 %v13291_v37 }
 0x103   :  { %4499 = vmatprep.subr.mxu1 %v3936_v30  ;;  %4320 = vmatprep.mubr.f32.mxu0 %v15357_v60  ;;  %v12034_v30 = vunpack.i.l.bf16 %v13253_v38 }
 0x104   :  { %11633 = vmatmul.mubr.msk.f32.vlgmr.msra.gmra.mxu0 %vm203_vm1, %v13370_v24  ;;  %4391 = vmatprep.mubr.f32.mxu1 %v15357_v60  ;;  %v13432_v40 = vpop.permute.xlu1 %12087  ;;  %v13434_v59 = vpop.permute.xlu0 %12082  ;;  %15371 = vst [vmem:[#allocation6_spill] sm:$0xff] %v13506_v22 }
 0x105   :  { %4429 = vmatpush1.msra.mxu0 %v3933_v19  ;;  %9391 = vrot.lane.b32.xlu1 %v13356_v25, %s12300_s24  ;;  %v12035_v19 = vunpack.i.h.bf16 %v13253_v38 }
 0x106   :  { %9389 = vrot.lane.b32.xlu0 %v13283_v55, %s12300_s24  ;;  %11634 = vmatmul.mubr.msk.f32.vlgmr.msra.gmra.mxu1 %vm203_vm1, %v13370_v24 }
 0x107   :  { %4500 = vmatpush1.msra.mxu1 %v3935_v6  ;;  %4570 = vmatprep.subr.mxu0 %v3938_v4  ;;  %v4905_v6 = vsel %vm4898_vm5, %v12024_v8, %v12025_v39  ;;  %v4908_v4 = vsel %vm4898_vm5, %v12030_v27, %v12034_v30  ;;  %v4910_v38 = vsel %vm4898_vm5, %v12035_v19, %v12039_v10  ;;  %v12064_v8 = vunpack.i.l.bf16 %v13358_v49 }
 0x108   :  { %4641 = vmatprep.subr.mxu1 %v3940_v53  ;;  %4462 = vmatprep.mubr.f32.mxu0 %v15357_v60  ;;  %v12040_v53 = vunpack.i.h.bf16 %v13291_v37  ;;  %v4907_v37 = vsel %vm4898_vm5, %v12029_v23, %v12030_v27  ;;  %v12079_v27 = vunpack.i.l.bf16 %v13410_v29 }
 0x109   :  { %11635 = vmatmul.mubr.msk.f32.vlgmr.msra.gmra.mxu0 %vm203_vm1, %v13370_v24  ;;  %4533 = vmatprep.mubr.f32.mxu1 %v15357_v60  ;;  %v13453_v47 = vpop.permute.xlu1 %12097  ;;  %v13455_v51 = vpop.permute.xlu0 %12092 }
 0x10a   :  { %4571 = vmatpush1.msra.mxu0 %v3937_v28  ;;  %9395 = vrot.lane.b32.xlu1 %v15357_v60, %s12300_s24  ;;  %v4912_v15 = vsel %vm4898_vm5, %v12040_v53, %v12044_v36  ;;  %v4911_v35 = vsel %vm4898_vm5, %v12039_v10, %v12040_v53  ;;  %v12089_v53 = vunpack.i.l.bf16 %v13432_v40 }
 0x10b   :  { %9393 = vrot.lane.b32.xlu0 %v13346_v9, %s12300_s24  ;;  %11636 = vmatmul.mubr.msk.f32.vlgmr.msra.gmra.mxu1 %vm203_vm1, %v13370_v24 }
 0x10c   :  { %4642 = vmatpush1.msra.mxu1 %v3939_v26  ;;  %4712 = vmatprep.subr.mxu0 %v3942_v32  ;;  %v12045_v26 = vunpack.i.h.bf16 %v13289_v7  ;;  %v4909_v32 = vsel %vm4898_vm5, %v12034_v30, %v12035_v19 }
 0x10d   :  { %4783 = vmatprep.subr.mxu1 %v3944_v20  ;;  %4604 = vmatprep.mubr.f32.mxu0 %v15357_v60  ;;  %v13471_v43 = vpop.permute.xlu1 %12107  ;;  %v13473_v44 = vpop.permute.xlu0 %12102  ;;  %v12050_v20 = vunpack.i.h.bf16 %v13327_v33  ;;  %v12055_v33 = vunpack.i.h.bf16 %v13325_v11 }
 0x10e   :  { %11637 = vmatmul.mubr.msk.f32.vlgmr.msra.gmra.mxu0 %vm203_vm1, %v13370_v24  ;;  %4675 = vmatprep.mubr.f32.mxu1 %v15357_v60  ;;  %v4914_v7 = vsel %vm4898_vm5, %v12045_v26, %v12049_v50 }
 0x10f   :  { %4713 = vmatpush1.msra.mxu0 %v3941_v57  ;;  %9632 = vrot.lane.b32.xlu1 %v13233_v12, %s12301_s25  ;;  %v4918_v11 = vsel %vm4898_vm5, %v12055_v33, %v12059_v31  ;;  %v4917_v39 = vsel %vm4898_vm5, %v12054_v17, %v12055_v33 }
 0x110   :  { %9630 = vrot.lane.b32.xlu0 %v13268_v18, %s12301_s25  ;;  %11638 = vmatmul.mubr.msk.f32.vlgmr.msra.gmra.mxu1 %vm203_vm1, %v13370_v24 }
 0x111   :  { %4784 = vmatpush1.msra.mxu1 %v3943_v46  ;;  %4980 = vmatprep.subr.mxu0 %v4900_v34  ;;  %v4913_v46 = vsel %vm4898_vm5, %v12044_v36, %v12045_v26  ;;  %v4916_v34 = vsel %vm4898_vm5, %v12050_v20, %v12054_v17  ;;  %v13630_v36 = vld [vmem:[%s15300_s1 + $0x18] sm:$0xff]   ;;  %v12094_v17 = vunpack.i.l.bf16 %v13455_v51 }
 0x112   :  { %5051 = vmatprep.subr.mxu1 %v4902_v54  ;;  %4746 = vmatprep.mubr.f32.mxu0 %v15357_v60  ;;  %v13494_v63 = vpop.permute.xlu1 %12117  ;;  %v13496_v2 = vpop.permute.xlu0 %12112  ;;  %v4915_v54 = vsel %vm4898_vm5, %v12049_v50, %v12050_v20  ;;  %v12080_v50 = vunpack.i.h.bf16 %v13410_v29 }
 0x113   :  { %11639 = vmatmul.mubr.msk.f32.vlgmr.msra.gmra.mxu0 %vm203_vm1, %v13370_v24  ;;  %4817 = vmatprep.mubr.f32.mxu1 %v15357_v60 }
 0x114   :  { %4981 = vmatpush1.msra.mxu0 %v4899_v52  ;;  %9634 = vrot.lane.b32.xlu1 %v13283_v55, %s12301_s25  ;;  %v12065_v52 = vunpack.i.h.bf16 %v13358_v49  ;;  %v12069_v49 = vunpack.i.l.bf16 %v13388_v14  ;;  %v5881_v33 = vsel %vm5876_vm6, %v12079_v27, %v12080_v50 }
 0x115   :  { %9628 = vrot.lane.b32.xlu0 %v13311_v41, %s12301_s25  ;;  %11640 = vmatmul.mubr.msk.f32.vlgmr.msra.gmra.mxu1 %vm203_vm1, %v13370_v24 }
 0x116   :  { %5052 = vmatpush1.msra.mxu1 %v4901_v5  ;;  %5122 = vmatprep.subr.mxu0 %v4904_v42  ;;  %v4920_v5 = vsel %vm4898_vm5, %v12060_v16, %v12064_v8  ;;  %v12070_v42 = vunpack.i.h.bf16 %v13388_v14  ;;  %v4922_v30 = vsel %vm4898_vm5, %v12065_v52, %v13390_v0  ;;  %v4919_v14 = vsel %vm4898_vm5, %v12059_v31, %v12060_v16 }
 0x117   :  { %5193 = vmatprep.subr.mxu1 %v4906_v61  ;;  %5014 = vmatprep.mubr.f32.mxu0 %v15357_v60  ;;  %v13519_v13 = vpop.permute.xlu1 %5874  ;;  %v13521_v45 = vpop.permute.xlu0 %12122  ;;  %v12075_v61 = vunpack.i.h.bf16 %v13412_v48  ;;  %v4921_v19 = vsel %vm4898_vm5, %v12064_v8, %v12065_v52  ;;  %v12095_v31 = vunpack.i.h.bf16 %v13455_v51  ;;  %v12104_v8 = vunpack.i.l.bf16 %v13473_v44 }
 0x118   :  { %11641 = vmatmul.mubr.msk.f32.vlgmr.msra.gmra.mxu0 %vm203_vm1, %v13506_v22  ;;  %5085 = vmatprep.mubr.f32.mxu1 %v15357_v60  ;;  %v12100_v52 = vunpack.i.h.bf16 %v13453_v47 }
 0x119   :  { %5123 = vmatpush1.msra.mxu0 %v4903_v62  ;;  %9638 = vrot.lane.b32.xlu1 %v13346_v9, %s12301_s25  ;;  %v12074_v62 = vunpack.i.l.bf16 %v13412_v48  ;;  %v5880_v48 = vsel %vm5876_vm6, %v12075_v61, %v12079_v27  ;;  %v5879_v29 = vsel %vm5876_vm6, %v12070_v42, %v12075_v61  ;;  %v12119_v27 = vunpack.i.l.bf16 %v13494_v63 }
 0x11a   :  { %9636 = vrot.lane.b32.xlu0 %v13356_v25, %s12301_s25  ;;  %11642 = vmatmul.mubr.msk.f32.vlgmr.msra.gmra.mxu1 %vm203_vm1, %v13506_v22  ;;  %v12115_v61 = vunpack.i.h.bf16 %v13496_v2 }
 0x11b   :  { %5194 = vmatpush1.msra.mxu1 %v4905_v6  ;;  %5264 = vmatprep.subr.mxu0 %v4908_v4  ;;  %v5878_v6 = vsel %vm5876_vm6, %v12069_v49, %v12070_v42  ;;  %v12084_v4 = vunpack.i.l.bf16 %v13434_v59 }
 0x11c   :  { %5335 = vmatprep.subr.mxu1 %v4910_v38  ;;  %5156 = vmatprep.mubr.f32.mxu0 %v15357_v60  ;;  %v13541_v56 = vpop.permute.xlu1 %12132  ;;  %v13543_v28 = vpop.permute.xlu0 %12127  ;;  %v12085_v38 = vunpack.i.h.bf16 %v13434_v59  ;;  %v13645_v59 = vunpack.c.l.bf16 %v13630_v36 }
 0x11d   :  { %11643 = vmatmul.mubr.msk.f32.vlgmr.msra.gmra.mxu0 %vm203_vm1, %v13506_v22  ;;  %5227 = vmatprep.mubr.f32.mxu1 %v15357_v60 }
 0x11e   :  { %5265 = vmatpush1.msra.mxu0 %v4907_v37  ;;  %9875 = vrot.lane.b32.xlu1 %v13268_v18, %s12302_s26  ;;  %v5877_v37 = vsel %vm5876_vm6, %v12074_v62, %v12069_v49  ;;  %15372 = vst [vmem:[#allocation8_spill] sm:$0xff] %v13645_v59  ;;  %v5884_v20 = vsel %vm5876_vm6, %v12085_v38, %v12089_v53  ;;  %v12114_v49 = vunpack.i.l.bf16 %v13496_v2 }
 0x11f   :  { %9640 = vrot.lane.b32.xlu0 %v15357_v60, %s12301_s25  ;;  %11644 = vmatmul.mubr.msk.f32.vlgmr.msra.gmra.mxu1 %vm203_vm1, %v13506_v22 }
 0x120   :  { %5336 = vmatpush1.msra.mxu1 %v4909_v32  ;;  %5406 = vmatprep.subr.mxu0 %v4912_v15  ;;  %v5882_v15 = vsel %vm5876_vm6, %v12080_v50, %v12084_v4 }
 0x121   :  { %5477 = vmatprep.subr.mxu1 %v4914_v7  ;;  %5298 = vmatprep.mubr.f32.mxu0 %v15357_v60  ;;  %v13563_v57 = vpop.permute.xlu1 %12142  ;;  %v13569_v1 = vpop.permute.xlu0 %12137  ;;  %v12099_v7 = vunpack.i.l.bf16 %v13453_v47  ;;  %v5887_v47 = vsel %vm5876_vm6, %v12094_v17, %v12095_v31 }
 0x122   :  { %11645 = vmatmul.mubr.msk.f32.vlgmr.msra.gmra.mxu0 %vm203_vm1, %v13506_v22  ;;  %5369 = vmatprep.mubr.f32.mxu1 %v15357_v60 }
 0x123   :  { %5407 = vmatpush1.msra.mxu0 %v4911_v35  ;;  %9873 = vrot.lane.b32.xlu1 %v13311_v41, %s12302_s26  ;;  %v12090_v35 = vunpack.i.h.bf16 %v13432_v40  ;;  %v5883_v40 = vsel %vm5876_vm6, %v12084_v4, %v12085_v38  ;;  %v5888_v16 = vsel %vm5876_vm6, %v12095_v31, %v12099_v7  ;;  %v5889_v62 = vsel %vm5876_vm6, %v12099_v7, %v12100_v52 }
 0x124   :  { %9877 = vrot.lane.b32.xlu0 %v13233_v12, %s12302_s26  ;;  %11646 = vmatmul.mubr.msk.f32.vlgmr.msra.gmra.mxu1 %vm203_vm1, %v13506_v22 }
 0x125   :  { %5478 = vmatpush1.msra.mxu1 %v4913_v46  ;;  %5548 = vmatprep.subr.mxu0 %v4916_v34  ;;  %v5886_v51 = vsel %vm5876_vm6, %v12090_v35, %v12094_v17 }
 0x126   :  { %5619 = vmatprep.subr.mxu1 %v4918_v11  ;;  %5440 = vmatprep.mubr.f32.mxu0 %v15357_v60  ;;  %v12109_v11 = vunpack.i.l.bf16 %v13471_v43 }
 0x127   :  { %11647 = vmatmul.mubr.msk.f32.vlgmr.msra.gmra.mxu0 %vm203_vm1, %v13506_v22  ;;  %5511 = vmatprep.mubr.f32.mxu1 %v15357_v60  ;;  %v13588_v23 = vpop.permute.xlu1 %12152 }
 0x128   :  { %5549 = vmatpush1.msra.mxu0 %v4915_v54  ;;  %9881 = vrot.lane.b32.xlu1 %v13356_v25, %s12302_s26  ;;  %v13593_v58 = vpop.permute.xlu0 %12147  ;;  %v12105_v54 = vunpack.i.h.bf16 %v13473_v44  ;;  %v5890_v44 = vsel %vm5876_vm6, %v12100_v52, %v12104_v8 }
 0x129   :  { %9879 = vrot.lane.b32.xlu0 %v13283_v55, %s12302_s26  ;;  %11648 = vmatmul.mubr.msk.f32.vlgmr.msra.gmra.mxu1 %vm203_vm1, %v13506_v22 }
 0x12a   :  { %5620 = vmatpush1.msra.mxu1 %v4917_v39  ;;  %5690 = vmatprep.subr.mxu0 %v4920_v5  ;;  %v5885_v39 = vsel %vm5876_vm6, %v12089_v53, %v12090_v35  ;;  %v5896_v53 = vsel %vm5876_vm6, %v12115_v61, %v12119_v27  ;;  %v12130_v35 = vunpack.i.h.bf16 %v13543_v28 }
 0x12b   :  { %5761 = vmatprep.subr.mxu1 %v4922_v30  ;;  %5582 = vmatprep.mubr.f32.mxu0 %v15357_v60  ;;  %v5892_v30 = vsel %vm5876_vm6, %v12105_v54, %v12109_v11 }
 0x12c   :  { %11649 = vmatmul.mubr.msk.f32.vlgmr.msra.gmra.mxu0 %vm203_vm1, %v13506_v22  ;;  %5653 = vmatprep.mubr.f32.mxu1 %v15357_v60  ;;  %v13612_v10 = vpop.permute.xlu1 %12162 }
 0x12d   :  { %5691 = vmatpush1.msra.mxu0 %v4919_v14  ;;  %9885 = vrot.lane.b32.xlu1 %v15357_v60, %s12302_s26  ;;  %v13617_v0 = vpop.permute.xlu0 %12157  ;;  %v12110_v14 = vunpack.i.h.bf16 %v13471_v43  ;;  %v5891_v43 = vsel %vm5876_vm6, %v12104_v8, %v12105_v54  ;;  %v12139_v8 = vunpack.i.l.bf16 %v13569_v1  ;;  %v12134_v54 = vunpack.i.l.bf16 %v13541_v56 }
 0x12e   :  { %9883 = vrot.lane.b32.xlu0 %v13346_v9, %s12302_s26  ;;  %11650 = vmatmul.mubr.msk.f32.vlgmr.msra.gmra.mxu1 %vm203_vm1, %v13506_v22 }
 0x12f   :  { %5762 = vmatpush1.msra.mxu1 %v4921_v19  ;;  %5958 = vmatprep.subr.mxu0 %v5878_v6  ;;  %v5894_v4 = vsel %vm5876_vm6, %v12110_v14, %v12114_v49 }
 0x130   :  { %6029 = vmatprep.subr.mxu1 %v5880_v48  ;;  %5724 = vmatprep.mubr.f32.mxu0 %v15357_v60  ;;  %v12124_v48 = vunpack.i.l.bf16 %v13521_v45 }
 0x131   :  { %11651 = vmatmul.mubr.msk.f32.vlgmr.msra.gmra.mxu0 %vm203_vm1, %v13506_v22  ;;  %5795 = vmatprep.mubr.f32.mxu1 %v15357_v60  ;;  %v13640_v26 = vpop.permute.xlu1 %12172 }
 0x132   :  { %5959 = vmatpush1.msra.mxu0 %v5877_v37  ;;  %10122 = vrot.lane.b32.xlu1 %v13233_v12, %s12303_s27  ;;  %v13647_v32 = vpop.permute.xlu0 %12167  ;;  %v12125_v37 = vunpack.i.h.bf16 %v13521_v45 }
 0x133   :  { %10120 = vrot.lane.b32.xlu0 %v13268_v18, %s12303_s27  ;;  %11652 = vmatmul.mubr.msk.f32.vlgmr.msra.gmra.mxu1 %vm203_vm1, %v13506_v22 }
 0x134   :  { %6030 = vmatpush1.msra.mxu1 %v5879_v29  ;;  %6100 = vmatprep.subr.mxu0 %v5882_v15  ;;  %v12120_v29 = vunpack.i.h.bf16 %v13494_v63  ;;  %v5893_v15 = vsel %vm5876_vm6, %v12109_v11, %v12110_v14  ;;  %v5895_v63 = vsel %vm5876_vm6, %v12114_v49, %v12115_v61  ;;  %v12149_v61 = vunpack.i.l.bf16 %v13593_v58 }
 0x135   :  { %6171 = vmatprep.subr.mxu1 %v5884_v20  ;;  %5992 = vmatprep.mubr.f32.mxu0 %v15357_v60 }
 0x136   :  { %11653 = vmatmul.mubr.msk.f32.vlgmr.msra.gmra.mxu0 %vm203_vm1, %v13645_v59  ;;  %6063 = vmatprep.mubr.f32.mxu1 %v15357_v60  ;;  %v13665_v46 = vpop.permute.xlu1 %12182  ;;  %v5898_v31 = vsel %vm5876_vm6, %v12120_v29, %v12124_v48 }
 0x137   :  { %6101 = vmatpush1.msra.mxu0 %v5881_v33  ;;  %10124 = vrot.lane.b32.xlu1 %v13283_v55, %s12303_s27  ;;  %v13669_v34 = vpop.permute.xlu0 %12177  ;;  %v12129_v33 = vunpack.i.l.bf16 %v13543_v28  ;;  %v5897_v28 = vsel %vm5876_vm6, %v12119_v27, %v12120_v29 }
 0x138   :  { %10118 = vrot.lane.b32.xlu0 %v13311_v41, %s12303_s27  ;;  %11654 = vmatmul.mubr.msk.f32.vlgmr.msra.gmra.mxu1 %vm203_vm1, %v13645_v59 }
 0x139   :  { %6172 = vmatpush1.msra.mxu1 %v5883_v40  ;;  %6242 = vmatprep.subr.mxu0 %v5886_v51  ;;  %v5900_v40 = vsel %vm5876_vm6, %v12125_v37, %v13519_v13  ;;  %v12135_v13 = vunpack.i.h.bf16 %v13541_v56  ;;  %v12144_v56 = vunpack.i.l.bf16 %v13563_v57 }
 0x13a   :  { %6313 = vmatprep.subr.mxu1 %v5888_v16  ;;  %6134 = vmatprep.mubr.f32.mxu0 %v15357_v60 }
 0x13b   :  { %11655 = vmatmul.mubr.msk.f32.vlgmr.msra.gmra.mxu0 %vm203_vm1, %v13645_v59  ;;  %6205 = vmatprep.mubr.f32.mxu1 %v15357_v60  ;;  %v13687_v5 = vpop.permute.xlu1 %12187  ;;  %v6858_v27 = vsel %vm6854_vm7, %v12135_v13, %v12139_v8  ;;  %v6857_v29 = vsel %vm6854_vm7, %v12130_v35, %v12135_v13  ;;  %v12155_v13 = vunpack.i.h.bf16 %v13588_v23 }
 0x13c   :  { %6243 = vmatpush1.msra.mxu0 %v5885_v39  ;;  %10128 = vrot.lane.b32.xlu1 %v13346_v9, %s12303_s27  ;;  %v13691_v42 = vpop.permute.xlu0 %6852 }
 0x13d   :  { %10126 = vrot.lane.b32.xlu0 %v13356_v25, %s12303_s27  ;;  %11656 = vmatmul.mubr.msk.f32.vlgmr.msra.gmra.mxu1 %vm203_vm1, %v13645_v59 }
 0x13e   :  { %6314 = vmatpush1.msra.mxu1 %v5887_v47  ;;  %6384 = vmatprep.subr.mxu0 %v5890_v44  ;;  %v5899_v47 = vsel %vm5876_vm6, %v12124_v48, %v12125_v37  ;;  %v6856_v44 = vsel %vm6854_vm7, %v12129_v33, %v12130_v35  ;;  %v13803_v48 = vunpack.c.h.bf16 %v13630_v36  ;;  %v12150_v36 = vunpack.i.h.bf16 %v13593_v58 }
 0x13f   :  { %6455 = vmatprep.subr.mxu1 %v5892_v30  ;;  %6276 = vmatprep.mubr.f32.mxu0 %v15357_v60  ;;  %v12140_v30 = vunpack.i.h.bf16 %v13569_v1  ;;  %v6855_v1 = vsel %vm6854_vm7, %v12134_v54, %v12129_v33  ;;  %v12159_v33 = vunpack.i.l.bf16 %v13617_v0 }
 0x140   :  { %11657 = vmatmul.mubr.msk.f32.vlgmr.msra.gmra.mxu0 %vm203_vm1, %v13645_v59  ;;  %6347 = vmatprep.mubr.f32.mxu1 %v15357_v60  ;;  %v13709_v19 = vpop.permute.xlu1 %12197  ;;  %15374 = vst [vmem:[#allocation10_spill] sm:$0xff] %v13803_v48 }
 0x141   :  { %6385 = vmatpush1.msra.mxu0 %v5889_v62  ;;  %10365 = vrot.lane.b32.xlu1 %v13268_v18, %s12304_s30  ;;  %v13713_v6 = vpop.permute.xlu0 %12192  ;;  %v13715_v2 = vpop.f32.mrf.mxu0  ;;  %v6859_v58 = vsel %vm6854_vm7, %v12139_v8, %v12140_v30 }
 0x142   :  { %10130 = vrot.lane.b32.xlu0 %v15357_v60, %s12303_s27  ;;  %11658 = vmatmul.mubr.msk.f32.vlgmr.msra.gmra.mxu1 %vm203_vm1, %v13645_v59 }
 0x143   :  { %6456 = vmatpush1.msra.mxu1 %v5891_v43  ;;  %6526 = vmatprep.subr.mxu0 %v5894_v4  ;;  %v13725_v38 = vpop.f32.mrf.mxu1  ;;  %v13727_v50 = vpop.f32.mrf.mxu0  ;;  %v12145_v4 = vunpack.i.h.bf16 %v13563_v57  ;;  %v6860_v57 = vsel %vm6854_vm7, %v12140_v30, %v12144_v56 }
 0x144   :  { %6597 = vmatprep.subr.mxu1 %v5896_v53  ;;  %6418 = vmatprep.mubr.f32.mxu0 %v15357_v60 }
 0x145   :  { %11659 = vmatmul.mubr.msk.f32.vlgmr.msra.gmra.mxu0 %vm203_vm1, %v13645_v59  ;;  %6489 = vmatprep.mubr.f32.mxu1 %v15357_v60  ;;  %v13736_v17 = vpop.permute.xlu1 %12207  ;;  %v13738_v20 = vpop.f32.mrf.mxu1  ;;  %v6861_v8 = vsel %vm6854_vm7, %v12144_v56, %v12145_v4 }
 0x146   :  { %6527 = vmatpush1.msra.mxu0 %v5893_v15  ;;  %10363 = vrot.lane.b32.xlu1 %v13311_v41, %s12304_s30  ;;  %v13742_v45 = vpop.permute.xlu0 %12202  ;;  %v13744_v7 = vpop.f32.mrf.mxu0 }
 0x147   :  { %10367 = vrot.lane.b32.xlu0 %v13233_v12, %s12304_s30  ;;  %11660 = vmatmul.mubr.msk.f32.vlgmr.msra.gmra.mxu1 %vm203_vm1, %v13645_v59 }
 0x148   :  { %6598 = vmatpush1.msra.mxu1 %v5895_v63  ;;  %6668 = vmatprep.subr.mxu0 %v5898_v31  ;;  %v13756_v51 = vpop.f32.mrf.mxu0  ;;  %v12154_v63 = vunpack.i.l.bf16 %v13588_v23  ;;  %v6862_v31 = vsel %vm6854_vm7, %v12145_v4, %v12149_v61  ;;  %v12164_v23 = vunpack.i.l.bf16 %v13612_v10 }
 0x149   :  { %6739 = vmatprep.subr.mxu1 %v5900_v40  ;;  %6560 = vmatprep.mubr.f32.mxu0 %v15357_v60  ;;  %v13760_v16 = vpop.f32.mrf.mxu1 }
 0x14a   :  { %11661 = vmatmul.mubr.msk.f32.vlgmr.msra.gmra.mxu0 %vm203_vm1, %v13645_v59  ;;  %6631 = vmatprep.mubr.f32.mxu1 %v15357_v60  ;;  %v13766_v11 = vpop.permute.xlu1 %12217 }
 0x14b   :  { %6669 = vmatpush1.msra.mxu0 %v5897_v28  ;;  %10371 = vrot.lane.b32.xlu1 %v13356_v25, %s12304_s30  ;;  %v13772_v52 = vpop.permute.xlu0 %12212  ;;  %v13774_v39 = vpop.f32.mrf.mxu1 }
 0x14c   :  { %10369 = vrot.lane.b32.xlu0 %v13283_v55, %s12304_s30  ;;  %11662 = vmatmul.mubr.msk.f32.vlgmr.msra.gmra.mxu1 %vm203_vm1, %v13645_v59  ;;  %v13782_v49 = vpop.f32.mrf.mxu0 }
 0x14d   :  { %6740 = vmatpush1.msra.mxu1 %v5899_v47  ;;  %6936 = vmatprep.subr.mxu0 %v6856_v44  ;;  %v6864_v44 = vsel %vm6854_vm7, %v12150_v36, %v12154_v63 }
 0x14e   :  { %7007 = vmatprep.subr.mxu1 %v6858_v27  ;;  %6702 = vmatprep.mubr.f32.mxu0 %v15357_v60  ;;  %v13789_v14 = vpop.f32.mrf.mxu1  ;;  %v13791_v62 = vpop.f32.mrf.mxu0  ;;  %v12160_v27 = vunpack.i.h.bf16 %v13617_v0  ;;  %v6863_v0 = vsel %vm6854_vm7, %v12149_v61, %v12150_v36  ;;  %v6865_v61 = vsel %vm6854_vm7, %v12154_v63, %v12155_v13 }
 0x14f   :  { %15373 = vst [vmem:[#allocation9_spill] sm:$0xff] %v13791_v62  ;;  %11663 = vmatmul.mubr.msk.f32.vlgmr.msra.gmra.mxu0 %vm203_vm1, %v13645_v59  ;;  %6773 = vmatprep.mubr.f32.mxu1 %v15357_v60  ;;  %v13797_v43 = vpop.permute.xlu1 %12227  ;;  %v15329_v62 = vunpack.i.l.bf16 %v13709_v19 }
 0x150   :  { %6937 = vmatpush1.msra.mxu0 %v6855_v1  ;;  %10375 = vrot.lane.b32.xlu1 %v15357_v60, %s12304_s30  ;;  %v13805_v53 = vpop.permute.xlu0 %12222  ;;  %v13807_v37 = vpop.f32.mrf.mxu1  ;;  %v6866_v1 = vsel %vm6854_vm7, %v12155_v13, %v12159_v33  ;;  %v6868_v36 = vsel %vm6854_vm7, %v12160_v27, %v12164_v23 }
 0x151   :  { %15375 = vst [vmem:[#allocation11_spill] sm:$0xff] %v13807_v37  ;;  %10373 = vrot.lane.b32.xlu0 %v13346_v9, %s12304_s30  ;;  %11664 = vmatmul.mubr.msk.f32.vlgmr.msra.gmra.mxu1 %vm203_vm1, %v13645_v59  ;;  %v13815_v15 = vpop.f32.mrf.mxu0 }
 0x152   :  { %7008 = vmatpush1.msra.mxu1 %v6857_v29  ;;  %7078 = vmatprep.subr.mxu0 %v6860_v57  ;;  %v12169_v29 = vunpack.i.l.bf16 %v13647_v32 }
 0x153   :  { %7149 = vmatprep.subr.mxu1 %v6862_v31  ;;  %6970 = vmatprep.mubr.f32.mxu0 %v15357_v60  ;;  %v13822_v40 = vpop.f32.mrf.mxu1  ;;  %v13824_v35 = vpop.f32.mrf.mxu0  ;;  %v12165_v31 = vunpack.i.h.bf16 %v13612_v10  ;;  %v12174_v10 = vunpack.i.l.bf16 %v13640_v26 }
 0x154   :  { %15376 = vst [vmem:[#allocation12_spill] sm:$0xff] %v13824_v35  ;;  %11665 = vmatmul.mubr.msk.f32.vlgmr.msra.gmra.mxu0 %vm203_vm1, %v13803_v48  ;;  %7041 = vmatprep.mubr.f32.mxu1 %v15357_v60  ;;  %v13830_v28 = vpop.permute.xlu1 %12237 }
 0x155   :  { %7079 = vmatpush1.msra.mxu0 %v6859_v58  ;;  %10612 = vrot.lane.b32.xlu1 %v13233_v12, %s12305_s7  ;;  %v13835_v54 = vpop.permute.xlu0 %12232  ;;  %v13837_v47 = vpop.f32.mrf.mxu1 }
 0x156   :  { %15377 = vst [vmem:[#allocation13_spill] sm:$0xff] %v13837_v47  ;;  %10610 = vrot.lane.b32.xlu0 %v13268_v18, %s12305_s7  ;;  %11666 = vmatmul.mubr.msk.f32.vlgmr.msra.gmra.mxu1 %vm203_vm1, %v13803_v48  ;;  %v13845_v30 = vpop.f32.mrf.mxu0 }
 0x157   :  { %7150 = vmatpush1.msra.mxu1 %v6861_v8  ;;  %7220 = vmatprep.subr.mxu0 %v6864_v44 }
 0x158   :  { %7291 = vmatprep.subr.mxu1 %v6866_v1  ;;  %7112 = vmatprep.mubr.f32.mxu0 %v15357_v60  ;;  %v13852_v57 = vpop.f32.mrf.mxu1  ;;  %v13854_v56 = vpop.f32.mrf.mxu0  ;;  %v12170_v1 = vunpack.i.h.bf16 %v13647_v32  ;;  %v6867_v32 = vsel %vm6854_vm7, %v12159_v33, %v12160_v27  ;;  %v6869_v33 = vsel %vm6854_vm7, %v12164_v23, %v12165_v31 }
 0x159   :  { %15378 = vst [vmem:[#allocation14_spill] sm:$0xff] %v13854_v56  ;;  %11667 = vmatmul.mubr.msk.f32.vlgmr.msra.gmra.mxu0 %vm203_vm1, %v13803_v48  ;;  %7183 = vmatprep.mubr.f32.mxu1 %v15357_v60  ;;  %v13860_v4 = vpop.permute.xlu1 %7830 }
 0x15a   :  { %7221 = vmatpush1.msra.mxu0 %v6863_v0  ;;  %10614 = vrot.lane.b32.xlu1 %v13283_v55, %s12305_s7  ;;  %v13865_v58 = vpop.permute.xlu0 %12242  ;;  %v13867_v8 = vpop.f32.mrf.mxu1  ;;  %v6870_v0 = vsel %vm6854_vm7, %v12165_v31, %v12169_v29  ;;  %v6872_v27 = vsel %vm6854_vm7, %v12170_v1, %v12174_v10 }
 0x15b   :  { %15379 = vst [vmem:[#allocation15_spill] sm:$0xff] %v13867_v8  ;;  %10608 = vrot.lane.b32.xlu0 %v13311_v41, %s12305_s7  ;;  %11668 = vmatmul.mubr.msk.f32.vlgmr.msra.gmra.mxu1 %vm203_vm1, %v13803_v48  ;;  %v13875_v44 = vpop.f32.mrf.mxu0  ;;  %v12179_v8 = vunpack.i.l.bf16 %v13669_v34 }
 0x15c   :  { %7292 = vmatpush1.msra.mxu1 %v6865_v61  ;;  %7362 = vmatprep.subr.mxu0 %v6868_v36  ;;  %v13880_v59 = vpop.f32.mrf.mxu1  ;;  %v12175_v36 = vunpack.i.h.bf16 %v13640_v26  ;;  %v12184_v26 = vunpack.i.l.bf16 %v13665_v46 }
 0x15d   :  { %7433 = vmatprep.subr.mxu1 %v6870_v0  ;;  %7254 = vmatprep.mubr.f32.mxu0 %v15357_v60  ;;  %v13884_v63 = vpop.f32.mrf.mxu0 }
 0x15e   :  { %15380 = vst [vmem:[#allocation16_spill] sm:$0xff] %v13884_v63  ;;  %11669 = vmatmul.mubr.msk.f32.vlgmr.msra.gmra.mxu0 %vm203_vm1, %v13803_v48  ;;  %7325 = vmatprep.mubr.f32.mxu1 %v15357_v60  ;;  %v13890_v13 = vpop.permute.xlu1 %8935  ;;  %v13892_v61 = vpop.f32.mrf.mxu1  ;;  %v6874_v22 = vsel %vm6854_vm7, %v12175_v36, %v12179_v8 }
 0x15f   :  { %7363 = vmatpush1.msra.mxu0 %v6867_v32  ;;  %10618 = vrot.lane.b32.xlu1 %v13346_v9, %s12305_s7  ;;  %v13897_v0 = vpop.permute.xlu0 %8933  ;;  %v1128_v63 = vpop.f32.mrf.mxu0  ;;  %v12180_v32 = vunpack.i.h.bf16 %v13669_v34  ;;  %v6871_v34 = vsel %vm6854_vm7, %v12169_v29, %v12170_v1 }
 0x160   :  { %10616 = vrot.lane.b32.xlu0 %v13356_v25, %s12305_s7  ;;  %11670 = vmatmul.mubr.msk.f32.vlgmr.msra.gmra.mxu1 %vm203_vm1, %v13803_v48  ;;  %v13906_v56 = vadd.f32 %v1128_v63, %v13715_v2  ;;  %v12185_v63 = vunpack.i.h.bf16 %v13665_v46  ;;  %v12190_v46 = vunpack.i.h.bf16 %v13687_v5 }
 0x161   :  { %7434 = vmatpush1.msra.mxu1 %v6869_v33  ;;  %7504 = vmatprep.subr.mxu0 %v6872_v27  ;;  %v1199_v47 = vpop.f32.mrf.mxu1  ;;  %v13911_v35 = vpop.f32.mrf.mxu0  ;;  %v6876_v29 = vsel %vm6854_vm7, %v12180_v32, %v12184_v26  ;;  %v12189_v33 = vunpack.i.l.bf16 %v13687_v5  ;;  %v6875_v5 = vsel %vm6854_vm7, %v12179_v8, %v12180_v32 }
 0x162   :  { %7575 = vmatprep.subr.mxu1 %v6874_v22  ;;  %7396 = vmatprep.mubr.f32.mxu0 %v15357_v60  ;;  %v13915_v23 = vadd.f32 %v1199_v47, %v13725_v38  ;;  %v6873_v47 = vsel %vm6854_vm7, %v12174_v10, %v12175_v36  ;;  %v6878_v27 = vsel %vm6854_vm7, %v12185_v63, %v13691_v42  ;;  %v12195_v10 = vunpack.i.h.bf16 %v13713_v6 }
 0x163   :  { %11671 = vmatmul.mubr.msk.f32.vlgmr.msra.gmra.mxu0 %vm203_vm1, %v13803_v48  ;;  %7467 = vmatprep.mubr.f32.mxu1 %v15357_v60  ;;  %v13921_v2 = vpop.permute.xlu1 %8937  ;;  %v13923_v31 = vpop.f32.mrf.mxu1  ;;  %v6877_v8 = vsel %vm6854_vm7, %v12184_v26, %v12185_v63  ;;  %v7834_v32 = vsel %vm7832_vm8, %v12189_v33, %v12190_v46  ;;  %v12209_v26 = vunpack.i.l.bf16 %v13736_v17 }
 0x164   :  { %7505 = vmatpush1.msra.mxu0 %v6871_v34  ;;  %10855 = vrot.lane.b32.xlu1 %v13268_v18, %s12306_s16  ;;  %v13928_v22 = vpop.permute.xlu0 %8931  ;;  %v1270_v38 = vpop.f32.mrf.mxu0 }
 0x165   :  { %10620 = vrot.lane.b32.xlu0 %v15357_v60, %s12305_s7  ;;  %11672 = vmatmul.mubr.msk.f32.vlgmr.msra.gmra.mxu1 %vm203_vm1, %v13803_v48  ;;  %v13937_v1 = vadd.f32 %v1270_v38, %v13744_v7  ;;  %v12194_v38 = vunpack.i.l.bf16 %v13713_v6  ;;  %v12204_v6 = vunpack.i.l.bf16 %v13742_v45 }
 0x166   :  { %7576 = vmatpush1.msra.mxu1 %v6873_v47  ;;  %7646 = vmatprep.subr.mxu0 %v6876_v29  ;;  %v1341_v34 = vpop.f32.mrf.mxu1  ;;  %v13943_v37 = vpop.f32.mrf.mxu0 }
 0x167   :  { %7717 = vmatprep.subr.mxu1 %v6878_v27  ;;  %7538 = vmatprep.mubr.f32.mxu0 %v15357_v60  ;;  %v13949_v7 = vadd.f32 %v1341_v34, %v13760_v16  ;;  %v7836_v27 = vsel %vm7832_vm8, %v12195_v10, %v15329_v62  ;;  %v31_v34 = vld [vmem:[%s15300_s1 + $0x20] sm:$0xf] }
 0x168   :  { %11673 = vmatmul.mubr.msk.f32.vlgmr.msra.gmra.mxu0 %vm203_vm1, %v13803_v48  ;;  %7609 = vmatprep.mubr.f32.mxu1 %v15357_v60  ;;  %v13955_v42 = vpop.permute.xlu1 %8941  ;;  %v13957_v36 = vpop.f32.mrf.mxu1 }
 0x169   :  { %15381 = vst [vmem:[#allocation17_spill] sm:$0xff] %v13957_v36  ;;  %7647 = vmatpush1.msra.mxu0 %v6875_v5  ;;  %10853 = vrot.lane.b32.xlu1 %v13311_v41, %s12306_s16  ;;  %v13962_v47 = vpop.permute.xlu0 %8939  ;;  %v1412_v16 = vpop.f32.mrf.mxu0  ;;  %v12219_v36 = vunpack.i.l.bf16 %v13766_v11 }
 0x16a   :  { %10857 = vrot.lane.b32.xlu0 %v13233_v12, %s12306_s16  ;;  %11674 = vmatmul.mubr.msk.f32.vlgmr.msra.gmra.mxu1 %vm203_vm1, %v13803_v48  ;;  %v13971_v29 = vadd.f32 %v1412_v16, %v13782_v49  ;;  %v12205_v49 = vunpack.i.h.bf16 %v13742_v45  ;;  %v12200_v16 = vunpack.i.h.bf16 %v13709_v19  ;;  %v13999_v45 = vunpack.c.l.bf16 %v31_v34 }
 0x16b   :  { %7718 = vmatpush1.msra.mxu1 %v6877_v8  ;;  %7914 = vmatprep.subr.mxu0 %v7834_v32  ;;  %v1483_v5 = vpop.f32.mrf.mxu1  ;;  %v13980_v24 = vpop.f32.mrf.mxu0  ;;  %v7833_v8 = vsel %vm7832_vm8, %v12194_v38, %v12189_v33  ;;  %v7835_v33 = vsel %vm7832_vm8, %v12190_v46, %v12195_v10  ;;  %v15385_v10 = vunpack.i.l.bf16 %v13709_v19 }
 0x16c   :  { %15382 = vst [vmem:[#allocation18_spill] sm:$0xff] %v13980_v24  ;;  %7985 = vmatprep.subr.mxu1 %v7836_v27  ;;  %7680 = vmatprep.mubr.f32.mxu0 %v15357_v60  ;;  %v13986_v63 = vadd.f32 %v1483_v5, %v13789_v14  ;;  %v7838_v38 = vsel %vm7832_vm8, %v12200_v16, %v12204_v6 }
 0x16d   :  { %11675 = vmatmul.mubr.msk.f32.vlgmr.msra.gmra.mxu0 %vm203_vm1, %v13803_v48  ;;  %7751 = vmatprep.mubr.f32.mxu1 %v15357_v60  ;;  %v13993_v32 = vpop.permute.xlu1 %9385  ;;  %v13995_v62 = vpop.f32.mrf.mxu1  ;;  %v7840_v34 = vsel %vm7832_vm8, %v12205_v49, %v12209_v26  ;;  %v7839_v19 = vsel %vm7832_vm8, %v12204_v6, %v12205_v49 }
 0x16e   :  { %15383 = vst [vmem:[#allocation19_spill] sm:$0xff] %v13995_v62  ;;  %7915 = vmatpush1.msra.mxu0 %v7833_v8  ;;  %10861 = vrot.lane.b32.xlu1 %v13356_v25, %s12306_s16  ;;  %v14001_v14 = vpop.permute.xlu0 %8943  ;;  %v1554_v27 = vpop.f32.mrf.mxu0  ;;  %v12214_v8 = vunpack.i.l.bf16 %v13772_v52 }
 0x16f   :  { %10859 = vrot.lane.b32.xlu0 %v13283_v55, %s12306_s16  ;;  %11676 = vmatmul.mubr.msk.f32.vlgmr.msra.gmra.mxu1 %vm203_vm1, %v13803_v48  ;;  %v14010_v5 = vadd.f32 %v1554_v27, %v13815_v15  ;;  %v12215_v48 = vunpack.i.h.bf16 %v13772_v52  ;;  %v12210_v15 = vunpack.i.h.bf16 %v13736_v17  ;;  %v7837_v27 = vsel %vm7832_vm8, %v15385_v10, %v12200_v16 }
 0x170   :  { %7986 = vmatpush1.msra.mxu1 %v7835_v33  ;;  %8056 = vmatprep.subr.mxu0 %v7838_v38  ;;  %v1625_v62 = vpop.f32.mrf.mxu1  ;;  %v14014_v24 = vpop.f32.mrf.mxu0  ;;  %v12225_v10 = vunpack.i.h.bf16 %v13805_v53 }
 0x171   :  { %15384 = vst [vmem:[#allocation20_spill] sm:$0xff] %v14014_v24  ;;  %8127 = vmatprep.subr.mxu1 %v7840_v34  ;;  %7948 = vmatprep.mubr.f32.mxu0 %v15357_v60  ;;  %v14020_v46 = vadd.f32 %v1625_v62, %v13822_v40  ;;  %v12224_v40 = vunpack.i.l.bf16 %v13805_v53  ;;  %v7842_v16 = vsel %vm7832_vm8, %v12210_v15, %v12214_v8  ;;  %v12229_v34 = vunpack.i.l.bf16 %v13797_v43 }
 0x172   :  { %11677 = vmatmul.mubr.msk.f32.vlgmr.msra.gmra.mxu0 %vm203_vm1, %v13999_v45  ;;  %8019 = vmatprep.mubr.f32.mxu1 %v15357_v60  ;;  %v14029_v33 = vpop.permute.xlu1 %9383  ;;  %v14031_v52 = vpop.f32.mrf.mxu1  ;;  %v12220_v24 = vunpack.i.h.bf16 %v13766_v11  ;;  %v7843_v11 = vsel %vm7832_vm8, %v12214_v8, %v12215_v48 }
 0x173   :  { %15386 = vst [vmem:[#allocation21_spill] sm:$0xff] %v14031_v52  ;;  %8057 = vmatpush1.msra.mxu0 %v7837_v27  ;;  %10865 = vrot.lane.b32.xlu1 %v15357_v60, %s12306_s16  ;;  %v14035_v62 = vpop.permute.xlu0 %9387  ;;  %v1696_v17 = vpop.f32.mrf.mxu0  ;;  %v7844_v27 = vsel %vm7832_vm8, %v12215_v48, %v12219_v36 }
 0x174   :  { %10863 = vrot.lane.b32.xlu0 %v13346_v9, %s12306_s16  ;;  %11678 = vmatmul.mubr.msk.f32.vlgmr.msra.gmra.mxu1 %vm203_vm1, %v13999_v45  ;;  %v14045_v38 = vadd.f32 %v1696_v17, %v13845_v30  ;;  %v7841_v30 = vsel %vm7832_vm8, %v12209_v26, %v12210_v15  ;;  %v12234_v17 = vunpack.i.l.bf16 %v13835_v54  ;;  %v12239_v26 = vunpack.i.l.bf16 %v13830_v28 }
 0x175   :  { %8128 = vmatpush1.msra.mxu1 %v7839_v19  ;;  %8198 = vmatprep.subr.mxu0 %v7842_v16  ;;  %v14050_v52 = vpop.f32.mrf.mxu0  ;;  %v7846_v19 = vsel %vm7832_vm8, %v12220_v24, %v12224_v40  ;;  %v12235_v15 = vunpack.i.h.bf16 %v13835_v54  ;;  %v7845_v54 = vsel %vm7832_vm8, %v12219_v36, %v12220_v24  ;;  %v12245_v24 = vunpack.i.h.bf16 %v13865_v58 }
 0x176   :  { %8269 = vmatprep.subr.mxu1 %v7844_v27  ;;  %8090 = vmatprep.mubr.f32.mxu0 %v15357_v60  ;;  %v1767_v6 = vpop.f32.mrf.mxu1 }
 0x177   :  { %11679 = vmatmul.mubr.msk.f32.vlgmr.msra.gmra.mxu0 %vm203_vm1, %v13999_v45  ;;  %8161 = vmatprep.mubr.f32.mxu1 %v15357_v60  ;;  %v14058_v53 = vpop.permute.xlu1 %9391  ;;  %v14061_v49 = vadd.f32 %v1767_v6, %v13852_v57  ;;  %v7848_v57 = vsel %vm7832_vm8, %v12225_v10, %v12229_v34  ;;  %v7852_v36 = vsel %vm7832_vm8, %v12235_v15, %v12239_v26 }
 0x178   :  { %8199 = vmatpush1.msra.mxu0 %v7841_v30  ;;  %11680 = vmatmul.mubr.msk.f32.vlgmr.msra.gmra.mxu1 %vm203_vm1, %v13999_v45  ;;  %v14068_v16 = vpop.permute.xlu0 %9389  ;;  %v14070_v27 = vpop.f32.mrf.mxu1  ;;  %v12230_v30 = vunpack.i.h.bf16 %v13797_v43  ;;  %v7847_v43 = vsel %vm7832_vm8, %v12224_v40, %v12225_v10 }
 0x179   :  { %15387 = vst [vmem:[#allocation22_spill] sm:$0xff] %v14070_v27  ;;  %8270 = vmatpush1.msra.mxu1 %v7843_v11  ;;  %8340 = vmatprep.subr.mxu0 %v7846_v19  ;;  %v1838_v6 = vpop.f32.mrf.mxu0  ;;  %v12244_v19 = vunpack.i.l.bf16 %v13865_v58  ;;  %v12240_v27 = vunpack.i.h.bf16 %v13830_v28  ;;  %v7851_v28 = vsel %vm7832_vm8, %v12234_v17, %v12235_v15 }
 0x17a   :  { %8411 = vmatprep.subr.mxu1 %v7848_v57  ;;  %8232 = vmatprep.mubr.f32.mxu0 %v15357_v60  ;;  %v14078_v48 = vadd.f32 %v1838_v6, %v13875_v44  ;;  %v7850_v44 = vsel %vm7832_vm8, %v12230_v30, %v12234_v17 }
 0x17b   :  { %11681 = vmatmul.mubr.msk.f32.vlgmr.msra.gmra.mxu0 %vm203_vm1, %v13999_v45  ;;  %8303 = vmatprep.mubr.f32.mxu1 %v15357_v60  ;;  %v1909_v8 = vpop.f32.mrf.mxu1  ;;  %v14084_v11 = vpop.f32.mrf.mxu0  ;;  %v7854_v10 = vsel %vm7832_vm8, %v12240_v27, %v12244_v19  ;;  %v7853_v15 = vsel %vm7832_vm8, %v12239_v26, %v12240_v27 }
 0x17c   :  { %15388 = vst [vmem:[#allocation23_spill] sm:$0xff] %v14084_v11  ;;  %8341 = vmatpush1.msra.mxu0 %v7845_v54  ;;  %11682 = vmatmul.mubr.msk.f32.vlgmr.msra.gmra.mxu1 %vm203_vm1, %v13999_v45  ;;  %v14091_v57 = vpop.permute.xlu1 %9395  ;;  %v14094_v6 = vadd.f32 %v1909_v8, %v13880_v59  ;;  %v7849_v59 = vsel %vm7832_vm8, %v12229_v34, %v12230_v30 }
 0x17d   :  { %8412 = vmatpush1.msra.mxu1 %v7847_v43  ;;  %8482 = vmatprep.subr.mxu0 %v7850_v44  ;;  %v14098_v11 = vpop.permute.xlu0 %9393  ;;  %v14100_v54 = vpop.f32.mrf.mxu1  ;;  %v7856_v44 = vsel %vm7832_vm8, %v12245_v24, %v13860_v4  ;;  %v8948_v4 = vsel %vm154_vm0, %v13921_v2, %v13962_v47 }
 0x17e   :  { %8553 = vmatprep.subr.mxu1 %v7852_v36  ;;  %8374 = vmatprep.mubr.f32.mxu0 %v15357_v60  ;;  %v2082_v40 = vpop.f32.mrf.mxu0  ;;  %v7855_v36 = vsel %vm7832_vm8, %v12244_v19, %v12245_v24 }
 0x17f   :  { %11683 = vmatmul.mubr.msk.f32.vlgmr.msra.gmra.mxu0 %vm203_vm1, %v13999_v45  ;;  %8445 = vmatprep.mubr.f32.mxu1 %v15357_v60  ;;  %v14109_v58 = vadd.f32 %v2082_v40, %v13906_v56  ;;  %v8946_v40 = vsel %vm154_vm0, %v13897_v0, %v13890_v13 }
 0x180   :  { %8483 = vmatpush1.msra.mxu0 %v7849_v59  ;;  %11684 = vmatmul.mubr.msk.f32.vlgmr.msra.gmra.mxu1 %vm203_vm1, %v13999_v45  ;;  %v2153_v8 = vpop.f32.mrf.mxu1  ;;  %v14115_v43 = vpop.f32.mrf.mxu0 }
 0x181   :  { %8554 = vmatpush1.msra.mxu1 %v7851_v28  ;;  %8624 = vmatprep.subr.mxu0 %v7854_v10  ;;  %v14119_v34 = vpop.permute.xlu1 %9632  ;;  %v14122_v56 = vadd.f32 %v2153_v8, %v13915_v23  ;;  %v8950_v28 = vsel %vm154_vm0, %v13955_v42, %v14001_v14  ;;  %v8947_v14 = vsel %vm154_vm0, %v13890_v13, %v13921_v2  ;;  %v15389_v2 = vld [vmem:[#allocation4_spill] sm:$0xff] }
 0x182   :  { %8695 = vmatprep.subr.mxu1 %v7856_v44  ;;  %8516 = vmatprep.mubr.f32.mxu0 %v15357_v60  ;;  %v14125_v30 = vpop.permute.xlu0 %9630  ;;  %v14127_v17 = vpop.f32.mrf.mxu1  ;;  %v8949_v13 = vsel %vm154_vm0, %v13962_v47, %v13955_v42  ;;  %v9400_v47 = vsel %vm1964_vm2, %v14068_v16, %v14058_v53 }
 0x183   :  { %11685 = vmatmul.mubr.msk.f32.vlgmr.msra.gmra.mxu0 %vm203_vm1, %v13999_v45  ;;  %8587 = vmatprep.mubr.f32.mxu1 %v15357_v60  ;;  %v2224_v23 = vpop.f32.mrf.mxu0 }
 0x184   :  { %8625 = vmatpush1.msra.mxu0 %v7853_v15  ;;  %11686 = vmatmul.mubr.msk.f32.vlgmr.msra.gmra.mxu1 %vm203_vm1, %v13999_v45  ;;  %v14143_v59 = vadd.f32 %v2224_v23, %v13937_v1  ;;  %v8945_v1 = vsel %vm154_vm0, %v13928_v22, %v13897_v0 }
 0x185   :  { %8696 = vmatpush1.msra.mxu1 %v7855_v36  ;;  %8987 = vmatprep.subr.mxu0 %v8946_v40  ;;  %v2295_v27 = vpop.f32.mrf.mxu1  ;;  %v14145_v26 = vpop.f32.mrf.mxu0 }
 0x186   :  { %9058 = vmatprep.subr.mxu1 %v8948_v4  ;;  %8658 = vmatprep.mubr.f32.mxu0 %v15357_v60  ;;  %v14151_v19 = vpop.permute.xlu1 %9634  ;;  %v14154_v24 = vadd.f32 %v2295_v27, %v13949_v7 }
 0x187   :  { %11687 = vmatmul.mubr.msk.f32.vlgmr.msra.gmra.mxu0 %vm203_vm1, %v13999_v45  ;;  %8729 = vmatprep.mubr.f32.mxu1 %v15357_v60  ;;  %v14162_v10 = vpop.permute.xlu0 %9628  ;;  %v14164_v8 = vpop.f32.mrf.mxu1 }
 0x188   :  { %8988 = vmatpush1.msra.mxu0 %v8945_v1  ;;  %11688 = vmatmul.mubr.msk.f32.vlgmr.msra.gmra.mxu1 %vm203_vm1, %v13999_v45  ;;  %v2366_v7 = vpop.f32.mrf.mxu0  ;;  %v9397_v1 = vsel %vm1964_vm2, %v14029_v33, %v13993_v32 }
 0x189   :  { %9059 = vmatpush1.msra.mxu1 %v8947_v14  ;;  %9129 = vmatprep.subr.mxu0 %v8950_v28  ;;  %v14172_v0 = vadd.f32 %v2366_v7, %v13971_v29 }
 0x18a   :  { %9021 = vmatprep.mubr.f32.mxu0 %v15357_v60  ;;  %9092 = vmatprep.mubr.f32.mxu1 %v15357_v60  ;;  %v2437_v22 = vpop.f32.mrf.mxu1  ;;  %v14176_v44 = vpop.f32.mrf.mxu0 }
 0x18b   :  { %11689 = vmatmul.mubr.msk.f32.vlgmr.msra.gmra.mxu0 %vm203_vm1, %v15389_v2  ;;  %9200 = vmatprep.subr.mxu1 %v13268_v18  ;;  %v14184_v15 = vpop.permute.xlu1 %9638  ;;  %v14187_v29 = vadd.f32 %v2437_v22, %v13986_v63  ;;  %v9401_v22 = vsel %vm1964_vm2, %v14058_v53, %v14098_v11 }
 0x18c   :  { %9130 = vmatpush1.msra.mxu0 %v8949_v13  ;;  %11690 = vmatmul.mubr.msk.f32.vlgmr.msra.gmra.mxu1 %vm203_vm1, %v15389_v2  ;;  %v14191_v4 = vpop.permute.xlu0 %9636  ;;  %v14193_v23 = vpop.f32.mrf.mxu1 }
 0x18d   :  { %9163 = vmatprep.mubr.f32.mxu0 %v15357_v60  ;;  %9201 = vmatpush1.msra.mxu1 %v13311_v41  ;;  %v2508_v42 = vpop.f32.mrf.mxu0  ;;  %v9398_v41 = vsel %vm1964_vm2, %v13993_v32, %v14035_v62 }
 0x18e   :  { %9271 = vmatprep.subr.mxu0 %v13283_v55  ;;  %9234 = vmatprep.mubr.f32.mxu1 %v15357_v60  ;;  %v14200_v18 = vadd.f32 %v2508_v42, %v14010_v5  ;;  %v15390_v55 = vld [vmem:[#allocation5_spill] sm:$0xff]  ;;  %v1912_v42 = vadd.f32 %v14100_v54, %v13892_v61 }
 0x18f   :  { %11691 = vmatmul.mubr.msk.f32.vlgmr.msra.gmra.mxu0 %vm203_vm1, %v15389_v2  ;;  %9342 = vmatprep.subr.mxu1 %v13346_v9  ;;  %v2579_v63 = vpop.f32.mrf.mxu1  ;;  %v14208_v36 = vpop.f32.mrf.mxu0  ;;  %v1131_v2 = vadd.f32 %v13911_v35, %v13727_v50 }
 0x190   :  { %9272 = vmatpush1.msra.mxu0 %v13233_v12  ;;  %11692 = vmatmul.mubr.msk.f32.vlgmr.msra.gmra.mxu1 %vm203_vm1, %v15390_v55  ;;  %v14216_v5 = vpop.permute.xlu1 %9875  ;;  %v14219_v9 = vadd.f32 %v2579_v63, %v14020_v46  ;;  %v9402_v12 = vsel %vm1964_vm2, %v14098_v11, %v14091_v57  ;;  %v9399_v57 = vsel %vm1964_vm2, %v14035_v62, %v14068_v16 }
 0x191   :  { %9343 = vmatpush1.msra.mxu1 %v13356_v25  ;;  %9439 = vmatprep.subr.mxu0 %v9398_v41  ;;  %v9641_v40 = vpop.permute.xlu0 %9640  ;;  %v14222_v27 = vpop.f32.mrf.mxu1  ;;  %v9643_v25 = vsel %vm2942_vm3, %v14125_v30, %v14119_v34  ;;  %v9642_v62 = vsel %vm2942_vm3, %v14162_v10, %v14125_v30 }
 0x192   :  { %9510 = vmatprep.subr.mxu1 %v9400_v47  ;;  %9305 = vmatprep.mubr.f32.mxu0 %v15357_v60  ;;  %v2650_v28 = vpop.f32.mrf.mxu0  ;;  %v9647_v30 = vsel %vm2942_vm3, %v14184_v15, %v9641_v40 }
 0x193   :  { %11693 = vmatmul.mubr.msk.f32.vlgmr.msra.gmra.mxu0 %vm203_vm1, %v15390_v55  ;;  %9376 = vmatprep.mubr.f32.mxu1 %v15357_v60  ;;  %v14238_v46 = vadd.f32 %v2650_v28, %v14045_v38 }
 0x194   :  { %9440 = vmatpush1.msra.mxu0 %v9397_v1  ;;  %11694 = vmatmul.mubr.msk.f32.vlgmr.msra.gmra.mxu1 %vm203_vm1, %v15390_v55  ;;  %v2721_v32 = vpop.f32.mrf.mxu1  ;;  %v14245_v33 = vpop.f32.mrf.mxu0  ;;  %v9644_v55 = vsel %vm2942_vm3, %v14119_v34, %v14151_v19 }
 0x195   :  { %9511 = vmatpush1.msra.mxu1 %v9399_v57  ;;  %9581 = vmatprep.subr.mxu0 %v9402_v12  ;;  %v9874_v14 = vpop.permute.xlu1 %9873  ;;  %v14248_v7 = vadd.f32 %v2721_v32, %v14061_v49  ;;  %v9645_v49 = vsel %vm2942_vm3, %v14151_v19, %v14191_v4  ;;  %v15391_v32 = vld [vmem:[#allocation17_spill] sm:$0xff] }
 0x196   :  { %9473 = vmatprep.mubr.f32.mxu0 %v15357_v60  ;;  %9684 = vmatprep.subr.mxu1 %v9643_v25  ;;  %v9878_v38 = vpop.permute.xlu0 %9877  ;;  %v14254_v16 = vpop.f32.mrf.mxu1  ;;  %v9887_v34 = vsel %vm3920_vm12, %v9874_v14, %v14216_v5  ;;  %v1344_v14 = vadd.f32 %v15391_v32, %v13774_v39 }
 0x197   :  { %11695 = vmatmul.mubr.msk.f32.vlgmr.msra.gmra.mxu0 %vm203_vm1, %v12920_v21  ;;  %9544 = vmatprep.mubr.f32.mxu1 %v15357_v60  ;;  %v2792_v13 = vpop.f32.mrf.mxu0  ;;  %v9888_v50 = vsel %vm3920_vm12, %v14216_v5, %v9878_v38 }
 0x198   :  { %9582 = vmatpush1.msra.mxu0 %v9401_v22  ;;  %11696 = vmatmul.mubr.msk.f32.vlgmr.msra.gmra.mxu1 %vm203_vm1, %v12920_v21  ;;  %v14270_v10 = vadd.f32 %v2792_v13, %v14078_v48  ;;  %v1202_v48 = vadd.f32 %v13923_v31, %v13738_v20  ;;  %v2875_v22 = vadd.f32 %v14164_v8, %v1344_v14  ;;  %v15393_v13 = vld [vmem:[#allocation9_spill] sm:$0xff] }
 0x199   :  { %9685 = vmatpush1.msra.mxu1 %v9642_v62  ;;  %9615 = vmatprep.mubr.f32.mxu0 %v15357_v60  ;;  %v2863_v53 = vpop.f32.mrf.mxu1  ;;  %v14273_v11 = vpop.f32.mrf.mxu0 }
 0x19a   :  { %9755 = vmatprep.subr.mxu0 %v9645_v49  ;;  %9718 = vmatprep.mubr.f32.mxu1 %v15357_v60  ;;  %v9882_v47 = vpop.permute.xlu1 %9881  ;;  %v14281_v63 = vadd.f32 %v2863_v53, %v14094_v6  ;;  %v9646_v6 = vsel %vm2942_vm3, %v14191_v4, %v14184_v15  ;;  %v2871_v40 = vadd.f32 %v14127_v17, %v1202_v48  ;;  %v15395_v48 = vld [vmem:[#allocation11_spill] sm:$0xff] }
 0x19b   :  { %11697 = vmatmul.mubr.msk.f32.vlgmr.msra.gmra.mxu0 %vm203_vm1, %v12920_v21  ;;  %9826 = vmatprep.subr.mxu1 %v9647_v30  ;;  %v9880_v35 = vpop.permute.xlu0 %9879  ;;  %v2865_v61 = vpop.f32.mrf.mxu1  ;;  %v2869_v21 = vadd.f32 %v14115_v43, %v1131_v2 }
 0x19c   :  { %9756 = vmatpush1.msra.mxu0 %v9644_v55  ;;  %11698 = vmatmul.mubr.msk.f32.vlgmr.msra.gmra.mxu1 %vm203_vm1, %v13135_v3  ;;  %v9890_v20 = vsel %vm3920_vm12, %v9880_v35, %v9882_v47  ;;  %v14298_v31 = vadd.f32 %v2865_v61, %v1912_v42  ;;  %v3060_v54 = vpop.f32.mrf.mxu0  ;;  %v9889_v15 = vsel %vm3920_vm12, %v9878_v38, %v9880_v35  ;;  %v15396_v55 = vld [vmem:[#allocation19_spill] sm:$0xff] }
 0x19d   :  { %9827 = vmatpush1.msra.mxu1 %v9646_v6  ;;  %9789 = vmatprep.mubr.f32.mxu0 %v15357_v60  ;;  %v14305_v19 = vadd.f32 %v3060_v54, %v14109_v58  ;;  %v1273_v58 = vadd.f32 %v13943_v37, %v13756_v51  ;;  %v15392_v37 = vld [vmem:[#allocation7_spill] sm:$0xff] }
 0x19e   :  { %9929 = vmatprep.subr.mxu0 %v9888_v50  ;;  %9860 = vmatprep.mubr.f32.mxu1 %v15357_v60  ;;  %v3131_v4 = vpop.f32.mrf.mxu1  ;;  %v3062_v41 = vpop.f32.mrf.mxu0 }
 0x19f   :  { %11699 = vmatmul.mubr.msk.f32.vlgmr.msra.gmra.mxu0 %vm203_vm1, %v13135_v3  ;;  %10000 = vmatprep.subr.mxu1 %v9890_v20  ;;  %v9886_v43 = vpop.permute.xlu1 %9885  ;;  %v14313_v5 = vadd.f32 %v3131_v4, %v14122_v56  ;;  %v14315_v12 = vadd.f32 %v3062_v41, %v2869_v21  ;;  %v2873_v51 = vadd.f32 %v14145_v26, %v1273_v58 }
 0x1a0   :  { %9930 = vmatpush1.msra.mxu0 %v9887_v34  ;;  %11700 = vmatmul.mubr.msk.f32.vlgmr.msra.gmra.mxu1 %vm203_vm1, %v13135_v3  ;;  %v9884_v28 = vpop.permute.xlu0 %9883  ;;  %v3133_v1 = vpop.f32.mrf.mxu1 }
 0x1a1   :  { %10001 = vmatpush1.msra.mxu1 %v9889_v15  ;;  %v9891_v17 = vsel %vm3920_vm12, %v9882_v47, %v9884_v28  ;;  %9963 = vmatprep.mubr.f32.mxu0 %v15357_v60  ;;  %v9892_v25 = vsel %vm3920_vm12, %v9884_v28, %v9886_v43  ;;  %v14324_v56 = vadd.f32 %v3133_v1, %v2871_v40  ;;  %v3202_v57 = vpop.f32.mrf.mxu0  ;;  %v15398_v15 = vld [vmem:[#allocation20_spill] sm:$0xff]  ;;  %v15399_v28 = vld [vmem:[#allocation13_spill] sm:$0xff] }
 0x1a2   :  { %10071 = vmatprep.subr.mxu0 %v9892_v25  ;;  %10034 = vmatprep.mubr.f32.mxu1 %v15357_v60  ;;  %v14331_v3 = vadd.f32 %v3202_v57, %v14143_v59  ;;  %v15394_v59 = vld [vmem:[#allocation18_spill] sm:$0xff]  ;;  %v15400_v1 = vld [vmem:[#allocation21_spill] sm:$0xff] }
 0x1a3   :  { %11701 = vmatmul.mubr.msk.f32.vlgmr.msra.gmra.mxu0 %vm203_vm1, %v15392_v37  ;;  %v3273_v62 = vpop.f32.mrf.mxu1  ;;  %v3204_v38 = vpop.f32.mrf.mxu0  ;;  %v1415_v30 = vadd.f32 %v15394_v59, %v15393_v13  ;;  %v15401_v25 = vld [vmem:[#allocation6_spill] sm:$0xff] }
 0x1a4   :  { %10072 = vmatpush1.msra.mxu0 %v9891_v17  ;;  %v10123_v49 = vpop.permute.xlu1 %10122  ;;  %11702 = vmatmul.mubr.msk.f32.vlgmr.msra.gmra.mxu1 %vm203_vm1, %v15392_v37  ;;  %v14339_v39 = vadd.f32 %v3273_v62, %v14154_v24  ;;  %v14341_v26 = vadd.f32 %v3204_v38, %v2873_v51  ;;  %v1486_v24 = vadd.f32 %v15396_v55, %v15395_v48 }
 0x1a5   :  { %v10121_v53 = vpop.permute.xlu0 %10120  ;;  %10105 = vmatprep.mubr.f32.mxu0 %v15357_v60  ;;  %10208 = vmatprep.mubr.f32.mxu1 %v15357_v60  ;;  %v3275_v2 = vpop.f32.mrf.mxu1  ;;  %v2877_v50 = vadd.f32 %v14176_v44, %v1415_v30  ;;  %v15397_v44 = vld [vmem:[#allocation12_spill] sm:$0xff]  ;;  %v1628_v17 = vadd.f32 %v15400_v1, %v15399_v28 }
 0x1a6   :  { %v10133_v8 = vsel %vm4898_vm5, %v10121_v53, %v10123_v49  ;;  %v14348_v42 = vadd.f32 %v3275_v2, %v2875_v22  ;;  %v3344_v47 = vpop.f32.mrf.mxu0  ;;  %v2879_v20 = vadd.f32 %v14193_v23, %v1486_v24  ;;  %v1557_v4 = vadd.f32 %v15398_v15, %v15397_v44 }
 0x1a7   :  { %10174 = vmatprep.subr.mxu1 %v10133_v8  ;;  %11703 = vmatmul.mubr.msk.f32.vlgmr.msra.gmra.mxu0 %vm203_vm1, %v15392_v37  ;;  %v14356_v35 = vadd.f32 %v3344_v47, %v14172_v0  ;;  %v2883_v14 = vadd.f32 %v14222_v27, %v1628_v17  ;;  %v15404_v27 = vld [vmem:[#allocation22_spill] sm:$0xff] }
 0x1a8   :  { %10279 = vmatprep.mubr.f32.mxu0 %v15357_v60  ;;  %v3415_v61 = vpop.f32.mrf.mxu1  ;;  %v3346_v6 = vpop.f32.mrf.mxu0  ;;  %v2881_v23 = vadd.f32 %v14208_v36, %v1557_v4  ;;  %v15402_v36 = vld [vmem:[#allocation14_spill] sm:$0xff] }
 0x1a9   :  { %v10125_v54 = vpop.permute.xlu1 %10124  ;;  %v14361_v21 = vadd.f32 %v3415_v61, %v14187_v29  ;;  %v14363_v34 = vadd.f32 %v3346_v6, %v2877_v50  ;;  %v1699_v38 = vadd.f32 %v14050_v52, %v15402_v36 }
 0x1aa   :  { %v10119_v41 = vpop.permute.xlu0 %10118  ;;  %v3417_v40 = vpop.f32.mrf.mxu1 }
 0x1ab   :  { %v10132_v0 = vsel %vm4898_vm5, %v10119_v41, %v10121_v53  ;;  %v14368_v43 = vadd.f32 %v3417_v40, %v2879_v20  ;;  %v3486_v58 = vpop.f32.mrf.mxu0  ;;  %v15403_v53 = vld [vmem:[#allocation15_spill] sm:$0xff]  ;;  %v2885_v8 = vadd.f32 %v14245_v33, %v1699_v38  ;;  %v15405_v33 = vld [vmem:[#allocation16_spill] sm:$0xff] }
 0x1ac   :  { %10175 = vmatpush1.msra.mxu1 %v10132_v0  ;;  %v14374_v29 = vadd.f32 %v3486_v58, %v14200_v18  ;;  %v1770_v2 = vadd.f32 %v15404_v27, %v15403_v53 }
 0x1ad   :  { %11704 = vmatmul.mubr.msk.f32.vlgmr.msra.gmra.mxu1 %vm203_vm1, %v15401_v25  ;;  %v3557_v57 = vpop.f32.mrf.mxu1  ;;  %v3488_v32 = vpop.f32.mrf.mxu0 }
 0x1ae   :  { %v10129_v51 = vpop.permute.xlu1 %10128  ;;  %10350 = vmatprep.mubr.f32.mxu1 %v15357_v60  ;;  %v14381_v37 = vadd.f32 %v3557_v57, %v14219_v9  ;;  %v14383_v62 = vadd.f32 %v3488_v32, %v2881_v23  ;;  %v10134_v9 = vsel %vm4898_vm5, %v10123_v49, %v10125_v54  ;;  %v2887_v55 = vadd.f32 %v14254_v16, %v1770_v2  ;;  %v15406_v49 = vld [vmem:[#allocation23_spill] sm:$0xff] }
 0x1af   :  { %v10127_v18 = vpop.permute.xlu0 %10126  ;;  %v3559_v22 = vpop.f32.mrf.mxu1  ;;  %v1841_v6 = vadd.f32 %v15406_v49, %v15405_v33 }
 0x1b0   :  { %v10135_v13 = vsel %vm4898_vm5, %v10125_v54, %v10127_v18  ;;  %v14388_v59 = vadd.f32 %v3559_v22, %v2883_v14  ;;  %v3628_v30 = vpop.f32.mrf.mxu0  ;;  %v10136_v4 = vsel %vm4898_vm5, %v10127_v18, %v10129_v51 }
 0x1b1   :  { %10245 = vmatprep.subr.mxu0 %v10135_v13  ;;  %v14395_v47 = vadd.f32 %v3628_v30, %v14238_v46  ;;  %v2889_v15 = vadd.f32 %v14273_v11, %v1841_v6 }
 0x1b2   :  { %10246 = vmatpush1.msra.mxu0 %v10134_v9  ;;  %v3699_v52 = vpop.f32.mrf.mxu1  ;;  %v3630_v48 = vpop.f32.mrf.mxu0 }
 0x1b3   :  { %v10366_v24 = vpop.permute.xlu1 %10365  ;;  %11705 = vmatmul.mubr.msk.f32.vlgmr.msra.gmra.mxu0 %vm203_vm1, %v15401_v25  ;;  %v14401_v50 = vadd.f32 %v3699_v52, %v14248_v7  ;;  %v14403_v61 = vadd.f32 %v3630_v48, %v2885_v8 }
 0x1b4   :  { %v10131_v20 = vpop.permute.xlu0 %10130  ;;  %10453 = vmatprep.mubr.f32.mxu0 %v15357_v60  ;;  %v3701_v46 = vpop.f32.mrf.mxu1 }
 0x1b5   :  { %v10137_v54 = vsel %vm4898_vm5, %v10129_v51, %v10131_v20  ;;  %v14409_v44 = vadd.f32 %v3701_v46, %v2887_v55  ;;  %v3770_v16 = vpop.f32.mrf.mxu0  ;;  %v15407_v51 = vld [vmem:[#allocation8_spill] sm:$0xff] }
 0x1b6   :  { %10316 = vmatprep.subr.mxu1 %v10137_v54  ;;  %v14414_v7 = vadd.f32 %v3770_v16, %v14270_v10 }
 0x1b7   :  { %10317 = vmatpush1.msra.mxu1 %v10136_v4  ;;  %v3841_v41 = vpop.f32.mrf.mxu1  ;;  %v3772_v40 = vpop.f32.mrf.mxu0 }
 0x1b8   :  { %v10364_v0 = vpop.permute.xlu1 %10363  ;;  %11706 = vmatmul.mubr.msk.f32.vlgmr.msra.gmra.mxu1 %vm203_vm1, %v15401_v25  ;;  %v14419_v58 = vadd.f32 %v3841_v41, %v14281_v63  ;;  %v14421_v28 = vadd.f32 %v3772_v40, %v2889_v15 }
 0x1b9   :  { %v10377_v11 = vsel %vm5876_vm6, %v10364_v0, %v10366_v24  ;;  %v10368_v1 = vpop.permute.xlu0 %10367  ;;  %10524 = vmatprep.mubr.f32.mxu1 %v15357_v60  ;;  %v3843_v17 = vpop.f32.mrf.mxu1 }
 0x1ba   :  { %v10378_v10 = vsel %vm5876_vm6, %v10366_v24, %v10368_v1  ;;  %v14427_v23 = vadd.f32 %v3843_v17, %v14298_v31  ;;  %v4038_v57 = vpop.f32.mrf.mxu0  ;;  %v15408_v17 = vld [vmem:[#allocation10_spill] sm:$0xff] }
 0x1bb   :  { %10419 = vmatprep.subr.mxu0 %v10378_v10  ;;  %v14430_v25 = vadd.f32 %v4038_v57, %v14305_v19 }
 0x1bc   :  { %10420 = vmatpush1.msra.mxu0 %v10377_v11  ;;  %v4109_v63 = vpop.f32.mrf.mxu1  ;;  %v4040_v32 = vpop.f32.mrf.mxu0 }
 0x1bd   :  { %v10372_v14 = vpop.permute.xlu1 %10371  ;;  %11707 = vmatmul.mubr.msk.f32.vlgmr.msra.gmra.mxu0 %vm203_vm1, %v15407_v51  ;;  %v14435_v36 = vadd.f32 %v4109_v63, %v14313_v5  ;;  %v14438_v38 = vadd.f32 %v4040_v32, %v14315_v12 }
 0x1be   :  { %v10370_v31 = vpop.permute.xlu0 %10369  ;;  %10595 = vmatprep.mubr.f32.mxu0 %v15357_v60  ;;  %v4111_v18 = vpop.f32.mrf.mxu1 }
 0x1bf   :  { %v10379_v19 = vsel %vm5876_vm6, %v10368_v1, %v10370_v31  ;;  %v10380_v22 = vsel %vm5876_vm6, %v10370_v31, %v10372_v14  ;;  %v14444_v13 = vadd.f32 %v4111_v18, %v14324_v56  ;;  %v4180_v30 = vpop.f32.mrf.mxu0 }
 0x1c0   :  { %10490 = vmatprep.subr.mxu1 %v10380_v22  ;;  %v14447_v53 = vadd.f32 %v4180_v30, %v14331_v3 }
 0x1c1   :  { %10491 = vmatpush1.msra.mxu1 %v10379_v19  ;;  %v4251_v5 = vpop.f32.mrf.mxu1  ;;  %v4182_v12 = vpop.f32.mrf.mxu0 }
 0x1c2   :  { %v10376_v27 = vpop.permute.xlu1 %10375  ;;  %11708 = vmatmul.mubr.msk.f32.vlgmr.msra.gmra.mxu1 %vm203_vm1, %v15407_v51  ;;  %v14452_v2 = vadd.f32 %v4251_v5, %v14339_v39  ;;  %v14455_v8 = vadd.f32 %v4182_v12, %v14341_v26 }
 0x1c3   :  { %v10374_v56 = vpop.permute.xlu0 %10373  ;;  %10698 = vmatprep.mubr.f32.mxu1 %v15357_v60  ;;  %v4253_v9 = vpop.f32.mrf.mxu1 }
 0x1c4   :  { %v10381_v3 = vsel %vm5876_vm6, %v10372_v14, %v10374_v56  ;;  %v10382_v52 = vsel %vm5876_vm6, %v10374_v56, %v10376_v27  ;;  %v14461_v48 = vadd.f32 %v4253_v9, %v14348_v42  ;;  %v4322_v55 = vpop.f32.mrf.mxu0 }
 0x1c5   :  { %10561 = vmatprep.subr.mxu0 %v10382_v52  ;;  %v14464_v24 = vadd.f32 %v4322_v55, %v14356_v35 }
 0x1c6   :  { %10562 = vmatpush1.msra.mxu0 %v10381_v3  ;;  %v4393_v39 = vpop.f32.mrf.mxu1  ;;  %v4324_v26 = vpop.f32.mrf.mxu0 }
 0x1c7   :  { %v10613_v33 = vpop.permute.xlu1 %10612  ;;  %11709 = vmatmul.mubr.msk.f32.vlgmr.msra.gmra.mxu0 %vm203_vm1, %v15407_v51  ;;  %v14469_v49 = vadd.f32 %v4393_v39, %v14361_v21  ;;  %v14472_v6 = vadd.f32 %v4324_v26, %v14363_v34 }
 0x1c8   :  { %v10611_v42 = vpop.permute.xlu0 %10610  ;;  %10769 = vmatprep.mubr.f32.mxu0 %v15357_v60  ;;  %v4395_v20 = vpop.f32.mrf.mxu1 }
 0x1c9   :  { %v10623_v35 = vsel %vm6854_vm7, %v10611_v42, %v10613_v33  ;;  %v14477_v46 = vadd.f32 %v4395_v20, %v14368_v43  ;;  %v4464_v54 = vpop.f32.mrf.mxu0 }
 0x1ca   :  { %10664 = vmatprep.subr.mxu1 %v10623_v35  ;;  %v14480_v16 = vadd.f32 %v4464_v54, %v14374_v29 }
 0x1cb   :  { %v4535_v15 = vpop.f32.mrf.mxu1  ;;  %v4466_v21 = vpop.f32.mrf.mxu0 }
 0x1cc   :  { %v10615_v4 = vpop.permute.xlu1 %10614  ;;  %v14483_v34 = vadd.f32 %v4535_v15, %v14381_v37  ;;  %v14486_v41 = vadd.f32 %v4466_v21, %v14383_v62 }
 0x1cd   :  { %v10609_v40 = vpop.permute.xlu0 %10608  ;;  %v4537_v0 = vpop.f32.mrf.mxu1  ;;  %v10624_v31 = vsel %vm6854_vm7, %v10613_v33, %v10615_v4 }
 0x1ce   :  { %v10622_v11 = vsel %vm6854_vm7, %v10609_v40, %v10611_v42  ;;  %v14490_v43 = vadd.f32 %v4537_v0, %v14388_v59  ;;  %v4606_v1 = vpop.f32.mrf.mxu0 }
 0x1cf   :  { %10665 = vmatpush1.msra.mxu1 %v10622_v11  ;;  %v14493_v29 = vadd.f32 %v4606_v1, %v14395_v47 }
 0x1d0   :  { %11710 = vmatmul.mubr.msk.f32.vlgmr.msra.gmra.mxu1 %vm203_vm1, %v15408_v17  ;;  %v4677_v37 = vpop.f32.mrf.mxu1  ;;  %v4608_v10 = vpop.f32.mrf.mxu0 }
 0x1d1   :  { %v10619_v57 = vpop.permute.xlu1 %10618  ;;  %10840 = vmatprep.mubr.f32.mxu1 %v15357_v60  ;;  %v14499_v62 = vadd.f32 %v4677_v37, %v14401_v50  ;;  %v14502_v63 = vadd.f32 %v4608_v10, %v14403_v61 }
 0x1d2   :  { %v10617_v59 = vpop.permute.xlu0 %10616  ;;  %v4679_v32 = vpop.f32.mrf.mxu1 }
 0x1d3   :  { %v10625_v14 = vsel %vm6854_vm7, %v10615_v4, %v10617_v59  ;;  %v14506_v47 = vadd.f32 %v4679_v32, %v14409_v44  ;;  %v4748_v51 = vpop.f32.mrf.mxu0  ;;  %v10626_v56 = vsel %vm6854_vm7, %v10617_v59, %v10619_v57 }
 0x1d4   :  { %10735 = vmatprep.subr.mxu0 %v10625_v14  ;;  %v14510_v18 = vadd.f32 %v4748_v51, %v14414_v7 }
 0x1d5   :  { %10736 = vmatpush1.msra.mxu0 %v10624_v31  ;;  %v4819_v50 = vpop.f32.mrf.mxu1  ;;  %v4750_v19 = vpop.f32.mrf.mxu0 }
 0x1d6   :  { %v10856_v22 = vpop.permute.xlu1 %10855  ;;  %11711 = vmatmul.mubr.msk.f32.vlgmr.msra.gmra.mxu0 %vm203_vm1, %v15408_v17  ;;  %v14515_v61 = vadd.f32 %v4819_v50, %v14419_v58  ;;  %v14518_v44 = vadd.f32 %v4750_v19, %v14421_v28 }
 0x1d7   :  { %v10621_v30 = vpop.permute.xlu0 %10620  ;;  %10943 = vmatprep.mubr.f32.mxu0 %v15357_v60  ;;  %v4821_v5 = vpop.f32.mrf.mxu1 }
 0x1d8   :  { %v10627_v7 = vsel %vm6854_vm7, %v10619_v57, %v10621_v30  ;;  %v14523_v12 = vadd.f32 %v4821_v5, %v14427_v23  ;;  %v5016_v27 = vpop.f32.mrf.mxu0 }
 0x1d9   :  { %10806 = vmatprep.subr.mxu1 %v10627_v7  ;;  %v14527_v9 = vadd.f32 %v5016_v27, %v14430_v25 }
 0x1da   :  { %10807 = vmatpush1.msra.mxu1 %v10626_v56  ;;  %v5087_v58 = vpop.f32.mrf.mxu1  ;;  %v5018_v28 = vpop.f32.mrf.mxu0 }
 0x1db   :  { %v10854_v3 = vpop.permute.xlu1 %10853  ;;  %11712 = vmatmul.mubr.msk.f32.vlgmr.msra.gmra.mxu1 %vm203_vm1, %v15408_v17  ;;  %v14532_v52 = vadd.f32 %v5087_v58, %v14435_v36  ;;  %v14535_v23 = vadd.f32 %v5018_v28, %v14438_v38 }
 0x1dc   :  { %v10867_v55 = vsel %vm7832_vm8, %v10854_v3, %v10856_v22  ;;  %v10858_v39 = vpop.permute.xlu0 %10857  ;;  %11014 = vmatprep.mubr.f32.mxu1 %v15357_v60  ;;  %v5089_v25 = vpop.f32.mrf.mxu1 }
 0x1dd   :  { %v10868_v26 = vsel %vm7832_vm8, %v10856_v22, %v10858_v39  ;;  %v14541_v33 = vadd.f32 %v5089_v25, %v14444_v13  ;;  %v5158_v42 = vpop.f32.mrf.mxu0 }
 0x1de   :  { %10909 = vmatprep.subr.mxu0 %v10868_v26  ;;  %v14544_v20 = vadd.f32 %v5158_v42, %v14447_v53 }
 0x1df   :  { %10910 = vmatpush1.msra.mxu0 %v10867_v55  ;;  %v5229_v36 = vpop.f32.mrf.mxu1  ;;  %v5160_v38 = vpop.f32.mrf.mxu0 }
 0x1e0   :  { %v10862_v35 = vpop.permute.xlu1 %10861  ;;  %11713 = vmatmul.mubr.msk.f32.vlgmr.msra.gmra.mxu0 %vm203_vm1, %v13999_v45  ;;  %v5808_v54 = vadd.f32 %v5229_v36, %v14452_v2  ;;  %v5807_v15 = vadd.f32 %v5160_v38, %v14455_v8 }
 0x1e1   :  { %v10860_v21 = vpop.permute.xlu0 %10859  ;;  %11085 = vmatprep.mubr.f32.mxu0 %v15357_v60  ;;  %v5231_v13 = vpop.f32.mrf.mxu1 }
 0x1e2   :  { %v10869_v4 = vsel %vm7832_vm8, %v10858_v39, %v10860_v21  ;;  %v10870_v53 = vsel %vm7832_vm8, %v10860_v21, %v10862_v35  ;;  %v5809_v40 = vadd.f32 %v5231_v13, %v14461_v48  ;;  %v5300_v0 = vpop.f32.mrf.mxu0 }
 0x1e3   :  { %10980 = vmatprep.subr.mxu1 %v10870_v53  ;;  %v5810_v11 = vadd.f32 %v5300_v0, %v14464_v24 }
 0x1e4   :  { %10981 = vmatpush1.msra.mxu1 %v10869_v4  ;;  %v5371_v1 = vpop.f32.mrf.mxu1  ;;  %v5302_v17 = vpop.f32.mrf.mxu0 }
 0x1e5   :  { %v10866_v2 = vpop.permute.xlu1 %10865  ;;  %11714 = vmatmul.mubr.msk.f32.vlgmr.msra.gmra.mxu1 %vm203_vm1, %v13999_v45  ;;  %v5812_v60 = vadd.f32 %v5371_v1, %v14469_v49  ;;  %v5811_v8 = vadd.f32 %v5302_v17, %v14472_v6 }
 0x1e6   :  { %v10864_v37 = vpop.permute.xlu0 %10863  ;;  %v5373_v10 = vpop.f32.mrf.mxu1 }
 0x1e7   :  { %v10871_v57 = vsel %vm7832_vm8, %v10862_v35, %v10864_v37  ;;  %v10872_v48 = vsel %vm7832_vm8, %v10864_v37, %v10866_v2  ;;  %v5813_v59 = vadd.f32 %v5373_v10, %v14477_v46  ;;  %v5442_v24 = vpop.f32.mrf.mxu0 }
 0x1e8   :  { %11051 = vmatprep.subr.mxu0 %v10872_v48  ;;  %v5814_v32 = vadd.f32 %v5442_v24, %v14480_v16 }
 0x1e9   :  { %11052 = vmatpush1.msra.mxu0 %v10871_v57  ;;  %v5513_v14 = vpop.f32.mrf.mxu1  ;;  %v5444_v51 = vpop.f32.mrf.mxu0 }
 0x1ea   :  { %11715 = vmatmul.mubr.msk.f32.vlgmr.msra.gmra.mxu0 %vm203_vm1, %v13999_v45  ;;  %v5816_v49 = vadd.f32 %v5513_v14, %v14483_v34  ;;  %v5815_v6 = vadd.f32 %v5444_v51, %v14486_v41 }
 0x1eb   :  { %v5515_v31 = vpop.f32.mrf.mxu1 }
 0x1ec   :  { %v5817_v50 = vadd.f32 %v5515_v31, %v14490_v43  ;;  %v5584_v19 = vpop.f32.mrf.mxu0 }
 0x1ed   :  { %v5818_v46 = vadd.f32 %v5584_v19, %v14493_v29 }
 0x1ee   :  { %v5655_v22 = vpop.f32.mrf.mxu1  ;;  %v5586_v30 = vpop.f32.mrf.mxu0 }
 0x1ef   :  { %v5820_v16 = vadd.f32 %v5655_v22, %v14499_v62  ;;  %v5819_v5 = vadd.f32 %v5586_v30, %v14502_v63 }
 0x1f0   :  { %v5657_v7 = vpop.f32.mrf.mxu1 }
 0x1f1   :  { %v5821_v27 = vadd.f32 %v5657_v7, %v14506_v47  ;;  %v5726_v45 = vpop.f32.mrf.mxu0 }
 0x1f2   :  { %v5822_v34 = vadd.f32 %v5726_v45, %v14510_v18 }
 0x1f3   :  { %v5797_v56 = vpop.f32.mrf.mxu1  ;;  %v5728_v41 = vpop.f32.mrf.mxu0 }
 0x1f4   :  { %v5824_v58 = vadd.f32 %v5797_v56, %v14515_v61  ;;  %v5823_v43 = vadd.f32 %v5728_v41, %v14518_v44 }
 0x1f5   :  { %v5799_v28 = vpop.f32.mrf.mxu1 }
 0x1f6   :  { %v5825_v29 = vadd.f32 %v5799_v28, %v14523_v12  ;;  %v5994_v3 = vpop.f32.mrf.mxu0 }
 0x1f7   :  { %v6780_v62 = vadd.f32 %v5994_v3, %v14527_v9 }
 0x1f8   :  { %v6065_v55 = vpop.f32.mrf.mxu1  ;;  %v5996_v63 = vpop.f32.mrf.mxu0 }
 0x1f9   :  { %v6782_v39 = vadd.f32 %v6065_v55, %v14532_v52  ;;  %v6781_v47 = vadd.f32 %v5996_v63, %v14535_v23 }
 0x1fa   :  { %v6067_v25 = vpop.f32.mrf.mxu1 }
 0x1fb   :  { %v6783_v18 = vadd.f32 %v6067_v25, %v14541_v33  ;;  %v6136_v26 = vpop.f32.mrf.mxu0 }
 0x1fc   :  { %v6784_v61 = vadd.f32 %v6136_v26, %v14544_v20 }
 0x1fd   :  { %v6207_v42 = vpop.f32.mrf.mxu1  ;;  %v6138_v44 = vpop.f32.mrf.mxu0 }
 0x1fe   :  { %v6786_v36 = vadd.f32 %v6207_v42, %v5808_v54  ;;  %v6785_v38 = vadd.f32 %v6138_v44, %v5807_v15 }
 0x1ff   :  { %v6209_v12 = vpop.f32.mrf.mxu1 }
 0x200   :  { %v14581_v35 = vadd.f32 %v6209_v12, %v5809_v40  ;;  %v6278_v9 = vpop.f32.mrf.mxu0 }
 0x201   :  { %v6788_v21 = vadd.f32 %v6278_v9, %v5810_v11 }
 0x202   :  { %v6349_v13 = vpop.f32.mrf.mxu1  ;;  %v6280_v4 = vpop.f32.mrf.mxu0 }
 0x203   :  { %v14583_v52 = vadd.f32 %v6349_v13, %v5812_v60  ;;  %v6789_v23 = vadd.f32 %v6280_v4, %v5811_v8 }
 0x204   :  { %v6351_v53 = vpop.f32.mrf.mxu1 }
 0x205   :  { %v14585_v0 = vadd.f32 %v6351_v53, %v5813_v59  ;;  %v6420_v33 = vpop.f32.mrf.mxu0 }
 0x206   :  { %v6792_v1 = vadd.f32 %v6420_v33, %v5814_v32 }
 0x207   :  { %v6491_v20 = vpop.f32.mrf.mxu1  ;;  %v6422_v17 = vpop.f32.mrf.mxu0 }
 0x208   :  { %v14587_v2 = vadd.f32 %v6491_v20, %v5816_v49  ;;  %v14589_v54 = vadd.f32 %v6422_v17, %v5815_v6 }
 0x209   :  { %v6493_v15 = vpop.f32.mrf.mxu1 }
 0x20a   :  { %v14591_v40 = vadd.f32 %v6493_v15, %v5817_v50  ;;  %v6562_v11 = vpop.f32.mrf.mxu0 }
 0x20b   :  { %v14593_v37 = vadd.f32 %v6562_v11, %v5818_v46  ;;  %v12307_v11 = vmov 0  }
 0x20c   :  { %v6633_v60 = vpop.f32.mrf.mxu1  ;;  %v6564_v10 = vpop.f32.mrf.mxu0  ;;  %12246 = vset.pattern.permute.xlu1 %v12307_v11  ;;  %12247 = vset.pattern.permute.xlu0 %v12307_v11 }
 0x20d   :  { %v14595_v8 = vadd.f32 %v6633_v60, %v5820_v16  ;;  %v14597_v57 = vadd.f32 %v6564_v10, %v5819_v5 }
 0x20e   :  { %v6635_v48 = vpop.f32.mrf.mxu1 }
 0x20f   :  { %v14599_v59 = vadd.f32 %v6635_v48, %v5821_v27  ;;  %v6704_v24 = vpop.f32.mrf.mxu0 }
 0x210   :  { %v14601_v32 = vadd.f32 %v6704_v24, %v5822_v34 }
 0x211   :  { %v6775_v14 = vpop.f32.mrf.mxu1  ;;  %v6706_v51 = vpop.f32.mrf.mxu0 }
 0x212   :  { %v14603_v49 = vadd.f32 %v6775_v14, %v5824_v58  ;;  %v14605_v6 = vadd.f32 %v6706_v51, %v5823_v43 }
 0x213   :  { %v6777_v31 = vpop.f32.mrf.mxu1 }
 0x214   :  { %v14607_v50 = vadd.f32 %v6777_v31, %v5825_v29  ;;  %v6972_v19 = vpop.f32.mrf.mxu0 }
 0x215   :  { %v14609_v46 = vadd.f32 %v6972_v19, %v6780_v62 }
 0x216   :  { %15409 = vst [vmem:[#allocation4_spill] sm:$0xff] %v14607_v50  ;;  %v7043_v22 = vpop.f32.mrf.mxu1  ;;  %v6974_v30 = vpop.f32.mrf.mxu0 }
 0x217   :  { %v14611_v16 = vadd.f32 %v7043_v22, %v6782_v39  ;;  %v14613_v5 = vadd.f32 %v6974_v30, %v6781_v47 }
 0x218   :  { %v7045_v7 = vpop.f32.mrf.mxu1 }
 0x219   :  { %v14615_v27 = vadd.f32 %v7045_v7, %v6783_v18  ;;  %v7114_v45 = vpop.f32.mrf.mxu0 }
 0x21a   :  { %v14617_v34 = vadd.f32 %v7114_v45, %v6784_v61 }
 0x21b   :  { %v7185_v56 = vpop.f32.mrf.mxu1  ;;  %v7116_v41 = vpop.f32.mrf.mxu0 }
 0x21c   :  { %v14619_v58 = vadd.f32 %v7185_v56, %v6786_v36  ;;  %v14621_v43 = vadd.f32 %v7116_v41, %v6785_v38 }
 0x21d   :  { %v14623_v28 = vpop.f32.mrf.mxu1 }
 0x21e   :  { %v7256_v29 = vpop.f32.mrf.mxu0 }
 0x21f   :  { %v14625_v3 = vadd.f32 %v7256_v29, %v6788_v21 }
 0x220   :  { %v14627_v62 = vpop.f32.mrf.mxu1  ;;  %v7258_v55 = vpop.f32.mrf.mxu0 }
 0x221   :  { %v14629_v63 = vadd.f32 %v7258_v55, %v6789_v23 }
 0x222   :  { %v14631_v39 = vpop.f32.mrf.mxu1 }
 0x223   :  { %v7398_v47 = vpop.f32.mrf.mxu0 }
 0x224   :  { %v14633_v25 = vadd.f32 %v7398_v47, %v6792_v1 }
 0x225   :  { %v14635_v18 = vpop.f32.mrf.mxu1  ;;  %v14637_v26 = vpop.f32.mrf.mxu0 }
 0x227   :  { %v14639_v61 = vpop.f32.mrf.mxu1 }
 0x228   :  { %v14641_v42 = vpop.f32.mrf.mxu0 }
 0x22a   :  { %v14643_v44 = vpop.f32.mrf.mxu1  ;;  %v14645_v36 = vpop.f32.mrf.mxu0 }
 0x22c   :  { %v14647_v38 = vpop.f32.mrf.mxu1 }
 0x22d   :  { %v14649_v12 = vpop.f32.mrf.mxu0 }
 0x22f   :  { %v14651_v9 = vpop.f32.mrf.mxu1  ;;  %v14653_v21 = vpop.f32.mrf.mxu0 }
 0x230   :  { %15410 = vst [vmem:[#allocation5_spill] sm:$0xff] %v14653_v21 }
 0x231   :  { %v14655_v13 = vpop.f32.mrf.mxu1 }
 0x232   :  { %15411 = vst [vmem:[#allocation17_spill] sm:$0xff] %v14655_v13  ;;  %v7950_v4 = vpop.f32.mrf.mxu0 }
 0x234   :  { %v8021_v23 = vpop.f32.mrf.mxu1  ;;  %v7952_v53 = vpop.f32.mrf.mxu0 }
 0x236   :  { %v8023_v33 = vpop.f32.mrf.mxu1 }
 0x237   :  { %v8092_v1 = vpop.f32.mrf.mxu0 }
 0x238   :  { %v8163_v20 = vpop.f32.mrf.mxu1 }
 0x239   :  { %v8094_v17 = vpop.f32.mrf.mxu0 }
 0x23a   :  { %v8165_v15 = vpop.f32.mrf.mxu1 }
 0x23b   :  { %v8234_v60 = vpop.f32.mrf.mxu0 }
 0x23c   :  { %v8305_v10 = vpop.f32.mrf.mxu1 }
 0x23d   :  { %v8236_v48 = vpop.f32.mrf.mxu0 }
 0x23e   :  { %v14657_v24 = vpop.f32.mrf.mxu1 }
 0x23f   :  { %v14659_v14 = vpop.f32.mrf.mxu0 }
 0x240   :  { %v14661_v51 = vpop.f32.mrf.mxu1 }
 0x241   :  { %v14663_v31 = vpop.f32.mrf.mxu0 }
 0x242   :  { %v14665_v19 = vpop.f32.mrf.mxu1 }
 0x243   :  { %v14667_v22 = vpop.f32.mrf.mxu0 }
 0x244   :  { %v14669_v30 = vpop.f32.mrf.mxu1 }
 0x245   :  { %15412 = vst [vmem:[#allocation7_spill] sm:$0xff] %v14669_v30  ;;  %v14671_v7 = vpop.f32.mrf.mxu0 }
 0x246   :  { %v14673_v45 = vpop.f32.mrf.mxu1 }
 0x247   :  { %15413 = vst [vmem:[#allocation9_spill] sm:$0xff] %v14673_v45  ;;  %v14675_v56 = vpop.f32.mrf.mxu0 }
 0x248   :  { %15414 = vst [vmem:[#allocation18_spill] sm:$0xff] %v14675_v56  ;;  %v14677_v41 = vpop.f32.mrf.mxu1 }
 0x249   :  { %15415 = vst [vmem:[#allocation11_spill] sm:$0xff] %v14677_v41  ;;  %v14679_v29 = vpop.f32.mrf.mxu0 }
 0x24a   :  { %15416 = vst [vmem:[#allocation19_spill] sm:$0xff] %v14679_v29  ;;  %v14683_v47 = vpop.f32.mrf.mxu1 }
 0x24b   :  { %v14681_v55 = vpop.f32.mrf.mxu0  ;;  %15418 = vst [vmem:[#allocation20_spill] sm:$0xff] %v14683_v47 }
 0x24c   :  { %15417 = vst [vmem:[#allocation12_spill] sm:$0xff] %v14681_v55  ;;  %v14687_v13 = vpop.f32.mrf.mxu1 }
 0x24d   :  { %v14685_v11 = vpop.f32.mrf.mxu0  ;;  %15420 = vst [vmem:[#allocation21_spill] sm:$0xff] %v14687_v13 }
 0x24e   :  { %15419 = vst [vmem:[#allocation13_spill] sm:$0xff] %v14685_v11  ;;  %v14691_v30 = vpop.f32.mrf.mxu1 }
 0x24f   :  { %v14689_v50 = vpop.f32.mrf.mxu0  ;;  %15422 = vst [vmem:[#allocation14_spill] sm:$0xff] %v14691_v30 }
 0x250   :  { %15421 = vst [vmem:[#allocation6_spill] sm:$0xff] %v14689_v50  ;;  %v14695_v45 = vpop.f32.mrf.mxu1 }
 0x251   :  { %v14693_v21 = vpop.f32.mrf.mxu0  ;;  %15424 = vst [vmem:[#allocation22_spill] sm:$0xff] %v14695_v45 }
 0x252   :  { %15423 = vst [vmem:[#allocation15_spill] sm:$0xff] %v14693_v21  ;;  %v14699_v41 = vpop.f32.mrf.mxu1 }
 0x253   :  { %v14697_v56 = vpop.f32.mrf.mxu0  ;;  %15426 = vst [vmem:[#allocation23_spill] sm:$0xff] %v14699_v41 }
 0x254   :  { %15425 = vst [vmem:[#allocation16_spill] sm:$0xff] %v14697_v56  ;;  %v14703_v55 = vpop.f32.mrf.mxu1 }
 0x255   :  { %v14701_v29 = vpop.f32.mrf.mxu0  ;;  %15428 = vst [vmem:[#allocation10_spill] sm:$0xff] %v14703_v55  ;;  %v14724_v55 = vadd.f32 %v8092_v1, %v14617_v34  ;;  %v14743_v34 = vadd.f32 %v7950_v4, %v14609_v46  ;;  %v7769_v4 = vadd.f32 %v14631_v39, %v14585_v0  ;;  %v14784_v0 = vadd.f32 %v8236_v48, %v14629_v63 }
 0x256   :  { %15427 = vst [vmem:[#allocation8_spill] sm:$0xff] %v14701_v29  ;;  %v14707_v11 = vpop.f32.mrf.mxu1  ;;  %v14729_v29 = vadd.f32 %v7952_v53, %v14613_v5  ;;  %v7768_v5 = vadd.f32 %v14627_v62, %v14583_v52  ;;  %v14755_v53 = vadd.f32 %v8021_v23, %v14611_v16  ;;  %v7772_v16 = vadd.f32 %v14635_v18, %v14587_v2 }
 0x257   :  { %v14705_v47 = vpop.f32.mrf.mxu0  ;;  %15429 = vst [vmem:[#allocation24_spill] sm:$0xff] %v14707_v11  ;;  %v7765_v11 = vadd.f32 %v14623_v28, %v14581_v35  ;;  %v14746_v35 = vadd.f32 %v8094_v17, %v14621_v43  ;;  %v14762_v43 = vadd.f32 %v8163_v20, %v14619_v58  ;;  %v11102_v23 = vmul.f32 %v14743_v34, %v14743_v34 }
 0x258   :  { %v14711_v50 = vpop.f32.mrf.mxu1  ;;  %v14766_v62 = vadd.f32 %v8305_v10, %v7768_v5  ;;  %v7771_v58 = vadd.f32 %v14637_v26, %v14589_v54  ;;  %v7773_v20 = vadd.f32 %v14639_v61, %v14591_v40  ;;  %15439 = vst [vmem:[#allocation34_spill] sm:$0xff] %v14784_v0  ;;  %v7774_v2 = vadd.f32 %v14641_v42, %v14593_v37 }
 0x259   :  { %v14709_v13 = vpop.f32.mrf.mxu0  ;;  %15430 = vst [vmem:[#allocation25_spill] sm:$0xff] %v14711_v50  ;;  %15436 = vst [vmem:[#allocation31_spill] sm:$0xff] %v14762_v43  ;;  %v11113_v17 = vmul.f32 %v14746_v35, %v14746_v35  ;;  %v7776_v18 = vadd.f32 %v14643_v44, %v14595_v8  ;;  %v11104_v54 = vmul.f32 %v14755_v53, %v14755_v53 }
 0x25a   :  { %v14715_v21 = vpop.f32.mrf.mxu1  ;;  %15437 = vst [vmem:[#allocation32_spill] sm:$0xff] %v14766_v62  ;;  %v11120_v40 = vmul.f32 %v14762_v43, %v14762_v43  ;;  %v11130_v63 = vmul.f32 %v14766_v62, %v14766_v62  ;;  %v14801_v61 = vadd.f32 %v14665_v19, %v7773_v20  ;;  %v7775_v37 = vadd.f32 %v14645_v36, %v14597_v57  ;;  %v15466_v62 = vld [vmem:[#allocation6_spill] sm:$0xff] }
 0x25b   :  { %v14713_v30 = vpop.f32.mrf.mxu0  ;;  %15432 = vst [vmem:[#allocation27_spill] sm:$0xff] %v14715_v21  ;;  %v7777_v8 = vadd.f32 %v14647_v38, %v14599_v59  ;;  %v11116_v42 = vadd.f32 %v11113_v17, %v11104_v54  ;;  %v14808_v44 = vadd.f32 %v14667_v22, %v7774_v2  ;;  %v11129_v48 = vmul.f32 %v14784_v0, %v14784_v0  ;;  %v15452_v54 = vld [vmem:[#allocation17_spill] sm:$0xff] }
 0x25c   :  { %15431 = vst [vmem:[#allocation26_spill] sm:$0xff] %v14713_v30  ;;  %v14719_v56 = vpop.f32.mrf.mxu1  ;;  %v14734_v30 = vadd.f32 %v8023_v33, %v14615_v27  ;;  %v11103_v27 = vmul.f32 %v14729_v29, %v14729_v29  ;;  %v14819_v19 = vadd.f32 %v14659_v14, %v14633_v25  ;;  %v7778_v59 = vadd.f32 %v14649_v12, %v14601_v32  ;;  %v15442_v12 = vld [vmem:[#allocation5_spill] sm:$0xff]  ;;  %v15443_v14 = vld [vmem:[#allocation7_spill] sm:$0xff] }
 0x25d   :  { %v14717_v45 = vpop.f32.mrf.mxu0  ;;  %v7780_v36 = vadd.f32 %v14651_v9, %v14603_v49  ;;  %v14828_v38 = vadd.f32 %v14663_v31, %v7771_v58  ;;  %v14831_v22 = vadd.f32 %v14671_v7, %v7775_v37  ;;  %v14838_v25 = vadd.f32 %v14661_v51, %v7772_v16  ;;  %v15445_v7 = vld [vmem:[#allocation9_spill] sm:$0xff]  ;;  %v15449_v58 = vld [vmem:[#allocation19_spill] sm:$0xff] }
 0x25e   :  { %15433 = vst [vmem:[#allocation28_spill] sm:$0xff] %v14717_v45  ;;  %v14731_v50 = vpop.f32.mrf.mxu1  ;;  %v11112_v45 = vmul.f32 %v14724_v55, %v14724_v55  ;;  %v11111_v33 = vmul.f32 %v14734_v30, %v14734_v30  ;;  %v11209_v32 = vmul.f32 %v14801_v61, %v14801_v61  ;;  %v7779_v49 = vadd.f32 %v15442_v12, %v14605_v6 }
 0x25f   :  { %v14721_v41 = vpop.f32.mrf.mxu0  ;;  %15441 = vst [vmem:[#allocation36_spill] sm:$0xff] %v14831_v22  ;;  %v11210_v9 = vmul.f32 %v14808_v44, %v14808_v44  ;;  %v14847_v31 = vadd.f32 %v15443_v14, %v7776_v18  ;;  %v11201_v6 = vmul.f32 %v14828_v38, %v14828_v38  ;;  %v11211_v16 = vmul.f32 %v14831_v22, %v14831_v22  ;;  %v15451_v18 = vld [vmem:[#allocation4_spill] sm:$0xff] }
 0x260   :  { %15434 = vst [vmem:[#allocation29_spill] sm:$0xff] %v14721_v41  ;;  %v14740_v41 = vadd.f32 %v8165_v15, %v7765_v11  ;;  %v14752_v28 = vpop.f32.mrf.mxu1  ;;  %v11115_v46 = vadd.f32 %v11112_v45, %v11103_v27  ;;  %v14781_v15 = vadd.f32 %v8234_v60, %v14625_v3  ;;  %v11114_v26 = vadd.f32 %v11111_v33, %v11102_v23  ;;  %v15447_v23 = vld [vmem:[#allocation18_spill] sm:$0xff] }
 0x261   :  { %v14736_v21 = vpop.f32.mrf.mxu0  ;;  %v14815_v45 = vadd.f32 %v14657_v24, %v7769_v4  ;;  %15444 = vst [vmem:[#allocation5_spill] sm:$0xff] %v14847_v31  ;;  %v14850_v27 = vadd.f32 %v15445_v7, %v7777_v8  ;;  %v14865_v17 = vadd.f32 %v15447_v23, %v7778_v59  ;;  %v14868_v20 = vadd.f32 %v15449_v58, %v7779_v49  ;;  %v15455_v49 = vld [vmem:[#allocation20_spill] sm:$0xff] }
 0x262   :  { %15435 = vst [vmem:[#allocation30_spill] sm:$0xff] %v14740_v41  ;;  %v11121_v52 = vmul.f32 %v14740_v41, %v14740_v41  ;;  %15438 = vst [vmem:[#allocation33_spill] sm:$0xff] %v14781_v15  ;;  %v14786_v39 = vpop.f32.mrf.mxu1  ;;  %v11122_v60 = vmul.f32 %v14781_v15, %v14781_v15  ;;  %v11123_v11 = vadd.f32 %v11120_v40, %v11114_v26 }
 0x263   :  { %v14759_v1 = vpop.f32.mrf.mxu0  ;;  %15440 = vst [vmem:[#allocation35_spill] sm:$0xff] %v14815_v45  ;;  %15446 = vst [vmem:[#allocation7_spill] sm:$0xff] %v14850_v27  ;;  %v11131_v51 = vmul.f32 %v14815_v45, %v14815_v45  ;;  %v7781_v26 = vadd.f32 %v15452_v54, %v15451_v18  ;;  %v11202_v40 = vmul.f32 %v14838_v25, %v14838_v25 }
 0x264   :  { %v11124_v3 = vadd.f32 %v11121_v52, %v11115_v46  ;;  %v14821_v57 = vpop.f32.mrf.mxu1  ;;  %v11125_v33 = vadd.f32 %v11122_v60, %v11116_v42  ;;  %v14852_v46 = vadd.f32 %v11129_v48, %v11123_v11  ;;  %v11200_v52 = vmul.f32 %v14819_v19, %v14819_v19  ;;  %15448 = vst [vmem:[#allocation9_spill] sm:$0xff] %v14865_v17  ;;  %v15453_v42 = vld [vmem:[#allocation11_spill] sm:$0xff] }
 0x265   :  { %v14794_v10 = vpop.f32.mrf.mxu0  ;;  %15450 = vst [vmem:[#allocation18_spill] sm:$0xff] %v14868_v20  ;;  %v11218_v37 = vmul.f32 %v14847_v31, %v14847_v31  ;;  %v11219_v8 = vmul.f32 %v14850_v27, %v14850_v27  ;;  %v14882_v60 = vadd.f32 %v15453_v42, %v7780_v36  ;;  %v11214_v11 = vadd.f32 %v11211_v16, %v11202_v40  ;;  %v15459_v40 = vld [vmem:[#allocation13_spill] sm:$0xff]  ;;  %v15473_v43 = vld [vmem:[#allocation28_spill] sm:$0xff] }
 0x266   :  { %v14835_v5 = vadd.f32 %v11130_v63, %v11124_v3  ;;  %v14858_v4 = vpop.f32.mrf.mxu1  ;;  %v11212_v3 = vadd.f32 %v11209_v32, %v11200_v52  ;;  %v11213_v63 = vadd.f32 %v11210_v9, %v11201_v6  ;;  %v14885_v48 = vadd.f32 %v11131_v51, %v11125_v33  ;;  %v15457_v52 = vld [vmem:[#allocation12_spill] sm:$0xff]  ;;  %v15458_v6 = vld [vmem:[#allocation22_spill] sm:$0xff] }
 0x267   :  { %v14833_v24 = vpop.f32.mrf.mxu0  ;;  %15454 = vst [vmem:[#allocation19_spill] sm:$0xff] %v14882_v60  ;;  %v11220_v32 = vmul.f32 %v14865_v17, %v14865_v17  ;;  %v11227_v12 = vmul.f32 %v14868_v20, %v14868_v20  ;;  %v14894_v9 = vadd.f32 %v15455_v49, %v7781_v26  ;;  %v11228_v33 = vmul.f32 %v14882_v60, %v14882_v60  ;;  %v15467_v17 = vld [vmem:[#allocation10_spill] sm:$0xff] }
 0x268   :  { %12260 = vrsqrt.f32 %v14835_v5  ;;  %v11221_v36 = vadd.f32 %v11218_v37, %v11212_v3  ;;  %v11222_v7 = vadd.f32 %v11219_v8, %v11213_v63  ;;  %v11166_v51 = vlaneseq  ;;  %v15460_v3 = vld [vmem:[#allocation23_spill] sm:$0xff] }
 0x269   :  { %v14870_v2 = vpop.f32.mrf.mxu0  ;;  %12262 = vrsqrt.f32 %v14852_v46  ;;  %15456 = vst [vmem:[#allocation4_spill] sm:$0xff] %v14894_v9  ;;  %v9237_v16 = vadd.f32 %v15458_v6, %v15457_v52  ;;  %v11223_v58 = vadd.f32 %v11220_v32, %v11214_v11  ;;  %v11229_v54 = vmul.f32 %v14894_v9, %v14894_v9  ;;  %v15461_v32 = vld [vmem:[#allocation21_spill] sm:$0xff] }
 0x26a   :  { %12264 = vrsqrt.f32 %v14885_v48  ;;  %v14905_v18 = vadd.f32 %v11227_v12, %v11221_v36  ;;  %v9239_v63 = vadd.f32 %v15460_v3, %v15459_v40  ;;  %v14915_v8 = vadd.f32 %v11228_v33, %v11222_v7  ;;  %v15462_v12 = vld [vmem:[#allocation16_spill] sm:$0xff] }
 0x26b   :  { %v11167_v49 = vshrl.u32 %v11166_v51, 7  ;;  %v9622_v52 = vadd.f32 %v14705_v47, %v9237_v16  ;;  %v14919_v11 = vadd.f32 %v11229_v54, %v11223_v58  ;;  %v9308_v36 = vadd.f32 %v15462_v12, %v15461_v32  ;;  %v11098_v58 = vld [vmem:[%s15301_s5] sm:$0x7]  ;;  %v15465_v12 = vld [vmem:[#allocation25_spill] sm:$0xff] }
 0x26c   :  { %12266 = vrsqrt.f32 %v14905_v18  ;;  %v9623_v6 = vadd.f32 %v14709_v13, %v9239_v63  ;;  %v15463_v13 = vld [vmem:[#allocation14_spill] sm:$0xff]  ;;  %v15464_v63 = vld [vmem:[#allocation8_spill] sm:$0xff]  ;;  %v9379_v0 = vadd.f32 %v15467_v17, %v15466_v62  ;;  %vm11137_vm0 = vcmp.eq.f32.partialorder %v14852_v46, inf  ;;  %v15470_v62 = vld [vmem:[#allocation15_spill] sm:$0xff] }
 0x26d   :  { %v14887_v59 = vpop.f32.mrf.mxu1  ;;  %12268 = vrsqrt.f32 %v14915_v8  ;;  %v11168_v33 = vsub.s32 0, %v11167_v49  ;;  %v11172_v3 = vsub.s32 1, %v11167_v49  ;;  %v11176_v51 = vsub.s32 2, %v11167_v49  ;;  %v15471_v17 = vld [vmem:[#allocation24_spill] sm:$0xff] }
 0x26e   :  { %v9867_v47 = vadd.f32 %v14719_v56, %v9622_v52  ;;  %12270 = vrsqrt.f32 %v14919_v11  ;;  %v9310_v32 = vadd.f32 %v15464_v63, %v15463_v13  ;;  %v9624_v60 = vadd.f32 %v15465_v12, %v9308_v36  ;;  %v15468_v13 = vld [vmem:[#allocation27_spill] sm:$0xff] }
 0x26f   :  { %v14902_v23 = vpop.f32.mrf.mxu1  ;;  %v9868_v49 = vadd.f32 %v14731_v50, %v9623_v6  ;;  %v14940_v45 = vrot.slane %v11098_v58, %v11168_v33  ;;  %v14942_v56 = vrot.slane %v11098_v58, %v11172_v3  ;;  %v14944_v52 = vrot.slane %v11098_v58, %v11176_v51  ;;  %v15469_v50 = vld [vmem:[#allocation29_spill] sm:$0xff] }
 0x270   :  { %v10112_v27 = vadd.f32 %v14759_v1, %v9867_v47  ;;  %v9625_v63 = vadd.f32 %v15468_v13, %v9310_v32  ;;  %v9869_v6 = vadd.f32 %v15469_v50, %v9624_v60  ;;  %vm11139_vm1 = vcmp.eq.f32.partialorder %v14852_v46, 0.0 }
 0x271   :  { %v9381_v1 = vadd.f32 %v15471_v17, %v15470_v62  ;;  %v10113_v47 = vadd.f32 %v14794_v10, %v9868_v49  ;;  %v11140_v12 = vand.u32 2147483648, %v14852_v46  ;;  %vm11144_vm2 = vcmp.eq.f32.partialorder %v14835_v5, inf }
 0x272   :  { %vm11146_vm3 = vcmp.eq.f32.partialorder %v14835_v5, 0.0  ;;  %v11147_v60 = vand.u32 2147483648, %v14835_v5  ;;  %vm11151_vm9 = vcmp.eq.f32.partialorder %v14885_v48, inf  ;;  %vm11153_vm10 = vcmp.eq.f32.partialorder %v14885_v48, 0.0 }
 0x273   :  { %v14896_v14 = vpop.f32.mrf.mxu0  ;;  %v10357_v13 = vadd.f32 %v14887_v59, %v10112_v27  ;;  %v11154_v49 = vand.u32 2147483648, %v14885_v48  ;;  %v9870_v50 = vadd.f32 %v14736_v21, %v9625_v63  ;;  %v10114_v62 = vadd.f32 %v14821_v57, %v9869_v6 }
 0x274   :  { %v9627_v22 = vadd.f32 %v15473_v43, %v9381_v1  ;;  %vm11235_vm11 = vcmp.eq.f32.partialorder %v14905_v18, inf  ;;  %vm11242_vm12 = vcmp.eq.f32.partialorder %v14915_v8, inf  ;;  %vm11237_vm13 = vcmp.eq.f32.partialorder %v14905_v18, 0.0 }
 0x275   :  { %v14909_v26 = vpop.f32.mrf.mxu0  ;;  %v12261_v40 = vpop.eup %12260  ;;  %v11245_v63 = vand.u32 2147483648, %v14915_v8  ;;  %v10115_v1 = vadd.f32 %v14858_v4, %v9870_v50  ;;  %vm11249_vm14 = vcmp.eq.f32.partialorder %v14919_v11, inf  ;;  %vm11244_vm15 = vcmp.eq.f32.partialorder %v14915_v8, 0.0 }
 0x276   :  { %v12263_v54 = vpop.eup %12262  ;;  %v11143_v36 = vmul.f32 %v12261_v40, %v14835_v5  ;;  %vm11251_vm4 = vcmp.eq.f32.partialorder %v14919_v11, 0.0 }
 0x277   :  { %v11136_v3 = vmul.f32 %v12263_v54, %v14852_v46  ;;  %v12265_v51 = vpop.eup %12264  ;;  %v15472_v54 = vld [vmem:[#allocation26_spill] sm:$0xff]  ;;  %v10360_v4 = vadd.f32 %v14909_v26, %v10115_v1 }
 0x278   :  { %v14913_v37 = vpop.f32.mrf.mxu1  ;;  %v9626_v32 = vadd.f32 %v15472_v54, %v9379_v0  ;;  %v11145_v10 = vsel %vm11144_vm2, %v14835_v5, %v11143_v36  ;;  %v11150_v15 = vmul.f32 %v12265_v51, %v14885_v48  ;;  %v10358_v0 = vadd.f32 %v14902_v23, %v10113_v47 }
 0x279   :  { %v11138_v17 = vsel %vm11137_vm0, %v14852_v46, %v11136_v3  ;;  %v12267_v41 = vpop.eup %12266  ;;  %v11148_v57 = vsel %vm11146_vm3, %v11147_v60, %v11145_v10  ;;  %v11238_v36 = vand.u32 2147483648, %v14905_v18  ;;  %v10359_v5 = vadd.f32 %v14896_v14, %v10114_v62 }
 0x27a   :  { %v14924_v9 = vpop.f32.mrf.mxu1  ;;  %v12269_v6 = vpop.eup %12268  ;;  %v9871_v43 = vadd.f32 %v14752_v28, %v9626_v32  ;;  %v11141_v51 = vsel %vm11139_vm1, %v11140_v12, %v11138_v17  ;;  %v11152_v60 = vsel %vm11151_vm9, %v14885_v48, %v11150_v15  ;;  %v11234_v54 = vmul.f32 %v12267_v41, %v14905_v18 }
 0x27b   :  { %v12271_v28 = vpop.eup %12270  ;;  %v11157_v46 = vmul.f32 0.5, %v11148_v57  ;;  %v11156_v12 = vmul.f32 0.5, %v11141_v51  ;;  %v11241_v15 = vmul.f32 %v12269_v6, %v14915_v8 }
 0x27c   :  { %v10116_v41 = vadd.f32 %v14833_v24, %v9871_v43  ;;  %v11236_v26 = vsel %vm11235_vm11, %v14905_v18, %v11234_v54 }
 0x27d   :  { %v10455_v42 = vpop.f32.mrf.mxu0 }
 0x27e   :  { %v10602_v27 = vadd.f32 %v10455_v42, %v10357_v13  ;;  %v10361_v24 = vadd.f32 %v14913_v37, %v10116_v41  ;;  %v11239_v37 = vsel %vm11237_vm13, %v11238_v36, %v11236_v26 }
 0x27f   :  { %v10457_v7 = vpop.f32.mrf.mxu0  ;;  %v11254_v18 = vmul.f32 0.5, %v11239_v37 }
 0x280   :  { %v10603_v23 = vadd.f32 %v10457_v7, %v10358_v0  ;;  %v9872_v7 = vadd.f32 %v14786_v39, %v9627_v22  ;;  %v11155_v39 = vsel %vm11153_vm10, %v11154_v49, %v11152_v60 }
 0x282   :  { %v14928_v16 = vpop.f32.mrf.mxu1  ;;  %v10117_v0 = vadd.f32 %v14870_v2, %v9872_v7 }
 0x283   :  { %v10604_v14 = vadd.f32 %v14928_v16, %v10359_v5  ;;  %v11248_v16 = vmul.f32 %v12271_v28, %v14919_v11 }
 0x284   :  { %v14949_v31 = vpop.f32.mrf.mxu1  ;;  %v10362_v6 = vadd.f32 %v14924_v9, %v10117_v0 }
 0x285   :  { %v10605_v22 = vadd.f32 %v14949_v31, %v10360_v4  ;;  %v11243_v31 = vsel %vm11242_vm12, %v14915_v8, %v11241_v15 }
 0x286   :  { %v11246_v28 = vsel %vm11244_vm15, %v11245_v63, %v11243_v31  ;;  %v11292_v31 = vld [vmem:[%s15302_s2 + $0x10] sm:$0xff] }
 0x287   :  { %v14937_v20 = vpop.f32.mrf.mxu0 }
 0x288   :  { %v10606_v43 = vadd.f32 %v14937_v20, %v10361_v24  ;;  %v11250_v20 = vsel %vm11249_vm14, %v14919_v11, %v11248_v16 }
 0x289   :  { %v14955_v33 = vpop.f32.mrf.mxu0 }
 0x28a   :  { %v10607_v5 = vadd.f32 %v14955_v33, %v10362_v6 }
 0x290   :  { %v10700_v58 = vpop.f32.mrf.mxu1 }
 0x291   :  { %v10847_v42 = vadd.f32 %v10700_v58, %v10602_v27 }
 0x292   :  { %v10702_v59 = vpop.f32.mrf.mxu1 }
 0x293   :  { %v10848_v58 = vadd.f32 %v10702_v59, %v10603_v23 }
 0x296   :  { %v10771_v40 = vpop.f32.mrf.mxu0 }
 0x297   :  { %v10849_v17 = vadd.f32 %v10771_v40, %v10604_v14  ;;  %v11252_v40 = vand.u32 2147483648, %v14919_v11 }
 0x298   :  { %v10773_v21 = vpop.f32.mrf.mxu0 }
 0x299   :  { %v10850_v49 = vadd.f32 %v10773_v21, %v10605_v22  ;;  %v11253_v14 = vsel %vm11251_vm4, %v11252_v40, %v11250_v20  ;;  %v11293_v40 = vld [vmem:[%s15302_s2 + $0x18] sm:$0xff]  ;;  %v11285_v20 = vld [vmem:[%s15303_s3] sm:$0xff] }
 0x29b   :  { %v10842_v3 = vpop.f32.mrf.mxu1 }
 0x29d   :  { %v10844_v10 = vpop.f32.mrf.mxu1 }
 0x29e   :  { %v10852_v7 = vadd.f32 %v10844_v10, %v10607_v5 }
 0x2a0   :  { %v10945_v47 = vpop.f32.mrf.mxu0 }
 0x2a1   :  { %v11092_v32 = vadd.f32 %v10945_v47, %v10847_v42  ;;  %v11158_v42 = vmul.f32 0.5, %v11155_v39  ;;  %v10851_v47 = vadd.f32 %v10842_v3, %v10606_v43  ;;  %v11256_v39 = vmul.f32 0.5, %v11253_v14 }
 0x2a2   :  { %v10947_v13 = vpop.f32.mrf.mxu0 }
 0x2a3   :  { %v11159_v50 = vmul.f32 0.5, %v11092_v32  ;;  %v11093_v62 = vadd.f32 %v10947_v13, %v10848_v58  ;;  %v11255_v13 = vmul.f32 0.5, %v11246_v28 }
 0x2a5   :  { %v15013_v27 = vadd.f32 %v11159_v50, %v11156_v12  ;;  %v11160_v59 = vmul.f32 0.5, %v11093_v62  ;;  %v11016_v48 = vpop.f32.mrf.mxu1 }
 0x2a6   :  { %v11094_v57 = vadd.f32 %v11016_v48, %v10849_v17 }
 0x2a7   :  { %v15021_v23 = vadd.f32 %v11160_v59, %v11157_v46  ;;  %v11018_v2 = vpop.f32.mrf.mxu1  ;;  %v11181_v21 = vmul.f32 %v14940_v45, %v15013_v27 }
 0x2a8   :  { %v11161_v51 = vmul.f32 0.5, %v11094_v57  ;;  %v11095_v1 = vadd.f32 %v11018_v2, %v10850_v49 }
 0x2a9   :  { %v11182_v9 = vmul.f32 %v14942_v56, %v15021_v23  ;;  %v11189_v32 = vmul.f32 %v11181_v21, %v15013_v27 }
 0x2aa   :  { %v15033_v60 = vadd.f32 %v11161_v51, %v11158_v42  ;;  %v11257_v36 = vmul.f32 0.5, %v11095_v1  ;;  %v11087_v54 = vpop.f32.mrf.mxu0 }
 0x2ab   :  { %v11190_v58 = vmul.f32 %v11182_v9, %v15021_v23  ;;  %v11096_v33 = vadd.f32 %v11087_v54, %v10851_v47  ;;  %v11184_v3 = vadd.f32 %v11182_v9, %v11181_v21  ;;  %v11287_v54 = vld [vmem:[%s15304_s4] sm:$0xff] }
 0x2ac   :  { %v15039_v46 = vadd.f32 %v11257_v36, %v11254_v18  ;;  %v11089_v4 = vpop.f32.mrf.mxu0  ;;  %v11183_v12 = vmul.f32 %v14944_v52, %v15033_v60 }
 0x2ad   :  { %v11258_v15 = vmul.f32 0.5, %v11096_v33  ;;  %v11097_v8 = vadd.f32 %v11089_v4, %v10852_v7  ;;  %v11192_v10 = vadd.f32 %v11190_v58, %v11189_v32 }
 0x2ae   :  { %v11185_v63 = vadd.f32 %v11184_v3, %v11183_v12  ;;  %v11191_v41 = vmul.f32 %v11183_v12, %v15033_v60  ;;  %v11263_v50 = vmul.f32 %v15039_v46, %v14940_v45 }
 0x2af   :  { %v15048_v62 = vadd.f32 %v11258_v15, %v11255_v13  ;;  %v11259_v22 = vmul.f32 0.5, %v11097_v8 }
 0x2b0   :  { %11186 = vadd.xlane.f32.xlu0 %v11185_v63  ;;  %v11193_v26 = vadd.f32 %v11192_v10, %v11191_v41  ;;  %v11271_v16 = vmul.f32 %v11263_v50, %v15039_v46  ;;  %v15475_v41 = vld [vmem:[#allocation31_spill] sm:$0xff] }
 0x2b1   :  { %v11264_v11 = vmul.f32 %v15048_v62, %v14942_v56  ;;  %v15052_v17 = vadd.f32 %v11259_v22, %v11256_v39  ;;  %v11290_v56 = vld [vmem:[%s15302_s2] sm:$0xff]  ;;  %v15476_v39 = vld [vmem:[#allocation30_spill] sm:$0xff] }
 0x2b3   :  { %v11272_v0 = vmul.f32 %v11264_v11, %v15048_v62  ;;  %v11265_v24 = vmul.f32 %v15052_v17, %v14944_v52  ;;  %v11266_v59 = vadd.f32 %v11264_v11, %v11263_v50  ;;  %v11291_v52 = vld [vmem:[%s15302_s2 + $0x8] sm:$0xff] }
 0x2b4   :  { %11194 = vadd.xlane.f32.xlu0 %v11193_v26 }
 0x2b5   :  { %v11267_v45 = vadd.f32 %v11266_v59, %v11265_v24  ;;  %v11273_v48 = vmul.f32 %v11265_v24, %v15052_v17  ;;  %v11274_v49 = vadd.f32 %v11272_v0, %v11271_v16  ;;  %v15477_v0 = vld [vmem:[#allocation33_spill] sm:$0xff] }
 0x2b7   :  { %11268 = vadd.xlane.f32.xlu1 %v11267_v45  ;;  %v11275_v57 = vadd.f32 %v11274_v49, %v11273_v48  ;;  %v15478_v49 = vld [vmem:[#allocation5_spill] sm:$0xff] }
 0x2b9   :  { %11276 = vadd.xlane.f32.xlu0 %v11275_v57 }
 0x2c8   :  { %11296 = vperm.xlu1 %12246, %v11290_v56  }
 0x2cc   :  { %11306 = vperm.xlu1 %12246, %v11292_v31  }
 0x2cf   :  { %11301 = vperm.xlu0 %12247, %v11291_v52  }
 0x2d0   :  { %11311 = vperm.xlu1 %12246, %v11293_v40   ;;  %v15479_v40 = vld [vmem:[#allocation7_spill] sm:$0xff] }
 0x339   :  { %v11187_v6 = vpop.xlane.xlu0 %11186 }
 0x33d   :  { %v11195_v43 = vpop.xlane.xlu0 %11194 }
 0x340   :  { %v11269_v2 = vpop.xlane.xlu1 %11268 }
 0x341   :  { %v11270_v37 = vadd.f32 %v11269_v2, %v11187_v6  ;;  %v15480_v2 = vld [vmem:[#allocation34_spill] sm:$0xff] }
 0x342   :  { %v11277_v21 = vpop.xlane.xlu0 %11276 }
 0x343   :  { %v11279_v42 = vmul.f32 0.001953125, %v11270_v37  ;;  %v11278_v51 = vadd.f32 %v11277_v21, %v11195_v43 }
 0x344   :  { %v11297_v58 = vpop.permute.xlu1 %11296 }
 0x345   :  { %v11281_v1 = vmul.f32 %v11279_v42, %v11279_v42  ;;  %v11280_v5 = vmul.f32 0.001953125, %v11278_v51  ;;  %v15084_v14 = vadd.f32 %v11297_v58, %v14743_v34  ;;  %v15087_v12 = vadd.f32 %v11297_v58, %v14729_v29 }
 0x346   :  { %v15093_v15 = vadd.f32 %v11297_v58, %v14755_v53  ;;  %v15096_v8 = vadd.f32 %v11297_v58, %v14819_v19  ;;  %v15474_v19 = vld [vmem:[#allocation36_spill] sm:$0xff] }
 0x347   :  { %v11282_v47 = vsub.f32 %v11280_v5, %v11281_v1  ;;  %v15482_v5 = vld [vmem:[#allocation32_spill] sm:$0xff] }
 0x348   :  { %v11307_v32 = vpop.permute.xlu1 %11306  ;;  %v11459_v50 = vmul.f32 %v15096_v8, %v15096_v8 }
 0x349   :  { %v11283_v9 = vadd.f32 1e-05, %v11282_v47  ;;  %v15122_v10 = vadd.f32 %v11307_v32, %v15475_v41  ;;  %v15131_v22 = vadd.f32 %v11307_v32, %v15476_v39  ;;  %v15138_v24 = vadd.f32 %v11307_v32, %v15477_v0 }
 0x34a   :  { %v11302_v33 = vpop.permute.xlu0 %11301  ;;  %v15145_v57 = vadd.f32 %v11307_v32, %v15478_v49  ;;  %v15152_v6 = vadd.f32 %v11307_v32, %v15479_v40 }
 0x34b   :  { %12272 = vrsqrt.f32 %v11283_v9  ;;  %v15078_v3 = vadd.f32 %v11302_v33, %v14734_v30  ;;  %v15081_v4 = vadd.f32 %v11302_v33, %v14724_v55  ;;  %v15090_v13 = vadd.f32 %v11302_v33, %v14746_v35 }
 0x34c   :  { %v15099_v30 = vadd.f32 %v11302_v33, %v14801_v61  ;;  %v15102_v55 = vadd.f32 %v11297_v58, %v14828_v38  ;;  %v15107_v29 = vadd.f32 %v11302_v33, %v14808_v44  ;;  %v15110_v35 = vadd.f32 %v11297_v58, %v14838_v25  ;;  %v11312_v26 = vpop.permute.xlu1 %11311 }
 0x34d   :  { %v11345_v34 = vmul.f32 %v15078_v3, %v15078_v3  ;;  %v11346_v53 = vmul.f32 %v15081_v4, %v15081_v4  ;;  %v15115_v63 = vadd.f32 %v11302_v33, %v15474_v19  ;;  %v11336_v61 = vmul.f32 %v15084_v14, %v15084_v14  ;;  %v15484_v33 = vld [vmem:[#allocation18_spill] sm:$0xff] }
 0x34e   :  { %v11337_v38 = vmul.f32 %v15087_v12, %v15087_v12  ;;  %v11347_v44 = vmul.f32 %v15090_v13, %v15090_v13  ;;  %v11338_v25 = vmul.f32 %v15093_v15, %v15093_v15  ;;  %v11471_v11 = vmul.f32 %v15099_v30, %v15099_v30 }
 0x34f   :  { %v11460_v16 = vmul.f32 %v15102_v55, %v15102_v55  ;;  %v11348_v59 = vadd.f32 %v11345_v34, %v11336_v61  ;;  %v11472_v45 = vmul.f32 %v15107_v29, %v15107_v29  ;;  %v11461_v48 = vmul.f32 %v15110_v35, %v15110_v35  ;;  %v15485_v61 = vld [vmem:[#allocation19_spill] sm:$0xff] }
 0x350   :  { %v11349_v56 = vadd.f32 %v11346_v53, %v11337_v38  ;;  %v11473_v31 = vmul.f32 %v15115_v63, %v15115_v63  ;;  %v11354_v52 = vmul.f32 %v15122_v10, %v15122_v10  ;;  %v11350_v43 = vadd.f32 %v11347_v44, %v11338_v25 }
 0x351   :  { %v15155_v37 = vadd.f32 %v11312_v26, %v15480_v2  ;;  %v11355_v21 = vmul.f32 %v15131_v22, %v15131_v22  ;;  %v11474_v1 = vadd.f32 %v11471_v11, %v11459_v50  ;;  %v15163_v47 = vadd.f32 %v11312_v26, %v15482_v5  ;;  %v15486_v50 = vld [vmem:[#allocation4_spill] sm:$0xff] }
 0x352   :  { %v11356_v9 = vmul.f32 %v15138_v24, %v15138_v24  ;;  %v11476_v58 = vadd.f32 %v11473_v31, %v11461_v48  ;;  %v11484_v34 = vmul.f32 %v15152_v6, %v15152_v6  ;;  %v15180_v38 = vadd.f32 %v11312_v26, %v15485_v61 }
 0x353   :  { %v11363_v19 = vmul.f32 %v15155_v37, %v15155_v37  ;;  %v11364_v25 = vmul.f32 %v15163_v47, %v15163_v47  ;;  %v15187_v39 = vadd.f32 %v11312_v26, %v15486_v50 }
 0x354   :  { %v11359_v53 = vadd.f32 %v11356_v9, %v11350_v43 }
 0x355   :  { %v11497_v31 = vmul.f32 %v15187_v39, %v15187_v39 }
 0x358   :  { %v12273_v18 = vpop.eup %12272 }
 0x359   :  { %v11286_v36 = vmul.f32 %v12273_v18, %v11285_v20  ;;  %v11357_v20 = vadd.f32 %v11354_v52, %v11348_v59  ;;  %v11475_v18 = vadd.f32 %v11472_v45, %v11460_v16 }
 0x35b   :  { %11316 = vperm.xlu1 %12246, %v11286_v36   ;;  %v11288_v28 = vmul.f32 %v11286_v36, %v11279_v42  ;;  %v15481_v42 = vld [vmem:[#allocation9_spill] sm:$0xff]  ;;  %v15483_v36 = vld [vmem:[#allocation35_spill] sm:$0xff]  ;;  %v11487_v11 = vadd.f32 %v11484_v34, %v11475_v18  ;;  %v11366_v0 = vadd.f32 %v11363_v19, %v11357_v20 }
 0x35c   :  { %v15160_v51 = vadd.f32 %v11307_v32, %v15481_v42  ;;  %v15173_v32 = vadd.f32 %v11312_v26, %v15484_v33 }
 0x35d   :  { %v11289_v7 = vsub.f32 %v11287_v54, %v11288_v28  ;;  %v15168_v54 = vadd.f32 %v11312_v26, %v15483_v36  ;;  %v11483_v28 = vmul.f32 %v15145_v57, %v15145_v57  ;;  %12274 = vrsqrt.f32 %v11366_v0 }
 0x35e   :  { %v11485_v41 = vmul.f32 %v15160_v51, %v15160_v51  ;;  %v11495_v48 = vmul.f32 %v15173_v32, %v15173_v32  ;;  %vm11371_vm5 = vcmp.eq.f32.partialorder %v11366_v0, inf  ;;  %vm11373_vm6 = vcmp.eq.f32.partialorder %v11366_v0, 0.0 }
 0x35f   :  { %11324 = vperm.xlu1 %12246, %v11289_v7   ;;  %v11358_v7 = vadd.f32 %v11355_v21, %v11349_v56  ;;  %v11486_v44 = vadd.f32 %v11483_v28, %v11474_v1  ;;  %v11365_v16 = vmul.f32 %v15168_v54, %v15168_v54  ;;  %v11496_v56 = vmul.f32 %v15180_v38, %v15180_v38 }
 0x360   :  { %v11488_v59 = vadd.f32 %v11485_v41, %v11476_v58 }
 0x361   :  { %v11367_v45 = vadd.f32 %v11364_v25, %v11358_v7  ;;  %v11368_v49 = vadd.f32 %v11365_v16, %v11359_v53  ;;  %v11498_v52 = vadd.f32 %v11495_v48, %v11486_v44  ;;  %v11499_v26 = vadd.f32 %v11496_v56, %v11487_v11 }
 0x362   :  { %v11500_v40 = vadd.f32 %v11497_v31, %v11488_v59  ;;  %v11374_v7 = vand.u32 2147483648, %v11366_v0 }
 0x363   :  { %12276 = vrsqrt.f32 %v11367_v45  ;;  %vm11378_vm7 = vcmp.eq.f32.partialorder %v11367_v45, inf  ;;  %vm11380_vm8 = vcmp.eq.f32.partialorder %v11367_v45, 0.0  ;;  %vm11385_vm0 = vcmp.eq.f32.partialorder %v11368_v49, inf }
 0x364   :  { %12278 = vrsqrt.f32 %v11368_v49  ;;  %v11381_v53 = vand.u32 2147483648, %v11367_v45  ;;  %vm11387_vm1 = vcmp.eq.f32.partialorder %v11368_v49, 0.0  ;;  %vm11503_vm2 = vcmp.eq.f32.partialorder %v11498_v52, inf }
 0x365   :  { %12280 = vrsqrt.f32 %v11498_v52  ;;  %v11388_v41 = vand.u32 2147483648, %v11368_v49  ;;  %vm11510_vm3 = vcmp.eq.f32.partialorder %v11499_v26, inf  ;;  %v11506_v50 = vand.u32 2147483648, %v11498_v52 }
 0x366   :  { %12282 = vrsqrt.f32 %v11499_v26  ;;  %vm11517_vm9 = vcmp.eq.f32.partialorder %v11500_v40, inf  ;;  %vm11505_vm10 = vcmp.eq.f32.partialorder %v11498_v52, 0.0  ;;  %vm11512_vm11 = vcmp.eq.f32.partialorder %v11499_v26, 0.0 }
 0x367   :  { %12284 = vrsqrt.f32 %v11500_v40  ;;  %v11520_v31 = vand.u32 2147483648, %v11500_v40  ;;  %vm11519_vm12 = vcmp.eq.f32.partialorder %v11500_v40, 0.0 }
 0x36a   :  { %v12275_v43 = vpop.eup %12274 }
 0x36b   :  { %v11370_v1 = vmul.f32 %v12275_v43, %v11366_v0 }
 0x36d   :  { %v11372_v28 = vsel %vm11371_vm5, %v11366_v0, %v11370_v1  ;;  %v11513_v0 = vand.u32 2147483648, %v11499_v26 }
 0x36e   :  { %v11375_v61 = vsel %vm11373_vm6, %v11374_v7, %v11372_v28 }
 0x36f   :  { %v11390_v48 = vadd.f32 1e-08, %v11375_v61 }
 0x370   :  { %v12277_v2 = vpop.eup %12276 }
 0x371   :  { %v12279_v21 = vpop.eup %12278  ;;  %v11377_v9 = vmul.f32 %v12277_v2, %v11367_v45  ;;  %12286 = vrcp.f32 %v11390_v48 }
 0x372   :  { %v12281_v42 = vpop.eup %12280  ;;  %v11384_v18 = vmul.f32 %v12279_v21, %v11368_v49 }
 0x373   :  { %v12283_v5 = vpop.eup %12282  ;;  %v11502_v36 = vmul.f32 %v12281_v42, %v11498_v52  ;;  %v11379_v33 = vsel %vm11378_vm7, %v11367_v45, %v11377_v9 }
 0x374   :  { %v12285_v20 = vpop.eup %12284  ;;  %v11509_v58 = vmul.f32 %v12283_v5, %v11499_v26  ;;  %v11386_v19 = vsel %vm11385_vm0, %v11368_v49, %v11384_v18  ;;  %v11382_v25 = vsel %vm11380_vm8, %v11381_v53, %v11379_v33 }
 0x375   :  { %v11516_v34 = vmul.f32 %v12285_v20, %v11500_v40  ;;  %v11504_v44 = vsel %vm11503_vm2, %v11498_v52, %v11502_v36  ;;  %v11389_v16 = vsel %vm11387_vm1, %v11388_v41, %v11386_v19  ;;  %v11391_v45 = vadd.f32 1e-08, %v11382_v25 }
 0x376   :  { %v11511_v11 = vsel %vm11510_vm3, %v11499_v26, %v11509_v58  ;;  %v11507_v56 = vsel %vm11505_vm10, %v11506_v50, %v11504_v44  ;;  %v11392_v2 = vadd.f32 1e-08, %v11389_v16 }
 0x377   :  { %v11518_v59 = vsel %vm11517_vm9, %v11500_v40, %v11516_v34  ;;  %v11514_v43 = vsel %vm11512_vm11, %v11513_v0, %v11511_v11  ;;  %v11522_v49 = vadd.f32 1e-08, %v11507_v56  ;;  %12288 = vrcp.f32 %v11391_v45 }
 0x378   :  { %v11521_v21 = vsel %vm11519_vm12, %v11520_v31, %v11518_v59  ;;  %v11523_v42 = vadd.f32 1e-08, %v11514_v43  ;;  %12290 = vrcp.f32 %v11392_v2 }
 0x379   :  { %v11524_v1 = vadd.f32 1e-08, %v11521_v21  ;;  %12292 = vrcp.f32 %v11522_v49 }
 0x37a   :  { %12294 = vrcp.f32 %v11523_v42 }
 0x37b   :  { %12296 = vrcp.f32 %v11524_v1 }
 0x37e   :  { %v12287_v20 = vpop.eup %12286 }
 0x384   :  { %v12289_v7 = vpop.eup %12288 }
 0x385   :  { %v12291_v19 = vpop.eup %12290 }
 0x386   :  { %v12293_v41 = vpop.eup %12292 }
 0x3d6   :  { %v11317_v52 = vpop.permute.xlu1 %11316 }
 0x3d7   :  { %v11319_v5 = vmul.f32 %v11317_v52, %v15013_v27  ;;  %v11320_v26 = vmul.f32 %v11317_v52, %v15021_v23  ;;  %v11321_v9 = vmul.f32 %v11317_v52, %v15033_v60  ;;  %v11444_v40 = vmul.f32 %v11317_v52, %v15039_v46  ;;  %v12295_v46 = vpop.eup %12294 }
 0x3d8   :  { %v11445_v18 = vmul.f32 %v11317_v52, %v15048_v62  ;;  %v11446_v36 = vmul.f32 %v11317_v52, %v15052_v17  ;;  %v12297_v62 = vpop.eup %12296 }
 0x3da   :  { %v11325_v28 = vpop.permute.xlu1 %11324 }
 0x3db   :  { %v11327_v58 = vadd.f32 %v11325_v28, %v11319_v5  ;;  %v11328_v33 = vadd.f32 %v11325_v28, %v11320_v26  ;;  %v11329_v34 = vadd.f32 %v11325_v28, %v11321_v9  ;;  %v11447_v53 = vadd.f32 %v11444_v40, %v11325_v28 }
 0x3dc   :  { %v11448_v61 = vadd.f32 %v11445_v18, %v11325_v28  ;;  %v11449_v27 = vadd.f32 %v11446_v36, %v11325_v28 }
 0x3dd   :  { %v11330_v23 = vmax.f32 %v11327_v58, 0.0  ;;  %v11331_v44 = vmax.f32 %v11328_v33, 0.0  ;;  %v11332_v60 = vmax.f32 %v11329_v34, 0.0  ;;  %v11450_v25 = vmax.f32 %v11447_v53, 0.0 }
 0x3de   :  { %v11451_v50 = vmax.f32 %v11448_v61, 0.0  ;;  %v11452_v11 = vmax.f32 %v11449_v27, 0.0 }
 0x3df   :  { %v11396_v16 = vmul.f32 %v12287_v20, %v11330_v23  ;;  %v11397_v17 = vmul.f32 %v12289_v7, %v11331_v44  ;;  %v11398_v0 = vmul.f32 %v12291_v19, %v11332_v60  ;;  %v11528_v59 = vmul.f32 %v12293_v41, %v11450_v25 }
 0x3e0   :  { %v11529_v48 = vmul.f32 %v12295_v46, %v11451_v50  ;;  %v11530_v56 = vmul.f32 %v12297_v62, %v11452_v11 }
 0x3e1   :  { %v11399_v31 = vmul.f32 %v11396_v16, %v15084_v14  ;;  %v11400_v45 = vmul.f32 %v11397_v17, %v15087_v12  ;;  %v11401_v43 = vmul.f32 %v11398_v0, %v15093_v15  ;;  %v11411_v2 = vmul.f32 %v11396_v16, %v15078_v3 }
 0x3e2   :  { %v11412_v21 = vmul.f32 %v11397_v17, %v15081_v4  ;;  %v11413_v49 = vmul.f32 %v11398_v0, %v15090_v13  ;;  %v11424_v42 = vmul.f32 %v11396_v16, %v15122_v10  ;;  %v11425_v1 = vmul.f32 %v11397_v17, %v15131_v22 }
 0x3e3   :  { %11402 = vst [vmem:[%s15305_s6] sm:$0xff] %v11399_v31  ;;  %11403 = vst [vmem:[%s15305_s6 + $0x8] sm:$0xff] %v11400_v45  ;;  %v11426_v3 = vmul.f32 %v11398_v0, %v15138_v24  ;;  %v11437_v4 = vmul.f32 %v11396_v16, %v15155_v37  ;;  %v11438_v14 = vmul.f32 %v11397_v17, %v15163_v47 }
 0x3e4   :  { %11404 = vst [vmem:[%s15305_s6 + $0x10] sm:$0xff] %v11401_v43  ;;  %11716 = vst [vmem:[%s15305_s6 + $0x18] sm:$0xff] %v11411_v2  ;;  %v11439_v12 = vmul.f32 %v11398_v0, %v15168_v54  ;;  %v11531_v13 = vmul.f32 %v11528_v59, %v15096_v8  ;;  %v11532_v15 = vmul.f32 %v11529_v48, %v15102_v55 }
 0x3e5   :  { %11717 = vst [vmem:[%s15305_s6 + $0x20] sm:$0xff] %v11412_v21  ;;  %11718 = vst [vmem:[%s15305_s6 + $0x28] sm:$0xff] %v11413_v49  ;;  %v11533_v10 = vmul.f32 %v11530_v56, %v15110_v35  ;;  %v11544_v22 = vmul.f32 %v11528_v59, %v15099_v30  ;;  %v11545_v8 = vmul.f32 %v11529_v48, %v15107_v29 }
 0x3e6   :  { %11719 = vst [vmem:[%s15305_s6 + $0x30] sm:$0xff] %v11424_v42  ;;  %11720 = vst [vmem:[%s15305_s6 + $0x38] sm:$0xff] %v11425_v1  ;;  %v11546_v30 = vmul.f32 %v11530_v56, %v15115_v63  ;;  %v11557_v55 = vmul.f32 %v11528_v59, %v15145_v57  ;;  %v11558_v35 = vmul.f32 %v11529_v48, %v15152_v6 }
 0x3e7   :  { %11721 = vst [vmem:[%s15305_s6 + $0x40] sm:$0xff] %v11426_v3  ;;  %11722 = vst [vmem:[%s15305_s6 + $0x48] sm:$0xff] %v11437_v4  ;;  %v11559_v29 = vmul.f32 %v11530_v56, %v15160_v51  ;;  %v11570_v63 = vmul.f32 %v11528_v59, %v15173_v32  ;;  %v11571_v24 = vmul.f32 %v11529_v48, %v15180_v38 }
 0x3e8   :  { %11723 = vst [vmem:[%s15305_s6 + $0x50] sm:$0xff] %v11438_v14  ;;  %11724 = vst [vmem:[%s15305_s6 + $0x58] sm:$0xff] %v11439_v12  ;;  %v11572_v57 = vmul.f32 %v11530_v56, %v15187_v39 }
 0x3e9   :  { %11725 = vst [vmem:[%s15305_s6 + $0x60] sm:$0xff] %v11531_v13  ;;  %11726 = vst [vmem:[%s15305_s6 + $0x68] sm:$0xff] %v11532_v15 }
 0x3ea   :  { %11727 = vst [vmem:[%s15305_s6 + $0x70] sm:$0xff] %v11533_v10  ;;  %11728 = vst [vmem:[%s15305_s6 + $0x78] sm:$0xff] %v11544_v22 }
 0x3eb   :  { %11729 = vst [vmem:[%s15305_s6 + $0x80] sm:$0xff] %v11545_v8  ;;  %11730 = vst [vmem:[%s15305_s6 + $0x88] sm:$0xff] %v11546_v30 }
 0x3ec   :  { %11731 = vst [vmem:[%s15305_s6 + $0x90] sm:$0xff] %v11557_v55  ;;  %11732 = vst [vmem:[%s15305_s6 + $0x98] sm:$0xff] %v11558_v35 }
 0x3ed   :  { %11733 = vst [vmem:[%s15305_s6 + $0xa0] sm:$0xff] %v11559_v29  ;;  %11734 = vst [vmem:[%s15305_s6 + $0xa8] sm:$0xff] %v11570_v63 }
 0x3ee   :  { %11735 = vst [vmem:[%s15305_s6 + $0xb0] sm:$0xff] %v11571_v24  ;;  %11736 = vst [vmem:[%s15305_s6 + $0xb8] sm:$0xff] %v11572_v57 }

</bundles_post_ra>
